<compile_context>
chip_gen: v7x
topology: tpu7x:2x2x1
jax: 0.10.0
libtpu: 0.0.40
codegen_flags: <defaults>
</compile_context>

<pallas_src>
import jax
import jax.numpy as jnp
from jax.experimental import pallas as pl
from jax.experimental.pallas import tpu as pltpu

FACTOR_NUM = 64      # factor_num in the PyTorch module
USER_NUM = 64        # shrunk from 138493 for the synthetic example
ITEM_NUM = 128       # shrunk from 26744 for the synthetic example
BATCH = 32           # rows of one_batch (4 grid tiles of 8)
N_ITEMS = 8          # items per row (col 0 of one_batch is the user id)
B_TILE = 8           # batch rows per grid step
LANES = 128          # lane-dense partials output width


def _softplus(x):
    # stable log(1 + exp(x));  nls(x) := -log(sigmoid(x)) == _softplus(-x)
    return jnp.maximum(x, 0.0) + jnp.log(1.0 + jnp.exp(-jnp.abs(x)))


def selfmodel_kernel(ids_ref,                 # SMEM (B, 1+N) int32 (scalar prefetch)
                     user_hbm,                # ANY/HBM (U, D) f32
                     item_vmem,               # VMEM (I, D) f32 (resident, const block)
                     loss_ref, l2_ref,        # VMEM (1, 1, LANES) per-tile partials
                     ubuf, ibuf, sem):        # VMEM (Bt, D), VMEM (Bt, N, D), DMA sem (1,)
    B_t, D = ubuf.shape
    N = ibuf.shape[1]
    row0 = pl.multiple_of(pl.program_id(0) * B_t, B_t)

    # -- 1. Launch the user-row gather (HBM -> VMEM); all copies on one sem. --
    for b in range(B_t):
        uid = ids_ref[row0 + b, 0]
        pltpu.make_async_copy(user_hbm.at[pl.ds(uid, 1)],
                              ubuf.at[pl.ds(b, 1)], sem.at[0]).start()

    # -- 2. While the user DMAs fly: gather item rows from the VMEM-resident --
    #       item table (dynamic-slice reads, zero HBM traffic) and do the
    #       user-independent math.  All SMEM id reads happen before the wait.
    for b in range(B_t):
        for n in range(N):
            iid = ids_ref[row0 + b, 1 + n]
            ibuf[b, pl.ds(n, 1), :] = item_vmem[pl.ds(iid, 1), :]

    it3 = ibuf[...]                                      # (Bt, N, D)
    it_sq = jnp.sum(it3 * it3, axis=2)                   # (Bt, N)

    # -- 3. Single aggregate wait: one descriptor sized to the WHOLE ubuf     --
    #       drains all B_t row copies (the DMA semaphore accumulates bytes).
    pltpu.make_async_copy(user_hbm.at[pl.ds(0, B_t)], ubuf, sem.at[0]).wait()

    u = ubuf[...]                                        # (Bt, D)

    # z[b, n] = <user_b, item_{b,n}>  (tiny tile: VPU multiply + lane reduce)
    z = jnp.sum(u[:, None, :] * it3, axis=-1)            # (Bt, N)
    z_ai = z[:, 0:1]                                     # (Bt, 1)
    z_aj = z[:, 1:2]                                     # (Bt, 1)

    # fun_z(flag=True): clamp |z_ai - z_aj| at 0.5
    pos_sim1 = jnp.minimum(jnp.abs(z_ai - z_aj), 0.5)

    # Vectorized negatives: nls(z_a* - z_ak) = softplus(z_ak - z_a*), all
    # columns at once; columns 0/1 masked out of the sum / running max.
    one_pn_all = _softplus(z - z_ai) + _softplus(z - z_aj)           # (Bt, N)
    col = jax.lax.broadcasted_iota(jnp.int32, z.shape, 1)
    neg = col >= 2
    loss_m6 = jnp.sum(jnp.where(neg, one_pn_all, 0.0),
                      axis=1, keepdims=True)                         # (Bt, 1)
    loss_m6_min = jnp.max(jnp.where(neg, one_pn_all, -1e30),
                          axis=1, keepdims=True)                     # running max

    # loss_posdis per-row term: nls(2*pos_sim1 - loss_m6_min)
    loss_posdis_row = _softplus(loss_m6_min - 2.0 * pos_sim1)        # (Bt, 1)

    # l2 row term: 0.01 * (sum_d u^2 + sum_{n,d} item^2)
    l2_row = 0.01 * (jnp.sum(u * u, axis=1, keepdims=True)
                     + jnp.sum(it_sq, axis=1, keepdims=True))        # (Bt, 1)

    # Per-tile partial sums, broadcast lane-dense into this tile's block.
    loss_tile = jnp.sum(loss_posdis_row + loss_m6 + l2_row,
                        axis=0, keepdims=True)                       # (1, 1)
    l2_tile = jnp.sum(l2_row, axis=0, keepdims=True)                 # (1, 1)
    loss_ref[...] = jnp.broadcast_to(loss_tile[None], (1, 1, LANES))
    l2_ref[...] = jnp.broadcast_to(l2_tile[None], (1, 1, LANES))
    # TODO(synk): torch.isnan(...) -> pdb.set_trace() debug branch is host-side
    # control flow with no in-kernel equivalent; intentionally omitted.


def selfmodel_forward(one_batch, embed_user, embed_item, *, b_tile=B_TILE):
    """Fused forward: id prefetch + in-kernel embedding gathers + loss math."""
    B, cols = one_batch.shape
    N = cols - 1
    assert N >= 3, "need at least one negative item column (N >= 3)"
    assert B % b_tile == 0, "batch must be divisible by the tile size"
    num_tiles = B // b_tile
    D = embed_user.shape[1]
    I = embed_item.shape[0]

    loss_parts, l2_parts = pl.pallas_call(
        selfmodel_kernel,
        out_shape=(
            jax.ShapeDtypeStruct((num_tiles, 1, LANES), jnp.float32),
            jax.ShapeDtypeStruct((num_tiles, 1, LANES), jnp.float32),
        ),
        grid_spec=pltpu.PrefetchScalarGridSpec(
            num_scalar_prefetch=1,                           # one_batch ids -> SMEM
            grid=(num_tiles,),
            in_specs=[
                pl.BlockSpec(memory_space=pl.ANY),           # user table stays in HBM
                pl.BlockSpec((I, D), lambda i, ids: (0, 0)),  # item table VMEM-resident
            ],
            out_specs=(
                pl.BlockSpec((1, 1, LANES), lambda i, ids: (i, 0, 0)),
                pl.BlockSpec((1, 1, LANES), lambda i, ids: (i, 0, 0)),
            ),
            scratch_shapes=[
                pltpu.VMEM((b_tile, D), jnp.float32),        # gathered user rows
                pltpu.VMEM((b_tile, N, D), jnp.float32),     # gathered item rows
                pltpu.SemaphoreType.DMA((1,)),               # user-gather semaphore
            ],
        ),
        compiler_params=pltpu.CompilerParams(
            dimension_semantics=("parallel",),               # v7x: split tiles over TCs
            vmem_limit_bytes=32 * 1024 * 1024),
    )(one_batch.astype(jnp.int32),
      embed_user.astype(jnp.float32),
      embed_item.astype(jnp.float32))

    inv_b = 1.0 / B
    loss = jnp.sum(loss_parts[:, 0, 0]) * inv_b
    l2 = jnp.sum(l2_parts[:, 0, 0]) * inv_b
    return loss, l2


def _reference_forward(one_batch, embed_user, embed_item):
    """Pure-JAX reference replicating the torch forward exactly."""
    user_i = jnp.take(embed_user, one_batch[:, 0], axis=0)
    item_i = jnp.take(embed_item, one_batch[:, 1:].reshape(-1), axis=0).reshape(
        one_batch.shape[0], one_batch.shape[1] - 1, -1)
    z = jnp.sum(user_i[:, None, :] * item_i, axis=-1)
    z_ai, z_aj = z[:, 0], z[:, 1]
    pos_sim1 = jnp.where(jnp.abs(z_ai - z_aj) > 0.5, 0.5, jnp.abs(z_ai - z_aj))
    nls = lambda x: -jnp.log(jax.nn.sigmoid(x))
    one_pn = nls(z_ai - z[:, 2]) + nls(z_aj - z[:, 2])
    loss_m6, loss_m6_min = one_pn, one_pn
    for k in range(3, z.shape[1]):
        one_pn = nls(z_ai - z[:, k]) + nls(z_aj - z[:, k])
        loss_m6 = loss_m6 + one_pn
        loss_m6_min = jnp.where(one_pn > loss_m6_min, one_pn, loss_m6_min)
    loss_posdis = jnp.mean(nls(pos_sim1 * 2.0 - loss_m6_min))
    loss_pre = loss_posdis + jnp.mean(loss_m6)
    l2 = 0.01 * jnp.mean(jnp.sum(user_i ** 2 + jnp.sum(item_i ** 2, axis=1), axis=-1))
    return loss_pre + l2, l2


if __name__ == "__main__":
    key = jax.random.PRNGKey(0)
    k_u, k_i, k_uid, k_iid = jax.random.split(key, 4)

    # nn.init.normal_(std=0.01) equivalents
    embed_user = 0.01 * jax.random.normal(k_u, (USER_NUM, FACTOR_NUM), jnp.float32)
    embed_item = 0.01 * jax.random.normal(k_i, (ITEM_NUM, FACTOR_NUM), jnp.float32)

    # one_batch: column 0 = user id, columns 1..N = item ids
    user_ids = jax.random.randint(k_uid, (BATCH, 1), 0, USER_NUM, jnp.int32)
    item_ids = jax.random.randint(k_iid, (BATCH, N_ITEMS), 0, ITEM_NUM, jnp.int32)
    one_batch = jnp.concatenate([user_ids, item_ids], axis=1)  # (B, 1+N)

    loss, l2 = selfmodel_forward(one_batch, embed_user, embed_item)
    jax.block_until_ready((loss, l2))

    ref_loss, ref_l2 = _reference_forward(one_batch, embed_user, embed_item)
    assert jnp.allclose(loss, ref_loss, rtol=1e-4, atol=1e-5), (loss, ref_loss)
    assert jnp.allclose(l2, ref_l2, rtol=1e-4, atol=1e-5), (l2, ref_l2)

    print("KERNEL_OK")
</pallas_src>

<mosaic_0001>
module attributes {stable_mosaic.version = 11 : i64} {
  func.func @selfmodel_kernel(%arg0: i32, %arg1: memref<32x9xi32, #tpu.memory_space<smem>>, %arg2: memref<64x64xf32, #tpu.memory_space<any>>, %arg3: memref<128x64xf32, #tpu.memory_space<vmem>>, %arg4: memref<1x1x128xf32, #tpu.memory_space<vmem>>, %arg5: memref<1x1x128xf32, #tpu.memory_space<vmem>>, %arg6: memref<8x64xf32, #tpu.memory_space<vmem>>, %arg7: memref<8x8x64xf32, #tpu.memory_space<vmem>>, %arg8: memref<1x!tpu.dma_semaphore, #tpu.memory_space<semaphore_mem>>) attributes {dimension_semantics = [#tpu.dimension_semantics<parallel>], iteration_bounds = array<i64: 4>, scalar_prefetch = 1 : i64, scratch_operands = 3 : i64, tpu.core_type = #tpu.core_type<tc>, window_params = [{}, {pipeline_mode = #tpu.pipeline_mode<synchronous>, transform_indices = @transform_1, window_bounds = array<i64: 128, 64>}, {transform_indices = @transform_2, window_bounds = array<i64: 1, 1, 128>}, {transform_indices = @transform_3, window_bounds = array<i64: 1, 1, 128>}]} {
    %c8_i32 = arith.constant 8 : i32
    %0 = arith.muli %arg0, %c8_i32 : i32
    %1 = tpu.assume_multiple %0, 8 : i32
    %c0_i32 = arith.constant 0 : i32
    %2 = arith.addi %1, %c0_i32 : i32
    %3 = arith.index_cast %2 : i32 to index
    %c0 = arith.constant 0 : index
    %4 = memref.load %arg1[%3, %c0] : memref<32x9xi32, #tpu.memory_space<smem>>
    %c0_i32_0 = arith.constant 0 : i32
    %c0_i32_1 = arith.constant 0 : i32
    %5 = tpu.memref_slice %arg2[%4, %c0_i32_1] : memref<64x64xf32, #tpu.memory_space<any>> -> memref<1x64xf32, #tpu.memory_space<any>>
    %c0_i32_2 = arith.constant 0 : i32
    %c0_i32_3 = arith.constant 0 : i32
    %6 = tpu.memref_slice %arg6[%c0_i32_2, %c0_i32_3] : memref<8x64xf32, #tpu.memory_space<vmem>> -> memref<1x64xf32, #tpu.memory_space<vmem>>
    %7 = tpu.memref_slice %arg8[%c0_i32_0] : memref<1x!tpu.dma_semaphore, #tpu.memory_space<semaphore_mem>> -> memref<1x!tpu.dma_semaphore, #tpu.memory_space<semaphore_mem>>
    %8 = tpu.memref_squeeze %7 : memref<1x!tpu.dma_semaphore, #tpu.memory_space<semaphore_mem>> -> memref<!tpu.dma_semaphore, #tpu.memory_space<semaphore_mem>>
    tpu.enqueue_dma source(%5 : memref<1x64xf32, #tpu.memory_space<any>>) target(%6 : memref<1x64xf32, #tpu.memory_space<vmem>>) target_semaphore(%8 : memref<!tpu.dma_semaphore, #tpu.memory_space<semaphore_mem>>)
    %c1_i32 = arith.constant 1 : i32
    %9 = arith.addi %1, %c1_i32 : i32
    %10 = arith.index_cast %9 : i32 to index
    %c0_4 = arith.constant 0 : index
    %11 = memref.load %arg1[%10, %c0_4] : memref<32x9xi32, #tpu.memory_space<smem>>
    %c0_i32_5 = arith.constant 0 : i32
    %c0_i32_6 = arith.constant 0 : i32
    %12 = tpu.memref_slice %arg2[%11, %c0_i32_6] : memref<64x64xf32, #tpu.memory_space<any>> -> memref<1x64xf32, #tpu.memory_space<any>>
    %c1_i32_7 = arith.constant 1 : i32
    %c0_i32_8 = arith.constant 0 : i32
    %13 = tpu.memref_slice %arg6[%c1_i32_7, %c0_i32_8] : memref<8x64xf32, #tpu.memory_space<vmem>> -> memref<1x64xf32, #tpu.memory_space<vmem>>
    %14 = tpu.memref_slice %arg8[%c0_i32_5] : memref<1x!tpu.dma_semaphore, #tpu.memory_space<semaphore_mem>> -> memref<1x!tpu.dma_semaphore, #tpu.memory_space<semaphore_mem>>
    %15 = tpu.memref_squeeze %14 : memref<1x!tpu.dma_semaphore, #tpu.memory_space<semaphore_mem>> -> memref<!tpu.dma_semaphore, #tpu.memory_space<semaphore_mem>>
    tpu.enqueue_dma source(%12 : memref<1x64xf32, #tpu.memory_space<any>>) target(%13 : memref<1x64xf32, #tpu.memory_space<vmem>>) target_semaphore(%15 : memref<!tpu.dma_semaphore, #tpu.memory_space<semaphore_mem>>)
    %c2_i32 = arith.constant 2 : i32
    %16 = arith.addi %1, %c2_i32 : i32
    %17 = arith.index_cast %16 : i32 to index
    %c0_9 = arith.constant 0 : index
    %18 = memref.load %arg1[%17, %c0_9] : memref<32x9xi32, #tpu.memory_space<smem>>
    %c0_i32_10 = arith.constant 0 : i32
    %c0_i32_11 = arith.constant 0 : i32
    %19 = tpu.memref_slice %arg2[%18, %c0_i32_11] : memref<64x64xf32, #tpu.memory_space<any>> -> memref<1x64xf32, #tpu.memory_space<any>>
    %c2_i32_12 = arith.constant 2 : i32
    %c0_i32_13 = arith.constant 0 : i32
    %20 = tpu.memref_slice %arg6[%c2_i32_12, %c0_i32_13] : memref<8x64xf32, #tpu.memory_space<vmem>> -> memref<1x64xf32, #tpu.memory_space<vmem>>
    %21 = tpu.memref_slice %arg8[%c0_i32_10] : memref<1x!tpu.dma_semaphore, #tpu.memory_space<semaphore_mem>> -> memref<1x!tpu.dma_semaphore, #tpu.memory_space<semaphore_mem>>
    %22 = tpu.memref_squeeze %21 : memref<1x!tpu.dma_semaphore, #tpu.memory_space<semaphore_mem>> -> memref<!tpu.dma_semaphore, #tpu.memory_space<semaphore_mem>>
    tpu.enqueue_dma source(%19 : memref<1x64xf32, #tpu.memory_space<any>>) target(%20 : memref<1x64xf32, #tpu.memory_space<vmem>>) target_semaphore(%22 : memref<!tpu.dma_semaphore, #tpu.memory_space<semaphore_mem>>)
    %c3_i32 = arith.constant 3 : i32
    %23 = arith.addi %1, %c3_i32 : i32
    %24 = arith.index_cast %23 : i32 to index
    %c0_14 = arith.constant 0 : index
    %25 = memref.load %arg1[%24, %c0_14] : memref<32x9xi32, #tpu.memory_space<smem>>
    %c0_i32_15 = arith.constant 0 : i32
    %c0_i32_16 = arith.constant 0 : i32
    %26 = tpu.memref_slice %arg2[%25, %c0_i32_16] : memref<64x64xf32, #tpu.memory_space<any>> -> memref<1x64xf32, #tpu.memory_space<any>>
    %c3_i32_17 = arith.constant 3 : i32
    %c0_i32_18 = arith.constant 0 : i32
    %27 = tpu.memref_slice %arg6[%c3_i32_17, %c0_i32_18] : memref<8x64xf32, #tpu.memory_space<vmem>> -> memref<1x64xf32, #tpu.memory_space<vmem>>
    %28 = tpu.memref_slice %arg8[%c0_i32_15] : memref<1x!tpu.dma_semaphore, #tpu.memory_space<semaphore_mem>> -> memref<1x!tpu.dma_semaphore, #tpu.memory_space<semaphore_mem>>
    %29 = tpu.memref_squeeze %28 : memref<1x!tpu.dma_semaphore, #tpu.memory_space<semaphore_mem>> -> memref<!tpu.dma_semaphore, #tpu.memory_space<semaphore_mem>>
    tpu.enqueue_dma source(%26 : memref<1x64xf32, #tpu.memory_space<any>>) target(%27 : memref<1x64xf32, #tpu.memory_space<vmem>>) target_semaphore(%29 : memref<!tpu.dma_semaphore, #tpu.memory_space<semaphore_mem>>)
    %c4_i32 = arith.constant 4 : i32
    %30 = arith.addi %1, %c4_i32 : i32
    %31 = arith.index_cast %30 : i32 to index
    %c0_19 = arith.constant 0 : index
    %32 = memref.load %arg1[%31, %c0_19] : memref<32x9xi32, #tpu.memory_space<smem>>
    %c0_i32_20 = arith.constant 0 : i32
    %c0_i32_21 = arith.constant 0 : i32
    %33 = tpu.memref_slice %arg2[%32, %c0_i32_21] : memref<64x64xf32, #tpu.memory_space<any>> -> memref<1x64xf32, #tpu.memory_space<any>>
    %c4_i32_22 = arith.constant 4 : i32
    %c0_i32_23 = arith.constant 0 : i32
    %34 = tpu.memref_slice %arg6[%c4_i32_22, %c0_i32_23] : memref<8x64xf32, #tpu.memory_space<vmem>> -> memref<1x64xf32, #tpu.memory_space<vmem>>
    %35 = tpu.memref_slice %arg8[%c0_i32_20] : memref<1x!tpu.dma_semaphore, #tpu.memory_space<semaphore_mem>> -> memref<1x!tpu.dma_semaphore, #tpu.memory_space<semaphore_mem>>
    %36 = tpu.memref_squeeze %35 : memref<1x!tpu.dma_semaphore, #tpu.memory_space<semaphore_mem>> -> memref<!tpu.dma_semaphore, #tpu.memory_space<semaphore_mem>>
    tpu.enqueue_dma source(%33 : memref<1x64xf32, #tpu.memory_space<any>>) target(%34 : memref<1x64xf32, #tpu.memory_space<vmem>>) target_semaphore(%36 : memref<!tpu.dma_semaphore, #tpu.memory_space<semaphore_mem>>)
    %c5_i32 = arith.constant 5 : i32
    %37 = arith.addi %1, %c5_i32 : i32
    %38 = arith.index_cast %37 : i32 to index
    %c0_24 = arith.constant 0 : index
    %39 = memref.load %arg1[%38, %c0_24] : memref<32x9xi32, #tpu.memory_space<smem>>
    %c0_i32_25 = arith.constant 0 : i32
    %c0_i32_26 = arith.constant 0 : i32
    %40 = tpu.memref_slice %arg2[%39, %c0_i32_26] : memref<64x64xf32, #tpu.memory_space<any>> -> memref<1x64xf32, #tpu.memory_space<any>>
    %c5_i32_27 = arith.constant 5 : i32
    %c0_i32_28 = arith.constant 0 : i32
    %41 = tpu.memref_slice %arg6[%c5_i32_27, %c0_i32_28] : memref<8x64xf32, #tpu.memory_space<vmem>> -> memref<1x64xf32, #tpu.memory_space<vmem>>
    %42 = tpu.memref_slice %arg8[%c0_i32_25] : memref<1x!tpu.dma_semaphore, #tpu.memory_space<semaphore_mem>> -> memref<1x!tpu.dma_semaphore, #tpu.memory_space<semaphore_mem>>
    %43 = tpu.memref_squeeze %42 : memref<1x!tpu.dma_semaphore, #tpu.memory_space<semaphore_mem>> -> memref<!tpu.dma_semaphore, #tpu.memory_space<semaphore_mem>>
    tpu.enqueue_dma source(%40 : memref<1x64xf32, #tpu.memory_space<any>>) target(%41 : memref<1x64xf32, #tpu.memory_space<vmem>>) target_semaphore(%43 : memref<!tpu.dma_semaphore, #tpu.memory_space<semaphore_mem>>)
    %c6_i32 = arith.constant 6 : i32
    %44 = arith.addi %1, %c6_i32 : i32
    %45 = arith.index_cast %44 : i32 to index
    %c0_29 = arith.constant 0 : index
    %46 = memref.load %arg1[%45, %c0_29] : memref<32x9xi32, #tpu.memory_space<smem>>
    %c0_i32_30 = arith.constant 0 : i32
    %c0_i32_31 = arith.constant 0 : i32
    %47 = tpu.memref_slice %arg2[%46, %c0_i32_31] : memref<64x64xf32, #tpu.memory_space<any>> -> memref<1x64xf32, #tpu.memory_space<any>>
    %c6_i32_32 = arith.constant 6 : i32
    %c0_i32_33 = arith.constant 0 : i32
    %48 = tpu.memref_slice %arg6[%c6_i32_32, %c0_i32_33] : memref<8x64xf32, #tpu.memory_space<vmem>> -> memref<1x64xf32, #tpu.memory_space<vmem>>
    %49 = tpu.memref_slice %arg8[%c0_i32_30] : memref<1x!tpu.dma_semaphore, #tpu.memory_space<semaphore_mem>> -> memref<1x!tpu.dma_semaphore, #tpu.memory_space<semaphore_mem>>
    %50 = tpu.memref_squeeze %49 : memref<1x!tpu.dma_semaphore, #tpu.memory_space<semaphore_mem>> -> memref<!tpu.dma_semaphore, #tpu.memory_space<semaphore_mem>>
    tpu.enqueue_dma source(%47 : memref<1x64xf32, #tpu.memory_space<any>>) target(%48 : memref<1x64xf32, #tpu.memory_space<vmem>>) target_semaphore(%50 : memref<!tpu.dma_semaphore, #tpu.memory_space<semaphore_mem>>)
    %c7_i32 = arith.constant 7 : i32
    %51 = arith.addi %1, %c7_i32 : i32
    %52 = arith.index_cast %51 : i32 to index
    %c0_34 = arith.constant 0 : index
    %53 = memref.load %arg1[%52, %c0_34] : memref<32x9xi32, #tpu.memory_space<smem>>
    %c0_i32_35 = arith.constant 0 : i32
    %c0_i32_36 = arith.constant 0 : i32
    %54 = tpu.memref_slice %arg2[%53, %c0_i32_36] : memref<64x64xf32, #tpu.memory_space<any>> -> memref<1x64xf32, #tpu.memory_space<any>>
    %c7_i32_37 = arith.constant 7 : i32
    %c0_i32_38 = arith.constant 0 : i32
    %55 = tpu.memref_slice %arg6[%c7_i32_37, %c0_i32_38] : memref<8x64xf32, #tpu.memory_space<vmem>> -> memref<1x64xf32, #tpu.memory_space<vmem>>
    %56 = tpu.memref_slice %arg8[%c0_i32_35] : memref<1x!tpu.dma_semaphore, #tpu.memory_space<semaphore_mem>> -> memref<1x!tpu.dma_semaphore, #tpu.memory_space<semaphore_mem>>
    %57 = tpu.memref_squeeze %56 : memref<1x!tpu.dma_semaphore, #tpu.memory_space<semaphore_mem>> -> memref<!tpu.dma_semaphore, #tpu.memory_space<semaphore_mem>>
    tpu.enqueue_dma source(%54 : memref<1x64xf32, #tpu.memory_space<any>>) target(%55 : memref<1x64xf32, #tpu.memory_space<vmem>>) target_semaphore(%57 : memref<!tpu.dma_semaphore, #tpu.memory_space<semaphore_mem>>)
    %c0_i32_39 = arith.constant 0 : i32
    %58 = arith.addi %1, %c0_i32_39 : i32
    %59 = arith.index_cast %58 : i32 to index
    %c1 = arith.constant 1 : index
    %60 = memref.load %arg1[%59, %c1] : memref<32x9xi32, #tpu.memory_space<smem>>
    %61 = arith.index_cast %60 : i32 to index
    %c0_40 = arith.constant 0 : index
    %62 = vector.load %arg3[%61, %c0_40] : memref<128x64xf32, #tpu.memory_space<vmem>>, vector<1x64xf32>
    %c0_41 = arith.constant 0 : index
    %c0_42 = arith.constant 0 : index
    %c0_43 = arith.constant 0 : index
    %63 = vector.load %arg7[%c0_41, %c0_42, %c0_43] : memref<8x8x64xf32, #tpu.memory_space<vmem>>, vector<1x1x64xf32>
    %64 = vector.shape_cast %63 : vector<1x1x64xf32> to vector<1x64xf32>
    %65 = vector.shape_cast %62 : vector<1x64xf32> to vector<1x1x64xf32>
    tpu.vector_store %arg7[%c0_41, %c0_42, %c0_43], %65 {strides = array<i32>} : memref<8x8x64xf32, #tpu.memory_space<vmem>>, vector<1x1x64xf32>,
    %c0_i32_44 = arith.constant 0 : i32
    %66 = arith.addi %1, %c0_i32_44 : i32
    %67 = arith.index_cast %66 : i32 to index
    %c2 = arith.constant 2 : index
    %68 = memref.load %arg1[%67, %c2] : memref<32x9xi32, #tpu.memory_space<smem>>
    %69 = arith.index_cast %68 : i32 to index
    %c0_45 = arith.constant 0 : index
    %70 = vector.load %arg3[%69, %c0_45] : memref<128x64xf32, #tpu.memory_space<vmem>>, vector<1x64xf32>
    %c0_46 = arith.constant 0 : index
    %c1_47 = arith.constant 1 : index
    %c0_48 = arith.constant 0 : index
    %71 = vector.load %arg7[%c0_46, %c1_47, %c0_48] : memref<8x8x64xf32, #tpu.memory_space<vmem>>, vector<1x1x64xf32>
    %72 = vector.shape_cast %71 : vector<1x1x64xf32> to vector<1x64xf32>
    %73 = vector.shape_cast %70 : vector<1x64xf32> to vector<1x1x64xf32>
    tpu.vector_store %arg7[%c0_46, %c1_47, %c0_48], %73 {strides = array<i32>} : memref<8x8x64xf32, #tpu.memory_space<vmem>>, vector<1x1x64xf32>,
    %c0_i32_49 = arith.constant 0 : i32
    %74 = arith.addi %1, %c0_i32_49 : i32
    %75 = arith.index_cast %74 : i32 to index
    %c3 = arith.constant 3 : index
    %76 = memref.load %arg1[%75, %c3] : memref<32x9xi32, #tpu.memory_space<smem>>
    %77 = arith.index_cast %76 : i32 to index
    %c0_50 = arith.constant 0 : index
    %78 = vector.load %arg3[%77, %c0_50] : memref<128x64xf32, #tpu.memory_space<vmem>>, vector<1x64xf32>
    %c0_51 = arith.constant 0 : index
    %c2_52 = arith.constant 2 : index
    %c0_53 = arith.constant 0 : index
    %79 = vector.load %arg7[%c0_51, %c2_52, %c0_53] : memref<8x8x64xf32, #tpu.memory_space<vmem>>, vector<1x1x64xf32>
    %80 = vector.shape_cast %79 : vector<1x1x64xf32> to vector<1x64xf32>
    %81 = vector.shape_cast %78 : vector<1x64xf32> to vector<1x1x64xf32>
    tpu.vector_store %arg7[%c0_51, %c2_52, %c0_53], %81 {strides = array<i32>} : memref<8x8x64xf32, #tpu.memory_space<vmem>>, vector<1x1x64xf32>,
    %c0_i32_54 = arith.constant 0 : i32
    %82 = arith.addi %1, %c0_i32_54 : i32
    %83 = arith.index_cast %82 : i32 to index
    %c4 = arith.constant 4 : index
    %84 = memref.load %arg1[%83, %c4] : memref<32x9xi32, #tpu.memory_space<smem>>
    %85 = arith.index_cast %84 : i32 to index
    %c0_55 = arith.constant 0 : index
    %86 = vector.load %arg3[%85, %c0_55] : memref<128x64xf32, #tpu.memory_space<vmem>>, vector<1x64xf32>
    %c0_56 = arith.constant 0 : index
    %c3_57 = arith.constant 3 : index
    %c0_58 = arith.constant 0 : index
    %87 = vector.load %arg7[%c0_56, %c3_57, %c0_58] : memref<8x8x64xf32, #tpu.memory_space<vmem>>, vector<1x1x64xf32>
    %88 = vector.shape_cast %87 : vector<1x1x64xf32> to vector<1x64xf32>
    %89 = vector.shape_cast %86 : vector<1x64xf32> to vector<1x1x64xf32>
    tpu.vector_store %arg7[%c0_56, %c3_57, %c0_58], %89 {strides = array<i32>} : memref<8x8x64xf32, #tpu.memory_space<vmem>>, vector<1x1x64xf32>,
    %c0_i32_59 = arith.constant 0 : i32
    %90 = arith.addi %1, %c0_i32_59 : i32
    %91 = arith.index_cast %90 : i32 to index
    %c5 = arith.constant 5 : index
    %92 = memref.load %arg1[%91, %c5] : memref<32x9xi32, #tpu.memory_space<smem>>
    %93 = arith.index_cast %92 : i32 to index
    %c0_60 = arith.constant 0 : index
    %94 = vector.load %arg3[%93, %c0_60] : memref<128x64xf32, #tpu.memory_space<vmem>>, vector<1x64xf32>
    %c0_61 = arith.constant 0 : index
    %c4_62 = arith.constant 4 : index
    %c0_63 = arith.constant 0 : index
    %95 = vector.load %arg7[%c0_61, %c4_62, %c0_63] : memref<8x8x64xf32, #tpu.memory_space<vmem>>, vector<1x1x64xf32>
    %96 = vector.shape_cast %95 : vector<1x1x64xf32> to vector<1x64xf32>
    %97 = vector.shape_cast %94 : vector<1x64xf32> to vector<1x1x64xf32>
    tpu.vector_store %arg7[%c0_61, %c4_62, %c0_63], %97 {strides = array<i32>} : memref<8x8x64xf32, #tpu.memory_space<vmem>>, vector<1x1x64xf32>,
    %c0_i32_64 = arith.constant 0 : i32
    %98 = arith.addi %1, %c0_i32_64 : i32
    %99 = arith.index_cast %98 : i32 to index
    %c6 = arith.constant 6 : index
    %100 = memref.load %arg1[%99, %c6] : memref<32x9xi32, #tpu.memory_space<smem>>
    %101 = arith.index_cast %100 : i32 to index
    %c0_65 = arith.constant 0 : index
    %102 = vector.load %arg3[%101, %c0_65] : memref<128x64xf32, #tpu.memory_space<vmem>>, vector<1x64xf32>
    %c0_66 = arith.constant 0 : index
    %c5_67 = arith.constant 5 : index
    %c0_68 = arith.constant 0 : index
    %103 = vector.load %arg7[%c0_66, %c5_67, %c0_68] : memref<8x8x64xf32, #tpu.memory_space<vmem>>, vector<1x1x64xf32>
    %104 = vector.shape_cast %103 : vector<1x1x64xf32> to vector<1x64xf32>
    %105 = vector.shape_cast %102 : vector<1x64xf32> to vector<1x1x64xf32>
    tpu.vector_store %arg7[%c0_66, %c5_67, %c0_68], %105 {strides = array<i32>} : memref<8x8x64xf32, #tpu.memory_space<vmem>>, vector<1x1x64xf32>,
    %c0_i32_69 = arith.constant 0 : i32
    %106 = arith.addi %1, %c0_i32_69 : i32
    %107 = arith.index_cast %106 : i32 to index
    %c7 = arith.constant 7 : index
    %108 = memref.load %arg1[%107, %c7] : memref<32x9xi32, #tpu.memory_space<smem>>
    %109 = arith.index_cast %108 : i32 to index
    %c0_70 = arith.constant 0 : index
    %110 = vector.load %arg3[%109, %c0_70] : memref<128x64xf32, #tpu.memory_space<vmem>>, vector<1x64xf32>
    %c0_71 = arith.constant 0 : index
    %c6_72 = arith.constant 6 : index
    %c0_73 = arith.constant 0 : index
    %111 = vector.load %arg7[%c0_71, %c6_72, %c0_73] : memref<8x8x64xf32, #tpu.memory_space<vmem>>, vector<1x1x64xf32>
    %112 = vector.shape_cast %111 : vector<1x1x64xf32> to vector<1x64xf32>
    %113 = vector.shape_cast %110 : vector<1x64xf32> to vector<1x1x64xf32>
    tpu.vector_store %arg7[%c0_71, %c6_72, %c0_73], %113 {strides = array<i32>} : memref<8x8x64xf32, #tpu.memory_space<vmem>>, vector<1x1x64xf32>,
    %c0_i32_74 = arith.constant 0 : i32
    %114 = arith.addi %1, %c0_i32_74 : i32
    %115 = arith.index_cast %114 : i32 to index
    %c8 = arith.constant 8 : index
    %116 = memref.load %arg1[%115, %c8] : memref<32x9xi32, #tpu.memory_space<smem>>
    %117 = arith.index_cast %116 : i32 to index
    %c0_75 = arith.constant 0 : index
    %118 = vector.load %arg3[%117, %c0_75] : memref<128x64xf32, #tpu.memory_space<vmem>>, vector<1x64xf32>
    %c0_76 = arith.constant 0 : index
    %c7_77 = arith.constant 7 : index
    %c0_78 = arith.constant 0 : index
    %119 = vector.load %arg7[%c0_76, %c7_77, %c0_78] : memref<8x8x64xf32, #tpu.memory_space<vmem>>, vector<1x1x64xf32>
    %120 = vector.shape_cast %119 : vector<1x1x64xf32> to vector<1x64xf32>
    %121 = vector.shape_cast %118 : vector<1x64xf32> to vector<1x1x64xf32>
    tpu.vector_store %arg7[%c0_76, %c7_77, %c0_78], %121 {strides = array<i32>} : memref<8x8x64xf32, #tpu.memory_space<vmem>>, vector<1x1x64xf32>,
    %c1_i32_79 = arith.constant 1 : i32
    %122 = arith.addi %1, %c1_i32_79 : i32
    %123 = arith.index_cast %122 : i32 to index
    %c1_80 = arith.constant 1 : index
    %124 = memref.load %arg1[%123, %c1_80] : memref<32x9xi32, #tpu.memory_space<smem>>
    %125 = arith.index_cast %124 : i32 to index
    %c0_81 = arith.constant 0 : index
    %126 = vector.load %arg3[%125, %c0_81] : memref<128x64xf32, #tpu.memory_space<vmem>>, vector<1x64xf32>
    %c1_82 = arith.constant 1 : index
    %c0_83 = arith.constant 0 : index
    %c0_84 = arith.constant 0 : index
    %127 = vector.load %arg7[%c1_82, %c0_83, %c0_84] : memref<8x8x64xf32, #tpu.memory_space<vmem>>, vector<1x1x64xf32>
    %128 = vector.shape_cast %127 : vector<1x1x64xf32> to vector<1x64xf32>
    %129 = vector.shape_cast %126 : vector<1x64xf32> to vector<1x1x64xf32>
    tpu.vector_store %arg7[%c1_82, %c0_83, %c0_84], %129 {strides = array<i32>} : memref<8x8x64xf32, #tpu.memory_space<vmem>>, vector<1x1x64xf32>,
    %c1_i32_85 = arith.constant 1 : i32
    %130 = arith.addi %1, %c1_i32_85 : i32
    %131 = arith.index_cast %130 : i32 to index
    %c2_86 = arith.constant 2 : index
    %132 = memref.load %arg1[%131, %c2_86] : memref<32x9xi32, #tpu.memory_space<smem>>
    %133 = arith.index_cast %132 : i32 to index
    %c0_87 = arith.constant 0 : index
    %134 = vector.load %arg3[%133, %c0_87] : memref<128x64xf32, #tpu.memory_space<vmem>>, vector<1x64xf32>
    %c1_88 = arith.constant 1 : index
    %c1_89 = arith.constant 1 : index
    %c0_90 = arith.constant 0 : index
    %135 = vector.load %arg7[%c1_88, %c1_89, %c0_90] : memref<8x8x64xf32, #tpu.memory_space<vmem>>, vector<1x1x64xf32>
    %136 = vector.shape_cast %135 : vector<1x1x64xf32> to vector<1x64xf32>
    %137 = vector.shape_cast %134 : vector<1x64xf32> to vector<1x1x64xf32>
    tpu.vector_store %arg7[%c1_88, %c1_89, %c0_90], %137 {strides = array<i32>} : memref<8x8x64xf32, #tpu.memory_space<vmem>>, vector<1x1x64xf32>,
    %c1_i32_91 = arith.constant 1 : i32
    %138 = arith.addi %1, %c1_i32_91 : i32
    %139 = arith.index_cast %138 : i32 to index
    %c3_92 = arith.constant 3 : index
    %140 = memref.load %arg1[%139, %c3_92] : memref<32x9xi32, #tpu.memory_space<smem>>
    %141 = arith.index_cast %140 : i32 to index
    %c0_93 = arith.constant 0 : index
    %142 = vector.load %arg3[%141, %c0_93] : memref<128x64xf32, #tpu.memory_space<vmem>>, vector<1x64xf32>
    %c1_94 = arith.constant 1 : index
    %c2_95 = arith.constant 2 : index
    %c0_96 = arith.constant 0 : index
    %143 = vector.load %arg7[%c1_94, %c2_95, %c0_96] : memref<8x8x64xf32, #tpu.memory_space<vmem>>, vector<1x1x64xf32>
    %144 = vector.shape_cast %143 : vector<1x1x64xf32> to vector<1x64xf32>
    %145 = vector.shape_cast %142 : vector<1x64xf32> to vector<1x1x64xf32>
    tpu.vector_store %arg7[%c1_94, %c2_95, %c0_96], %145 {strides = array<i32>} : memref<8x8x64xf32, #tpu.memory_space<vmem>>, vector<1x1x64xf32>,
    %c1_i32_97 = arith.constant 1 : i32
    %146 = arith.addi %1, %c1_i32_97 : i32
    %147 = arith.index_cast %146 : i32 to index
    %c4_98 = arith.constant 4 : index
    %148 = memref.load %arg1[%147, %c4_98] : memref<32x9xi32, #tpu.memory_space<smem>>
    %149 = arith.index_cast %148 : i32 to index
    %c0_99 = arith.constant 0 : index
    %150 = vector.load %arg3[%149, %c0_99] : memref<128x64xf32, #tpu.memory_space<vmem>>, vector<1x64xf32>
    %c1_100 = arith.constant 1 : index
    %c3_101 = arith.constant 3 : index
    %c0_102 = arith.constant 0 : index
    %151 = vector.load %arg7[%c1_100, %c3_101, %c0_102] : memref<8x8x64xf32, #tpu.memory_space<vmem>>, vector<1x1x64xf32>
    %152 = vector.shape_cast %151 : vector<1x1x64xf32> to vector<1x64xf32>
    %153 = vector.shape_cast %150 : vector<1x64xf32> to vector<1x1x64xf32>
    tpu.vector_store %arg7[%c1_100, %c3_101, %c0_102], %153 {strides = array<i32>} : memref<8x8x64xf32, #tpu.memory_space<vmem>>, vector<1x1x64xf32>,
    %c1_i32_103 = arith.constant 1 : i32
    %154 = arith.addi %1, %c1_i32_103 : i32
    %155 = arith.index_cast %154 : i32 to index
    %c5_104 = arith.constant 5 : index
    %156 = memref.load %arg1[%155, %c5_104] : memref<32x9xi32, #tpu.memory_space<smem>>
    %157 = arith.index_cast %156 : i32 to index
    %c0_105 = arith.constant 0 : index
    %158 = vector.load %arg3[%157, %c0_105] : memref<128x64xf32, #tpu.memory_space<vmem>>, vector<1x64xf32>
    %c1_106 = arith.constant 1 : index
    %c4_107 = arith.constant 4 : index
    %c0_108 = arith.constant 0 : index
    %159 = vector.load %arg7[%c1_106, %c4_107, %c0_108] : memref<8x8x64xf32, #tpu.memory_space<vmem>>, vector<1x1x64xf32>
    %160 = vector.shape_cast %159 : vector<1x1x64xf32> to vector<1x64xf32>
    %161 = vector.shape_cast %158 : vector<1x64xf32> to vector<1x1x64xf32>
    tpu.vector_store %arg7[%c1_106, %c4_107, %c0_108], %161 {strides = array<i32>} : memref<8x8x64xf32, #tpu.memory_space<vmem>>, vector<1x1x64xf32>,
    %c1_i32_109 = arith.constant 1 : i32
    %162 = arith.addi %1, %c1_i32_109 : i32
    %163 = arith.index_cast %162 : i32 to index
    %c6_110 = arith.constant 6 : index
    %164 = memref.load %arg1[%163, %c6_110] : memref<32x9xi32, #tpu.memory_space<smem>>
    %165 = arith.index_cast %164 : i32 to index
    %c0_111 = arith.constant 0 : index
    %166 = vector.load %arg3[%165, %c0_111] : memref<128x64xf32, #tpu.memory_space<vmem>>, vector<1x64xf32>
    %c1_112 = arith.constant 1 : index
    %c5_113 = arith.constant 5 : index
    %c0_114 = arith.constant 0 : index
    %167 = vector.load %arg7[%c1_112, %c5_113, %c0_114] : memref<8x8x64xf32, #tpu.memory_space<vmem>>, vector<1x1x64xf32>
    %168 = vector.shape_cast %167 : vector<1x1x64xf32> to vector<1x64xf32>
    %169 = vector.shape_cast %166 : vector<1x64xf32> to vector<1x1x64xf32>
    tpu.vector_store %arg7[%c1_112, %c5_113, %c0_114], %169 {strides = array<i32>} : memref<8x8x64xf32, #tpu.memory_space<vmem>>, vector<1x1x64xf32>,
    %c1_i32_115 = arith.constant 1 : i32
    %170 = arith.addi %1, %c1_i32_115 : i32
    %171 = arith.index_cast %170 : i32 to index
    %c7_116 = arith.constant 7 : index
    %172 = memref.load %arg1[%171, %c7_116] : memref<32x9xi32, #tpu.memory_space<smem>>
    %173 = arith.index_cast %172 : i32 to index
    %c0_117 = arith.constant 0 : index
    %174 = vector.load %arg3[%173, %c0_117] : memref<128x64xf32, #tpu.memory_space<vmem>>, vector<1x64xf32>
    %c1_118 = arith.constant 1 : index
    %c6_119 = arith.constant 6 : index
    %c0_120 = arith.constant 0 : index
    %175 = vector.load %arg7[%c1_118, %c6_119, %c0_120] : memref<8x8x64xf32, #tpu.memory_space<vmem>>, vector<1x1x64xf32>
    %176 = vector.shape_cast %175 : vector<1x1x64xf32> to vector<1x64xf32>
    %177 = vector.shape_cast %174 : vector<1x64xf32> to vector<1x1x64xf32>
    tpu.vector_store %arg7[%c1_118, %c6_119, %c0_120], %177 {strides = array<i32>} : memref<8x8x64xf32, #tpu.memory_space<vmem>>, vector<1x1x64xf32>,
    %c1_i32_121 = arith.constant 1 : i32
    %178 = arith.addi %1, %c1_i32_121 : i32
    %179 = arith.index_cast %178 : i32 to index
    %c8_122 = arith.constant 8 : index
    %180 = memref.load %arg1[%179, %c8_122] : memref<32x9xi32, #tpu.memory_space<smem>>
    %181 = arith.index_cast %180 : i32 to index
    %c0_123 = arith.constant 0 : index
    %182 = vector.load %arg3[%181, %c0_123] : memref<128x64xf32, #tpu.memory_space<vmem>>, vector<1x64xf32>
    %c1_124 = arith.constant 1 : index
    %c7_125 = arith.constant 7 : index
    %c0_126 = arith.constant 0 : index
    %183 = vector.load %arg7[%c1_124, %c7_125, %c0_126] : memref<8x8x64xf32, #tpu.memory_space<vmem>>, vector<1x1x64xf32>
    %184 = vector.shape_cast %183 : vector<1x1x64xf32> to vector<1x64xf32>
    %185 = vector.shape_cast %182 : vector<1x64xf32> to vector<1x1x64xf32>
    tpu.vector_store %arg7[%c1_124, %c7_125, %c0_126], %185 {strides = array<i32>} : memref<8x8x64xf32, #tpu.memory_space<vmem>>, vector<1x1x64xf32>,
    %c2_i32_127 = arith.constant 2 : i32
    %186 = arith.addi %1, %c2_i32_127 : i32
    %187 = arith.index_cast %186 : i32 to index
    %c1_128 = arith.constant 1 : index
    %188 = memref.load %arg1[%187, %c1_128] : memref<32x9xi32, #tpu.memory_space<smem>>
    %189 = arith.index_cast %188 : i32 to index
    %c0_129 = arith.constant 0 : index
    %190 = vector.load %arg3[%189, %c0_129] : memref<128x64xf32, #tpu.memory_space<vmem>>, vector<1x64xf32>
    %c2_130 = arith.constant 2 : index
    %c0_131 = arith.constant 0 : index
    %c0_132 = arith.constant 0 : index
    %191 = vector.load %arg7[%c2_130, %c0_131, %c0_132] : memref<8x8x64xf32, #tpu.memory_space<vmem>>, vector<1x1x64xf32>
    %192 = vector.shape_cast %191 : vector<1x1x64xf32> to vector<1x64xf32>
    %193 = vector.shape_cast %190 : vector<1x64xf32> to vector<1x1x64xf32>
    tpu.vector_store %arg7[%c2_130, %c0_131, %c0_132], %193 {strides = array<i32>} : memref<8x8x64xf32, #tpu.memory_space<vmem>>, vector<1x1x64xf32>,
    %c2_i32_133 = arith.constant 2 : i32
    %194 = arith.addi %1, %c2_i32_133 : i32
    %195 = arith.index_cast %194 : i32 to index
    %c2_134 = arith.constant 2 : index
    %196 = memref.load %arg1[%195, %c2_134] : memref<32x9xi32, #tpu.memory_space<smem>>
    %197 = arith.index_cast %196 : i32 to index
    %c0_135 = arith.constant 0 : index
    %198 = vector.load %arg3[%197, %c0_135] : memref<128x64xf32, #tpu.memory_space<vmem>>, vector<1x64xf32>
    %c2_136 = arith.constant 2 : index
    %c1_137 = arith.constant 1 : index
    %c0_138 = arith.constant 0 : index
    %199 = vector.load %arg7[%c2_136, %c1_137, %c0_138] : memref<8x8x64xf32, #tpu.memory_space<vmem>>, vector<1x1x64xf32>
    %200 = vector.shape_cast %199 : vector<1x1x64xf32> to vector<1x64xf32>
    %201 = vector.shape_cast %198 : vector<1x64xf32> to vector<1x1x64xf32>
    tpu.vector_store %arg7[%c2_136, %c1_137, %c0_138], %201 {strides = array<i32>} : memref<8x8x64xf32, #tpu.memory_space<vmem>>, vector<1x1x64xf32>,
    %c2_i32_139 = arith.constant 2 : i32
    %202 = arith.addi %1, %c2_i32_139 : i32
    %203 = arith.index_cast %202 : i32 to index
    %c3_140 = arith.constant 3 : index
    %204 = memref.load %arg1[%203, %c3_140] : memref<32x9xi32, #tpu.memory_space<smem>>
    %205 = arith.index_cast %204 : i32 to index
    %c0_141 = arith.constant 0 : index
    %206 = vector.load %arg3[%205, %c0_141] : memref<128x64xf32, #tpu.memory_space<vmem>>, vector<1x64xf32>
    %c2_142 = arith.constant 2 : index
    %c2_143 = arith.constant 2 : index
    %c0_144 = arith.constant 0 : index
    %207 = vector.load %arg7[%c2_142, %c2_143, %c0_144] : memref<8x8x64xf32, #tpu.memory_space<vmem>>, vector<1x1x64xf32>
    %208 = vector.shape_cast %207 : vector<1x1x64xf32> to vector<1x64xf32>
    %209 = vector.shape_cast %206 : vector<1x64xf32> to vector<1x1x64xf32>
    tpu.vector_store %arg7[%c2_142, %c2_143, %c0_144], %209 {strides = array<i32>} : memref<8x8x64xf32, #tpu.memory_space<vmem>>, vector<1x1x64xf32>,
    %c2_i32_145 = arith.constant 2 : i32
    %210 = arith.addi %1, %c2_i32_145 : i32
    %211 = arith.index_cast %210 : i32 to index
    %c4_146 = arith.constant 4 : index
    %212 = memref.load %arg1[%211, %c4_146] : memref<32x9xi32, #tpu.memory_space<smem>>
    %213 = arith.index_cast %212 : i32 to index
    %c0_147 = arith.constant 0 : index
    %214 = vector.load %arg3[%213, %c0_147] : memref<128x64xf32, #tpu.memory_space<vmem>>, vector<1x64xf32>
    %c2_148 = arith.constant 2 : index
    %c3_149 = arith.constant 3 : index
    %c0_150 = arith.constant 0 : index
    %215 = vector.load %arg7[%c2_148, %c3_149, %c0_150] : memref<8x8x64xf32, #tpu.memory_space<vmem>>, vector<1x1x64xf32>
    %216 = vector.shape_cast %215 : vector<1x1x64xf32> to vector<1x64xf32>
    %217 = vector.shape_cast %214 : vector<1x64xf32> to vector<1x1x64xf32>
    tpu.vector_store %arg7[%c2_148, %c3_149, %c0_150], %217 {strides = array<i32>} : memref<8x8x64xf32, #tpu.memory_space<vmem>>, vector<1x1x64xf32>,
    %c2_i32_151 = arith.constant 2 : i32
    %218 = arith.addi %1, %c2_i32_151 : i32
    %219 = arith.index_cast %218 : i32 to index
    %c5_152 = arith.constant 5 : index
    %220 = memref.load %arg1[%219, %c5_152] : memref<32x9xi32, #tpu.memory_space<smem>>
    %221 = arith.index_cast %220 : i32 to index
    %c0_153 = arith.constant 0 : index
    %222 = vector.load %arg3[%221, %c0_153] : memref<128x64xf32, #tpu.memory_space<vmem>>, vector<1x64xf32>
    %c2_154 = arith.constant 2 : index
    %c4_155 = arith.constant 4 : index
    %c0_156 = arith.constant 0 : index
    %223 = vector.load %arg7[%c2_154, %c4_155, %c0_156] : memref<8x8x64xf32, #tpu.memory_space<vmem>>, vector<1x1x64xf32>
    %224 = vector.shape_cast %223 : vector<1x1x64xf32> to vector<1x64xf32>
    %225 = vector.shape_cast %222 : vector<1x64xf32> to vector<1x1x64xf32>
    tpu.vector_store %arg7[%c2_154, %c4_155, %c0_156], %225 {strides = array<i32>} : memref<8x8x64xf32, #tpu.memory_space<vmem>>, vector<1x1x64xf32>,
    %c2_i32_157 = arith.constant 2 : i32
    %226 = arith.addi %1, %c2_i32_157 : i32
    %227 = arith.index_cast %226 : i32 to index
    %c6_158 = arith.constant 6 : index
    %228 = memref.load %arg1[%227, %c6_158] : memref<32x9xi32, #tpu.memory_space<smem>>
    %229 = arith.index_cast %228 : i32 to index
    %c0_159 = arith.constant 0 : index
    %230 = vector.load %arg3[%229, %c0_159] : memref<128x64xf32, #tpu.memory_space<vmem>>, vector<1x64xf32>
    %c2_160 = arith.constant 2 : index
    %c5_161 = arith.constant 5 : index
    %c0_162 = arith.constant 0 : index
    %231 = vector.load %arg7[%c2_160, %c5_161, %c0_162] : memref<8x8x64xf32, #tpu.memory_space<vmem>>, vector<1x1x64xf32>
    %232 = vector.shape_cast %231 : vector<1x1x64xf32> to vector<1x64xf32>
    %233 = vector.shape_cast %230 : vector<1x64xf32> to vector<1x1x64xf32>
    tpu.vector_store %arg7[%c2_160, %c5_161, %c0_162], %233 {strides = array<i32>} : memref<8x8x64xf32, #tpu.memory_space<vmem>>, vector<1x1x64xf32>,
    %c2_i32_163 = arith.constant 2 : i32
    %234 = arith.addi %1, %c2_i32_163 : i32
    %235 = arith.index_cast %234 : i32 to index
    %c7_164 = arith.constant 7 : index
    %236 = memref.load %arg1[%235, %c7_164] : memref<32x9xi32, #tpu.memory_space<smem>>
    %237 = arith.index_cast %236 : i32 to index
    %c0_165 = arith.constant 0 : index
    %238 = vector.load %arg3[%237, %c0_165] : memref<128x64xf32, #tpu.memory_space<vmem>>, vector<1x64xf32>
    %c2_166 = arith.constant 2 : index
    %c6_167 = arith.constant 6 : index
    %c0_168 = arith.constant 0 : index
    %239 = vector.load %arg7[%c2_166, %c6_167, %c0_168] : memref<8x8x64xf32, #tpu.memory_space<vmem>>, vector<1x1x64xf32>
    %240 = vector.shape_cast %239 : vector<1x1x64xf32> to vector<1x64xf32>
    %241 = vector.shape_cast %238 : vector<1x64xf32> to vector<1x1x64xf32>
    tpu.vector_store %arg7[%c2_166, %c6_167, %c0_168], %241 {strides = array<i32>} : memref<8x8x64xf32, #tpu.memory_space<vmem>>, vector<1x1x64xf32>,
    %c2_i32_169 = arith.constant 2 : i32
    %242 = arith.addi %1, %c2_i32_169 : i32
    %243 = arith.index_cast %242 : i32 to index
    %c8_170 = arith.constant 8 : index
    %244 = memref.load %arg1[%243, %c8_170] : memref<32x9xi32, #tpu.memory_space<smem>>
    %245 = arith.index_cast %244 : i32 to index
    %c0_171 = arith.constant 0 : index
    %246 = vector.load %arg3[%245, %c0_171] : memref<128x64xf32, #tpu.memory_space<vmem>>, vector<1x64xf32>
    %c2_172 = arith.constant 2 : index
    %c7_173 = arith.constant 7 : index
    %c0_174 = arith.constant 0 : index
    %247 = vector.load %arg7[%c2_172, %c7_173, %c0_174] : memref<8x8x64xf32, #tpu.memory_space<vmem>>, vector<1x1x64xf32>
    %248 = vector.shape_cast %247 : vector<1x1x64xf32> to vector<1x64xf32>
    %249 = vector.shape_cast %246 : vector<1x64xf32> to vector<1x1x64xf32>
    tpu.vector_store %arg7[%c2_172, %c7_173, %c0_174], %249 {strides = array<i32>} : memref<8x8x64xf32, #tpu.memory_space<vmem>>, vector<1x1x64xf32>,
    %c3_i32_175 = arith.constant 3 : i32
    %250 = arith.addi %1, %c3_i32_175 : i32
    %251 = arith.index_cast %250 : i32 to index
    %c1_176 = arith.constant 1 : index
    %252 = memref.load %arg1[%251, %c1_176] : memref<32x9xi32, #tpu.memory_space<smem>>
    %253 = arith.index_cast %252 : i32 to index
    %c0_177 = arith.constant 0 : index
    %254 = vector.load %arg3[%253, %c0_177] : memref<128x64xf32, #tpu.memory_space<vmem>>, vector<1x64xf32>
    %c3_178 = arith.constant 3 : index
    %c0_179 = arith.constant 0 : index
    %c0_180 = arith.constant 0 : index
    %255 = vector.load %arg7[%c3_178, %c0_179, %c0_180] : memref<8x8x64xf32, #tpu.memory_space<vmem>>, vector<1x1x64xf32>
    %256 = vector.shape_cast %255 : vector<1x1x64xf32> to vector<1x64xf32>
    %257 = vector.shape_cast %254 : vector<1x64xf32> to vector<1x1x64xf32>
    tpu.vector_store %arg7[%c3_178, %c0_179, %c0_180], %257 {strides = array<i32>} : memref<8x8x64xf32, #tpu.memory_space<vmem>>, vector<1x1x64xf32>,
    %c3_i32_181 = arith.constant 3 : i32
    %258 = arith.addi %1, %c3_i32_181 : i32
    %259 = arith.index_cast %258 : i32 to index
    %c2_182 = arith.constant 2 : index
    %260 = memref.load %arg1[%259, %c2_182] : memref<32x9xi32, #tpu.memory_space<smem>>
    %261 = arith.index_cast %260 : i32 to index
    %c0_183 = arith.constant 0 : index
    %262 = vector.load %arg3[%261, %c0_183] : memref<128x64xf32, #tpu.memory_space<vmem>>, vector<1x64xf32>
    %c3_184 = arith.constant 3 : index
    %c1_185 = arith.constant 1 : index
    %c0_186 = arith.constant 0 : index
    %263 = vector.load %arg7[%c3_184, %c1_185, %c0_186] : memref<8x8x64xf32, #tpu.memory_space<vmem>>, vector<1x1x64xf32>
    %264 = vector.shape_cast %263 : vector<1x1x64xf32> to vector<1x64xf32>
    %265 = vector.shape_cast %262 : vector<1x64xf32> to vector<1x1x64xf32>
    tpu.vector_store %arg7[%c3_184, %c1_185, %c0_186], %265 {strides = array<i32>} : memref<8x8x64xf32, #tpu.memory_space<vmem>>, vector<1x1x64xf32>,
    %c3_i32_187 = arith.constant 3 : i32
    %266 = arith.addi %1, %c3_i32_187 : i32
    %267 = arith.index_cast %266 : i32 to index
    %c3_188 = arith.constant 3 : index
    %268 = memref.load %arg1[%267, %c3_188] : memref<32x9xi32, #tpu.memory_space<smem>>
    %269 = arith.index_cast %268 : i32 to index
    %c0_189 = arith.constant 0 : index
    %270 = vector.load %arg3[%269, %c0_189] : memref<128x64xf32, #tpu.memory_space<vmem>>, vector<1x64xf32>
    %c3_190 = arith.constant 3 : index
    %c2_191 = arith.constant 2 : index
    %c0_192 = arith.constant 0 : index
    %271 = vector.load %arg7[%c3_190, %c2_191, %c0_192] : memref<8x8x64xf32, #tpu.memory_space<vmem>>, vector<1x1x64xf32>
    %272 = vector.shape_cast %271 : vector<1x1x64xf32> to vector<1x64xf32>
    %273 = vector.shape_cast %270 : vector<1x64xf32> to vector<1x1x64xf32>
    tpu.vector_store %arg7[%c3_190, %c2_191, %c0_192], %273 {strides = array<i32>} : memref<8x8x64xf32, #tpu.memory_space<vmem>>, vector<1x1x64xf32>,
    %c3_i32_193 = arith.constant 3 : i32
    %274 = arith.addi %1, %c3_i32_193 : i32
    %275 = arith.index_cast %274 : i32 to index
    %c4_194 = arith.constant 4 : index
    %276 = memref.load %arg1[%275, %c4_194] : memref<32x9xi32, #tpu.memory_space<smem>>
    %277 = arith.index_cast %276 : i32 to index
    %c0_195 = arith.constant 0 : index
    %278 = vector.load %arg3[%277, %c0_195] : memref<128x64xf32, #tpu.memory_space<vmem>>, vector<1x64xf32>
    %c3_196 = arith.constant 3 : index
    %c3_197 = arith.constant 3 : index
    %c0_198 = arith.constant 0 : index
    %279 = vector.load %arg7[%c3_196, %c3_197, %c0_198] : memref<8x8x64xf32, #tpu.memory_space<vmem>>, vector<1x1x64xf32>
    %280 = vector.shape_cast %279 : vector<1x1x64xf32> to vector<1x64xf32>
    %281 = vector.shape_cast %278 : vector<1x64xf32> to vector<1x1x64xf32>
    tpu.vector_store %arg7[%c3_196, %c3_197, %c0_198], %281 {strides = array<i32>} : memref<8x8x64xf32, #tpu.memory_space<vmem>>, vector<1x1x64xf32>,
    %c3_i32_199 = arith.constant 3 : i32
    %282 = arith.addi %1, %c3_i32_199 : i32
    %283 = arith.index_cast %282 : i32 to index
    %c5_200 = arith.constant 5 : index
    %284 = memref.load %arg1[%283, %c5_200] : memref<32x9xi32, #tpu.memory_space<smem>>
    %285 = arith.index_cast %284 : i32 to index
    %c0_201 = arith.constant 0 : index
    %286 = vector.load %arg3[%285, %c0_201] : memref<128x64xf32, #tpu.memory_space<vmem>>, vector<1x64xf32>
    %c3_202 = arith.constant 3 : index
    %c4_203 = arith.constant 4 : index
    %c0_204 = arith.constant 0 : index
    %287 = vector.load %arg7[%c3_202, %c4_203, %c0_204] : memref<8x8x64xf32, #tpu.memory_space<vmem>>, vector<1x1x64xf32>
    %288 = vector.shape_cast %287 : vector<1x1x64xf32> to vector<1x64xf32>
    %289 = vector.shape_cast %286 : vector<1x64xf32> to vector<1x1x64xf32>
    tpu.vector_store %arg7[%c3_202, %c4_203, %c0_204], %289 {strides = array<i32>} : memref<8x8x64xf32, #tpu.memory_space<vmem>>, vector<1x1x64xf32>,
    %c3_i32_205 = arith.constant 3 : i32
    %290 = arith.addi %1, %c3_i32_205 : i32
    %291 = arith.index_cast %290 : i32 to index
    %c6_206 = arith.constant 6 : index
    %292 = memref.load %arg1[%291, %c6_206] : memref<32x9xi32, #tpu.memory_space<smem>>
    %293 = arith.index_cast %292 : i32 to index
    %c0_207 = arith.constant 0 : index
    %294 = vector.load %arg3[%293, %c0_207] : memref<128x64xf32, #tpu.memory_space<vmem>>, vector<1x64xf32>
    %c3_208 = arith.constant 3 : index
    %c5_209 = arith.constant 5 : index
    %c0_210 = arith.constant 0 : index
    %295 = vector.load %arg7[%c3_208, %c5_209, %c0_210] : memref<8x8x64xf32, #tpu.memory_space<vmem>>, vector<1x1x64xf32>
    %296 = vector.shape_cast %295 : vector<1x1x64xf32> to vector<1x64xf32>
    %297 = vector.shape_cast %294 : vector<1x64xf32> to vector<1x1x64xf32>
    tpu.vector_store %arg7[%c3_208, %c5_209, %c0_210], %297 {strides = array<i32>} : memref<8x8x64xf32, #tpu.memory_space<vmem>>, vector<1x1x64xf32>,
    %c3_i32_211 = arith.constant 3 : i32
    %298 = arith.addi %1, %c3_i32_211 : i32
    %299 = arith.index_cast %298 : i32 to index
    %c7_212 = arith.constant 7 : index
    %300 = memref.load %arg1[%299, %c7_212] : memref<32x9xi32, #tpu.memory_space<smem>>
    %301 = arith.index_cast %300 : i32 to index
    %c0_213 = arith.constant 0 : index
    %302 = vector.load %arg3[%301, %c0_213] : memref<128x64xf32, #tpu.memory_space<vmem>>, vector<1x64xf32>
    %c3_214 = arith.constant 3 : index
    %c6_215 = arith.constant 6 : index
    %c0_216 = arith.constant 0 : index
    %303 = vector.load %arg7[%c3_214, %c6_215, %c0_216] : memref<8x8x64xf32, #tpu.memory_space<vmem>>, vector<1x1x64xf32>
    %304 = vector.shape_cast %303 : vector<1x1x64xf32> to vector<1x64xf32>
    %305 = vector.shape_cast %302 : vector<1x64xf32> to vector<1x1x64xf32>
    tpu.vector_store %arg7[%c3_214, %c6_215, %c0_216], %305 {strides = array<i32>} : memref<8x8x64xf32, #tpu.memory_space<vmem>>, vector<1x1x64xf32>,
    %c3_i32_217 = arith.constant 3 : i32
    %306 = arith.addi %1, %c3_i32_217 : i32
    %307 = arith.index_cast %306 : i32 to index
    %c8_218 = arith.constant 8 : index
    %308 = memref.load %arg1[%307, %c8_218] : memref<32x9xi32, #tpu.memory_space<smem>>
    %309 = arith.index_cast %308 : i32 to index
    %c0_219 = arith.constant 0 : index
    %310 = vector.load %arg3[%309, %c0_219] : memref<128x64xf32, #tpu.memory_space<vmem>>, vector<1x64xf32>
    %c3_220 = arith.constant 3 : index
    %c7_221 = arith.constant 7 : index
    %c0_222 = arith.constant 0 : index
    %311 = vector.load %arg7[%c3_220, %c7_221, %c0_222] : memref<8x8x64xf32, #tpu.memory_space<vmem>>, vector<1x1x64xf32>
    %312 = vector.shape_cast %311 : vector<1x1x64xf32> to vector<1x64xf32>
    %313 = vector.shape_cast %310 : vector<1x64xf32> to vector<1x1x64xf32>
    tpu.vector_store %arg7[%c3_220, %c7_221, %c0_222], %313 {strides = array<i32>} : memref<8x8x64xf32, #tpu.memory_space<vmem>>, vector<1x1x64xf32>,
    %c4_i32_223 = arith.constant 4 : i32
    %314 = arith.addi %1, %c4_i32_223 : i32
    %315 = arith.index_cast %314 : i32 to index
    %c1_224 = arith.constant 1 : index
    %316 = memref.load %arg1[%315, %c1_224] : memref<32x9xi32, #tpu.memory_space<smem>>
    %317 = arith.index_cast %316 : i32 to index
    %c0_225 = arith.constant 0 : index
    %318 = vector.load %arg3[%317, %c0_225] : memref<128x64xf32, #tpu.memory_space<vmem>>, vector<1x64xf32>
    %c4_226 = arith.constant 4 : index
    %c0_227 = arith.constant 0 : index
    %c0_228 = arith.constant 0 : index
    %319 = vector.load %arg7[%c4_226, %c0_227, %c0_228] : memref<8x8x64xf32, #tpu.memory_space<vmem>>, vector<1x1x64xf32>
    %320 = vector.shape_cast %319 : vector<1x1x64xf32> to vector<1x64xf32>
    %321 = vector.shape_cast %318 : vector<1x64xf32> to vector<1x1x64xf32>
    tpu.vector_store %arg7[%c4_226, %c0_227, %c0_228], %321 {strides = array<i32>} : memref<8x8x64xf32, #tpu.memory_space<vmem>>, vector<1x1x64xf32>,
    %c4_i32_229 = arith.constant 4 : i32
    %322 = arith.addi %1, %c4_i32_229 : i32
    %323 = arith.index_cast %322 : i32 to index
    %c2_230 = arith.constant 2 : index
    %324 = memref.load %arg1[%323, %c2_230] : memref<32x9xi32, #tpu.memory_space<smem>>
    %325 = arith.index_cast %324 : i32 to index
    %c0_231 = arith.constant 0 : index
    %326 = vector.load %arg3[%325, %c0_231] : memref<128x64xf32, #tpu.memory_space<vmem>>, vector<1x64xf32>
    %c4_232 = arith.constant 4 : index
    %c1_233 = arith.constant 1 : index
    %c0_234 = arith.constant 0 : index
    %327 = vector.load %arg7[%c4_232, %c1_233, %c0_234] : memref<8x8x64xf32, #tpu.memory_space<vmem>>, vector<1x1x64xf32>
    %328 = vector.shape_cast %327 : vector<1x1x64xf32> to vector<1x64xf32>
    %329 = vector.shape_cast %326 : vector<1x64xf32> to vector<1x1x64xf32>
    tpu.vector_store %arg7[%c4_232, %c1_233, %c0_234], %329 {strides = array<i32>} : memref<8x8x64xf32, #tpu.memory_space<vmem>>, vector<1x1x64xf32>,
    %c4_i32_235 = arith.constant 4 : i32
    %330 = arith.addi %1, %c4_i32_235 : i32
    %331 = arith.index_cast %330 : i32 to index
    %c3_236 = arith.constant 3 : index
    %332 = memref.load %arg1[%331, %c3_236] : memref<32x9xi32, #tpu.memory_space<smem>>
    %333 = arith.index_cast %332 : i32 to index
    %c0_237 = arith.constant 0 : index
    %334 = vector.load %arg3[%333, %c0_237] : memref<128x64xf32, #tpu.memory_space<vmem>>, vector<1x64xf32>
    %c4_238 = arith.constant 4 : index
    %c2_239 = arith.constant 2 : index
    %c0_240 = arith.constant 0 : index
    %335 = vector.load %arg7[%c4_238, %c2_239, %c0_240] : memref<8x8x64xf32, #tpu.memory_space<vmem>>, vector<1x1x64xf32>
    %336 = vector.shape_cast %335 : vector<1x1x64xf32> to vector<1x64xf32>
    %337 = vector.shape_cast %334 : vector<1x64xf32> to vector<1x1x64xf32>
    tpu.vector_store %arg7[%c4_238, %c2_239, %c0_240], %337 {strides = array<i32>} : memref<8x8x64xf32, #tpu.memory_space<vmem>>, vector<1x1x64xf32>,
    %c4_i32_241 = arith.constant 4 : i32
    %338 = arith.addi %1, %c4_i32_241 : i32
    %339 = arith.index_cast %338 : i32 to index
    %c4_242 = arith.constant 4 : index
    %340 = memref.load %arg1[%339, %c4_242] : memref<32x9xi32, #tpu.memory_space<smem>>
    %341 = arith.index_cast %340 : i32 to index
    %c0_243 = arith.constant 0 : index
    %342 = vector.load %arg3[%341, %c0_243] : memref<128x64xf32, #tpu.memory_space<vmem>>, vector<1x64xf32>
    %c4_244 = arith.constant 4 : index
    %c3_245 = arith.constant 3 : index
    %c0_246 = arith.constant 0 : index
    %343 = vector.load %arg7[%c4_244, %c3_245, %c0_246] : memref<8x8x64xf32, #tpu.memory_space<vmem>>, vector<1x1x64xf32>
    %344 = vector.shape_cast %343 : vector<1x1x64xf32> to vector<1x64xf32>
    %345 = vector.shape_cast %342 : vector<1x64xf32> to vector<1x1x64xf32>
    tpu.vector_store %arg7[%c4_244, %c3_245, %c0_246], %345 {strides = array<i32>} : memref<8x8x64xf32, #tpu.memory_space<vmem>>, vector<1x1x64xf32>,
    %c4_i32_247 = arith.constant 4 : i32
    %346 = arith.addi %1, %c4_i32_247 : i32
    %347 = arith.index_cast %346 : i32 to index
    %c5_248 = arith.constant 5 : index
    %348 = memref.load %arg1[%347, %c5_248] : memref<32x9xi32, #tpu.memory_space<smem>>
    %349 = arith.index_cast %348 : i32 to index
    %c0_249 = arith.constant 0 : index
    %350 = vector.load %arg3[%349, %c0_249] : memref<128x64xf32, #tpu.memory_space<vmem>>, vector<1x64xf32>
    %c4_250 = arith.constant 4 : index
    %c4_251 = arith.constant 4 : index
    %c0_252 = arith.constant 0 : index
    %351 = vector.load %arg7[%c4_250, %c4_251, %c0_252] : memref<8x8x64xf32, #tpu.memory_space<vmem>>, vector<1x1x64xf32>
    %352 = vector.shape_cast %351 : vector<1x1x64xf32> to vector<1x64xf32>
    %353 = vector.shape_cast %350 : vector<1x64xf32> to vector<1x1x64xf32>
    tpu.vector_store %arg7[%c4_250, %c4_251, %c0_252], %353 {strides = array<i32>} : memref<8x8x64xf32, #tpu.memory_space<vmem>>, vector<1x1x64xf32>,
    %c4_i32_253 = arith.constant 4 : i32
    %354 = arith.addi %1, %c4_i32_253 : i32
    %355 = arith.index_cast %354 : i32 to index
    %c6_254 = arith.constant 6 : index
    %356 = memref.load %arg1[%355, %c6_254] : memref<32x9xi32, #tpu.memory_space<smem>>
    %357 = arith.index_cast %356 : i32 to index
    %c0_255 = arith.constant 0 : index
    %358 = vector.load %arg3[%357, %c0_255] : memref<128x64xf32, #tpu.memory_space<vmem>>, vector<1x64xf32>
    %c4_256 = arith.constant 4 : index
    %c5_257 = arith.constant 5 : index
    %c0_258 = arith.constant 0 : index
    %359 = vector.load %arg7[%c4_256, %c5_257, %c0_258] : memref<8x8x64xf32, #tpu.memory_space<vmem>>, vector<1x1x64xf32>
    %360 = vector.shape_cast %359 : vector<1x1x64xf32> to vector<1x64xf32>
    %361 = vector.shape_cast %358 : vector<1x64xf32> to vector<1x1x64xf32>
    tpu.vector_store %arg7[%c4_256, %c5_257, %c0_258], %361 {strides = array<i32>} : memref<8x8x64xf32, #tpu.memory_space<vmem>>, vector<1x1x64xf32>,
    %c4_i32_259 = arith.constant 4 : i32
    %362 = arith.addi %1, %c4_i32_259 : i32
    %363 = arith.index_cast %362 : i32 to index
    %c7_260 = arith.constant 7 : index
    %364 = memref.load %arg1[%363, %c7_260] : memref<32x9xi32, #tpu.memory_space<smem>>
    %365 = arith.index_cast %364 : i32 to index
    %c0_261 = arith.constant 0 : index
    %366 = vector.load %arg3[%365, %c0_261] : memref<128x64xf32, #tpu.memory_space<vmem>>, vector<1x64xf32>
    %c4_262 = arith.constant 4 : index
    %c6_263 = arith.constant 6 : index
    %c0_264 = arith.constant 0 : index
    %367 = vector.load %arg7[%c4_262, %c6_263, %c0_264] : memref<8x8x64xf32, #tpu.memory_space<vmem>>, vector<1x1x64xf32>
    %368 = vector.shape_cast %367 : vector<1x1x64xf32> to vector<1x64xf32>
    %369 = vector.shape_cast %366 : vector<1x64xf32> to vector<1x1x64xf32>
    tpu.vector_store %arg7[%c4_262, %c6_263, %c0_264], %369 {strides = array<i32>} : memref<8x8x64xf32, #tpu.memory_space<vmem>>, vector<1x1x64xf32>,
    %c4_i32_265 = arith.constant 4 : i32
    %370 = arith.addi %1, %c4_i32_265 : i32
    %371 = arith.index_cast %370 : i32 to index
    %c8_266 = arith.constant 8 : index
    %372 = memref.load %arg1[%371, %c8_266] : memref<32x9xi32, #tpu.memory_space<smem>>
    %373 = arith.index_cast %372 : i32 to index
    %c0_267 = arith.constant 0 : index
    %374 = vector.load %arg3[%373, %c0_267] : memref<128x64xf32, #tpu.memory_space<vmem>>, vector<1x64xf32>
    %c4_268 = arith.constant 4 : index
    %c7_269 = arith.constant 7 : index
    %c0_270 = arith.constant 0 : index
    %375 = vector.load %arg7[%c4_268, %c7_269, %c0_270] : memref<8x8x64xf32, #tpu.memory_space<vmem>>, vector<1x1x64xf32>
    %376 = vector.shape_cast %375 : vector<1x1x64xf32> to vector<1x64xf32>
    %377 = vector.shape_cast %374 : vector<1x64xf32> to vector<1x1x64xf32>
    tpu.vector_store %arg7[%c4_268, %c7_269, %c0_270], %377 {strides = array<i32>} : memref<8x8x64xf32, #tpu.memory_space<vmem>>, vector<1x1x64xf32>,
    %c5_i32_271 = arith.constant 5 : i32
    %378 = arith.addi %1, %c5_i32_271 : i32
    %379 = arith.index_cast %378 : i32 to index
    %c1_272 = arith.constant 1 : index
    %380 = memref.load %arg1[%379, %c1_272] : memref<32x9xi32, #tpu.memory_space<smem>>
    %381 = arith.index_cast %380 : i32 to index
    %c0_273 = arith.constant 0 : index
    %382 = vector.load %arg3[%381, %c0_273] : memref<128x64xf32, #tpu.memory_space<vmem>>, vector<1x64xf32>
    %c5_274 = arith.constant 5 : index
    %c0_275 = arith.constant 0 : index
    %c0_276 = arith.constant 0 : index
    %383 = vector.load %arg7[%c5_274, %c0_275, %c0_276] : memref<8x8x64xf32, #tpu.memory_space<vmem>>, vector<1x1x64xf32>
    %384 = vector.shape_cast %383 : vector<1x1x64xf32> to vector<1x64xf32>
    %385 = vector.shape_cast %382 : vector<1x64xf32> to vector<1x1x64xf32>
    tpu.vector_store %arg7[%c5_274, %c0_275, %c0_276], %385 {strides = array<i32>} : memref<8x8x64xf32, #tpu.memory_space<vmem>>, vector<1x1x64xf32>,
    %c5_i32_277 = arith.constant 5 : i32
    %386 = arith.addi %1, %c5_i32_277 : i32
    %387 = arith.index_cast %386 : i32 to index
    %c2_278 = arith.constant 2 : index
    %388 = memref.load %arg1[%387, %c2_278] : memref<32x9xi32, #tpu.memory_space<smem>>
    %389 = arith.index_cast %388 : i32 to index
    %c0_279 = arith.constant 0 : index
    %390 = vector.load %arg3[%389, %c0_279] : memref<128x64xf32, #tpu.memory_space<vmem>>, vector<1x64xf32>
    %c5_280 = arith.constant 5 : index
    %c1_281 = arith.constant 1 : index
    %c0_282 = arith.constant 0 : index
    %391 = vector.load %arg7[%c5_280, %c1_281, %c0_282] : memref<8x8x64xf32, #tpu.memory_space<vmem>>, vector<1x1x64xf32>
    %392 = vector.shape_cast %391 : vector<1x1x64xf32> to vector<1x64xf32>
    %393 = vector.shape_cast %390 : vector<1x64xf32> to vector<1x1x64xf32>
    tpu.vector_store %arg7[%c5_280, %c1_281, %c0_282], %393 {strides = array<i32>} : memref<8x8x64xf32, #tpu.memory_space<vmem>>, vector<1x1x64xf32>,
    %c5_i32_283 = arith.constant 5 : i32
    %394 = arith.addi %1, %c5_i32_283 : i32
    %395 = arith.index_cast %394 : i32 to index
    %c3_284 = arith.constant 3 : index
    %396 = memref.load %arg1[%395, %c3_284] : memref<32x9xi32, #tpu.memory_space<smem>>
    %397 = arith.index_cast %396 : i32 to index
    %c0_285 = arith.constant 0 : index
    %398 = vector.load %arg3[%397, %c0_285] : memref<128x64xf32, #tpu.memory_space<vmem>>, vector<1x64xf32>
    %c5_286 = arith.constant 5 : index
    %c2_287 = arith.constant 2 : index
    %c0_288 = arith.constant 0 : index
    %399 = vector.load %arg7[%c5_286, %c2_287, %c0_288] : memref<8x8x64xf32, #tpu.memory_space<vmem>>, vector<1x1x64xf32>
    %400 = vector.shape_cast %399 : vector<1x1x64xf32> to vector<1x64xf32>
    %401 = vector.shape_cast %398 : vector<1x64xf32> to vector<1x1x64xf32>
    tpu.vector_store %arg7[%c5_286, %c2_287, %c0_288], %401 {strides = array<i32>} : memref<8x8x64xf32, #tpu.memory_space<vmem>>, vector<1x1x64xf32>,
    %c5_i32_289 = arith.constant 5 : i32
    %402 = arith.addi %1, %c5_i32_289 : i32
    %403 = arith.index_cast %402 : i32 to index
    %c4_290 = arith.constant 4 : index
    %404 = memref.load %arg1[%403, %c4_290] : memref<32x9xi32, #tpu.memory_space<smem>>
    %405 = arith.index_cast %404 : i32 to index
    %c0_291 = arith.constant 0 : index
    %406 = vector.load %arg3[%405, %c0_291] : memref<128x64xf32, #tpu.memory_space<vmem>>, vector<1x64xf32>
    %c5_292 = arith.constant 5 : index
    %c3_293 = arith.constant 3 : index
    %c0_294 = arith.constant 0 : index
    %407 = vector.load %arg7[%c5_292, %c3_293, %c0_294] : memref<8x8x64xf32, #tpu.memory_space<vmem>>, vector<1x1x64xf32>
    %408 = vector.shape_cast %407 : vector<1x1x64xf32> to vector<1x64xf32>
    %409 = vector.shape_cast %406 : vector<1x64xf32> to vector<1x1x64xf32>
    tpu.vector_store %arg7[%c5_292, %c3_293, %c0_294], %409 {strides = array<i32>} : memref<8x8x64xf32, #tpu.memory_space<vmem>>, vector<1x1x64xf32>,
    %c5_i32_295 = arith.constant 5 : i32
    %410 = arith.addi %1, %c5_i32_295 : i32
    %411 = arith.index_cast %410 : i32 to index
    %c5_296 = arith.constant 5 : index
    %412 = memref.load %arg1[%411, %c5_296] : memref<32x9xi32, #tpu.memory_space<smem>>
    %413 = arith.index_cast %412 : i32 to index
    %c0_297 = arith.constant 0 : index
    %414 = vector.load %arg3[%413, %c0_297] : memref<128x64xf32, #tpu.memory_space<vmem>>, vector<1x64xf32>
    %c5_298 = arith.constant 5 : index
    %c4_299 = arith.constant 4 : index
    %c0_300 = arith.constant 0 : index
    %415 = vector.load %arg7[%c5_298, %c4_299, %c0_300] : memref<8x8x64xf32, #tpu.memory_space<vmem>>, vector<1x1x64xf32>
    %416 = vector.shape_cast %415 : vector<1x1x64xf32> to vector<1x64xf32>
    %417 = vector.shape_cast %414 : vector<1x64xf32> to vector<1x1x64xf32>
    tpu.vector_store %arg7[%c5_298, %c4_299, %c0_300], %417 {strides = array<i32>} : memref<8x8x64xf32, #tpu.memory_space<vmem>>, vector<1x1x64xf32>,
    %c5_i32_301 = arith.constant 5 : i32
    %418 = arith.addi %1, %c5_i32_301 : i32
    %419 = arith.index_cast %418 : i32 to index
    %c6_302 = arith.constant 6 : index
    %420 = memref.load %arg1[%419, %c6_302] : memref<32x9xi32, #tpu.memory_space<smem>>
    %421 = arith.index_cast %420 : i32 to index
    %c0_303 = arith.constant 0 : index
    %422 = vector.load %arg3[%421, %c0_303] : memref<128x64xf32, #tpu.memory_space<vmem>>, vector<1x64xf32>
    %c5_304 = arith.constant 5 : index
    %c5_305 = arith.constant 5 : index
    %c0_306 = arith.constant 0 : index
    %423 = vector.load %arg7[%c5_304, %c5_305, %c0_306] : memref<8x8x64xf32, #tpu.memory_space<vmem>>, vector<1x1x64xf32>
    %424 = vector.shape_cast %423 : vector<1x1x64xf32> to vector<1x64xf32>
    %425 = vector.shape_cast %422 : vector<1x64xf32> to vector<1x1x64xf32>
    tpu.vector_store %arg7[%c5_304, %c5_305, %c0_306], %425 {strides = array<i32>} : memref<8x8x64xf32, #tpu.memory_space<vmem>>, vector<1x1x64xf32>,
    %c5_i32_307 = arith.constant 5 : i32
    %426 = arith.addi %1, %c5_i32_307 : i32
    %427 = arith.index_cast %426 : i32 to index
    %c7_308 = arith.constant 7 : index
    %428 = memref.load %arg1[%427, %c7_308] : memref<32x9xi32, #tpu.memory_space<smem>>
    %429 = arith.index_cast %428 : i32 to index
    %c0_309 = arith.constant 0 : index
    %430 = vector.load %arg3[%429, %c0_309] : memref<128x64xf32, #tpu.memory_space<vmem>>, vector<1x64xf32>
    %c5_310 = arith.constant 5 : index
    %c6_311 = arith.constant 6 : index
    %c0_312 = arith.constant 0 : index
    %431 = vector.load %arg7[%c5_310, %c6_311, %c0_312] : memref<8x8x64xf32, #tpu.memory_space<vmem>>, vector<1x1x64xf32>
    %432 = vector.shape_cast %431 : vector<1x1x64xf32> to vector<1x64xf32>
    %433 = vector.shape_cast %430 : vector<1x64xf32> to vector<1x1x64xf32>
    tpu.vector_store %arg7[%c5_310, %c6_311, %c0_312], %433 {strides = array<i32>} : memref<8x8x64xf32, #tpu.memory_space<vmem>>, vector<1x1x64xf32>,
    %c5_i32_313 = arith.constant 5 : i32
    %434 = arith.addi %1, %c5_i32_313 : i32
    %435 = arith.index_cast %434 : i32 to index
    %c8_314 = arith.constant 8 : index
    %436 = memref.load %arg1[%435, %c8_314] : memref<32x9xi32, #tpu.memory_space<smem>>
    %437 = arith.index_cast %436 : i32 to index
    %c0_315 = arith.constant 0 : index
    %438 = vector.load %arg3[%437, %c0_315] : memref<128x64xf32, #tpu.memory_space<vmem>>, vector<1x64xf32>
    %c5_316 = arith.constant 5 : index
    %c7_317 = arith.constant 7 : index
    %c0_318 = arith.constant 0 : index
    %439 = vector.load %arg7[%c5_316, %c7_317, %c0_318] : memref<8x8x64xf32, #tpu.memory_space<vmem>>, vector<1x1x64xf32>
    %440 = vector.shape_cast %439 : vector<1x1x64xf32> to vector<1x64xf32>
    %441 = vector.shape_cast %438 : vector<1x64xf32> to vector<1x1x64xf32>
    tpu.vector_store %arg7[%c5_316, %c7_317, %c0_318], %441 {strides = array<i32>} : memref<8x8x64xf32, #tpu.memory_space<vmem>>, vector<1x1x64xf32>,
    %c6_i32_319 = arith.constant 6 : i32
    %442 = arith.addi %1, %c6_i32_319 : i32
    %443 = arith.index_cast %442 : i32 to index
    %c1_320 = arith.constant 1 : index
    %444 = memref.load %arg1[%443, %c1_320] : memref<32x9xi32, #tpu.memory_space<smem>>
    %445 = arith.index_cast %444 : i32 to index
    %c0_321 = arith.constant 0 : index
    %446 = vector.load %arg3[%445, %c0_321] : memref<128x64xf32, #tpu.memory_space<vmem>>, vector<1x64xf32>
    %c6_322 = arith.constant 6 : index
    %c0_323 = arith.constant 0 : index
    %c0_324 = arith.constant 0 : index
    %447 = vector.load %arg7[%c6_322, %c0_323, %c0_324] : memref<8x8x64xf32, #tpu.memory_space<vmem>>, vector<1x1x64xf32>
    %448 = vector.shape_cast %447 : vector<1x1x64xf32> to vector<1x64xf32>
    %449 = vector.shape_cast %446 : vector<1x64xf32> to vector<1x1x64xf32>
    tpu.vector_store %arg7[%c6_322, %c0_323, %c0_324], %449 {strides = array<i32>} : memref<8x8x64xf32, #tpu.memory_space<vmem>>, vector<1x1x64xf32>,
    %c6_i32_325 = arith.constant 6 : i32
    %450 = arith.addi %1, %c6_i32_325 : i32
    %451 = arith.index_cast %450 : i32 to index
    %c2_326 = arith.constant 2 : index
    %452 = memref.load %arg1[%451, %c2_326] : memref<32x9xi32, #tpu.memory_space<smem>>
    %453 = arith.index_cast %452 : i32 to index
    %c0_327 = arith.constant 0 : index
    %454 = vector.load %arg3[%453, %c0_327] : memref<128x64xf32, #tpu.memory_space<vmem>>, vector<1x64xf32>
    %c6_328 = arith.constant 6 : index
    %c1_329 = arith.constant 1 : index
    %c0_330 = arith.constant 0 : index
    %455 = vector.load %arg7[%c6_328, %c1_329, %c0_330] : memref<8x8x64xf32, #tpu.memory_space<vmem>>, vector<1x1x64xf32>
    %456 = vector.shape_cast %455 : vector<1x1x64xf32> to vector<1x64xf32>
    %457 = vector.shape_cast %454 : vector<1x64xf32> to vector<1x1x64xf32>
    tpu.vector_store %arg7[%c6_328, %c1_329, %c0_330], %457 {strides = array<i32>} : memref<8x8x64xf32, #tpu.memory_space<vmem>>, vector<1x1x64xf32>,
    %c6_i32_331 = arith.constant 6 : i32
    %458 = arith.addi %1, %c6_i32_331 : i32
    %459 = arith.index_cast %458 : i32 to index
    %c3_332 = arith.constant 3 : index
    %460 = memref.load %arg1[%459, %c3_332] : memref<32x9xi32, #tpu.memory_space<smem>>
    %461 = arith.index_cast %460 : i32 to index
    %c0_333 = arith.constant 0 : index
    %462 = vector.load %arg3[%461, %c0_333] : memref<128x64xf32, #tpu.memory_space<vmem>>, vector<1x64xf32>
    %c6_334 = arith.constant 6 : index
    %c2_335 = arith.constant 2 : index
    %c0_336 = arith.constant 0 : index
    %463 = vector.load %arg7[%c6_334, %c2_335, %c0_336] : memref<8x8x64xf32, #tpu.memory_space<vmem>>, vector<1x1x64xf32>
    %464 = vector.shape_cast %463 : vector<1x1x64xf32> to vector<1x64xf32>
    %465 = vector.shape_cast %462 : vector<1x64xf32> to vector<1x1x64xf32>
    tpu.vector_store %arg7[%c6_334, %c2_335, %c0_336], %465 {strides = array<i32>} : memref<8x8x64xf32, #tpu.memory_space<vmem>>, vector<1x1x64xf32>,
    %c6_i32_337 = arith.constant 6 : i32
    %466 = arith.addi %1, %c6_i32_337 : i32
    %467 = arith.index_cast %466 : i32 to index
    %c4_338 = arith.constant 4 : index
    %468 = memref.load %arg1[%467, %c4_338] : memref<32x9xi32, #tpu.memory_space<smem>>
    %469 = arith.index_cast %468 : i32 to index
    %c0_339 = arith.constant 0 : index
    %470 = vector.load %arg3[%469, %c0_339] : memref<128x64xf32, #tpu.memory_space<vmem>>, vector<1x64xf32>
    %c6_340 = arith.constant 6 : index
    %c3_341 = arith.constant 3 : index
    %c0_342 = arith.constant 0 : index
    %471 = vector.load %arg7[%c6_340, %c3_341, %c0_342] : memref<8x8x64xf32, #tpu.memory_space<vmem>>, vector<1x1x64xf32>
    %472 = vector.shape_cast %471 : vector<1x1x64xf32> to vector<1x64xf32>
    %473 = vector.shape_cast %470 : vector<1x64xf32> to vector<1x1x64xf32>
    tpu.vector_store %arg7[%c6_340, %c3_341, %c0_342], %473 {strides = array<i32>} : memref<8x8x64xf32, #tpu.memory_space<vmem>>, vector<1x1x64xf32>,
    %c6_i32_343 = arith.constant 6 : i32
    %474 = arith.addi %1, %c6_i32_343 : i32
    %475 = arith.index_cast %474 : i32 to index
    %c5_344 = arith.constant 5 : index
    %476 = memref.load %arg1[%475, %c5_344] : memref<32x9xi32, #tpu.memory_space<smem>>
    %477 = arith.index_cast %476 : i32 to index
    %c0_345 = arith.constant 0 : index
    %478 = vector.load %arg3[%477, %c0_345] : memref<128x64xf32, #tpu.memory_space<vmem>>, vector<1x64xf32>
    %c6_346 = arith.constant 6 : index
    %c4_347 = arith.constant 4 : index
    %c0_348 = arith.constant 0 : index
    %479 = vector.load %arg7[%c6_346, %c4_347, %c0_348] : memref<8x8x64xf32, #tpu.memory_space<vmem>>, vector<1x1x64xf32>
    %480 = vector.shape_cast %479 : vector<1x1x64xf32> to vector<1x64xf32>
    %481 = vector.shape_cast %478 : vector<1x64xf32> to vector<1x1x64xf32>
    tpu.vector_store %arg7[%c6_346, %c4_347, %c0_348], %481 {strides = array<i32>} : memref<8x8x64xf32, #tpu.memory_space<vmem>>, vector<1x1x64xf32>,
    %c6_i32_349 = arith.constant 6 : i32
    %482 = arith.addi %1, %c6_i32_349 : i32
    %483 = arith.index_cast %482 : i32 to index
    %c6_350 = arith.constant 6 : index
    %484 = memref.load %arg1[%483, %c6_350] : memref<32x9xi32, #tpu.memory_space<smem>>
    %485 = arith.index_cast %484 : i32 to index
    %c0_351 = arith.constant 0 : index
    %486 = vector.load %arg3[%485, %c0_351] : memref<128x64xf32, #tpu.memory_space<vmem>>, vector<1x64xf32>
    %c6_352 = arith.constant 6 : index
    %c5_353 = arith.constant 5 : index
    %c0_354 = arith.constant 0 : index
    %487 = vector.load %arg7[%c6_352, %c5_353, %c0_354] : memref<8x8x64xf32, #tpu.memory_space<vmem>>, vector<1x1x64xf32>
    %488 = vector.shape_cast %487 : vector<1x1x64xf32> to vector<1x64xf32>
    %489 = vector.shape_cast %486 : vector<1x64xf32> to vector<1x1x64xf32>
    tpu.vector_store %arg7[%c6_352, %c5_353, %c0_354], %489 {strides = array<i32>} : memref<8x8x64xf32, #tpu.memory_space<vmem>>, vector<1x1x64xf32>,
    %c6_i32_355 = arith.constant 6 : i32
    %490 = arith.addi %1, %c6_i32_355 : i32
    %491 = arith.index_cast %490 : i32 to index
    %c7_356 = arith.constant 7 : index
    %492 = memref.load %arg1[%491, %c7_356] : memref<32x9xi32, #tpu.memory_space<smem>>
    %493 = arith.index_cast %492 : i32 to index
    %c0_357 = arith.constant 0 : index
    %494 = vector.load %arg3[%493, %c0_357] : memref<128x64xf32, #tpu.memory_space<vmem>>, vector<1x64xf32>
    %c6_358 = arith.constant 6 : index
    %c6_359 = arith.constant 6 : index
    %c0_360 = arith.constant 0 : index
    %495 = vector.load %arg7[%c6_358, %c6_359, %c0_360] : memref<8x8x64xf32, #tpu.memory_space<vmem>>, vector<1x1x64xf32>
    %496 = vector.shape_cast %495 : vector<1x1x64xf32> to vector<1x64xf32>
    %497 = vector.shape_cast %494 : vector<1x64xf32> to vector<1x1x64xf32>
    tpu.vector_store %arg7[%c6_358, %c6_359, %c0_360], %497 {strides = array<i32>} : memref<8x8x64xf32, #tpu.memory_space<vmem>>, vector<1x1x64xf32>,
    %c6_i32_361 = arith.constant 6 : i32
    %498 = arith.addi %1, %c6_i32_361 : i32
    %499 = arith.index_cast %498 : i32 to index
    %c8_362 = arith.constant 8 : index
    %500 = memref.load %arg1[%499, %c8_362] : memref<32x9xi32, #tpu.memory_space<smem>>
    %501 = arith.index_cast %500 : i32 to index
    %c0_363 = arith.constant 0 : index
    %502 = vector.load %arg3[%501, %c0_363] : memref<128x64xf32, #tpu.memory_space<vmem>>, vector<1x64xf32>
    %c6_364 = arith.constant 6 : index
    %c7_365 = arith.constant 7 : index
    %c0_366 = arith.constant 0 : index
    %503 = vector.load %arg7[%c6_364, %c7_365, %c0_366] : memref<8x8x64xf32, #tpu.memory_space<vmem>>, vector<1x1x64xf32>
    %504 = vector.shape_cast %503 : vector<1x1x64xf32> to vector<1x64xf32>
    %505 = vector.shape_cast %502 : vector<1x64xf32> to vector<1x1x64xf32>
    tpu.vector_store %arg7[%c6_364, %c7_365, %c0_366], %505 {strides = array<i32>} : memref<8x8x64xf32, #tpu.memory_space<vmem>>, vector<1x1x64xf32>,
    %c7_i32_367 = arith.constant 7 : i32
    %506 = arith.addi %1, %c7_i32_367 : i32
    %507 = arith.index_cast %506 : i32 to index
    %c1_368 = arith.constant 1 : index
    %508 = memref.load %arg1[%507, %c1_368] : memref<32x9xi32, #tpu.memory_space<smem>>
    %509 = arith.index_cast %508 : i32 to index
    %c0_369 = arith.constant 0 : index
    %510 = vector.load %arg3[%509, %c0_369] : memref<128x64xf32, #tpu.memory_space<vmem>>, vector<1x64xf32>
    %c7_370 = arith.constant 7 : index
    %c0_371 = arith.constant 0 : index
    %c0_372 = arith.constant 0 : index
    %511 = vector.load %arg7[%c7_370, %c0_371, %c0_372] : memref<8x8x64xf32, #tpu.memory_space<vmem>>, vector<1x1x64xf32>
    %512 = vector.shape_cast %511 : vector<1x1x64xf32> to vector<1x64xf32>
    %513 = vector.shape_cast %510 : vector<1x64xf32> to vector<1x1x64xf32>
    tpu.vector_store %arg7[%c7_370, %c0_371, %c0_372], %513 {strides = array<i32>} : memref<8x8x64xf32, #tpu.memory_space<vmem>>, vector<1x1x64xf32>,
    %c7_i32_373 = arith.constant 7 : i32
    %514 = arith.addi %1, %c7_i32_373 : i32
    %515 = arith.index_cast %514 : i32 to index
    %c2_374 = arith.constant 2 : index
    %516 = memref.load %arg1[%515, %c2_374] : memref<32x9xi32, #tpu.memory_space<smem>>
    %517 = arith.index_cast %516 : i32 to index
    %c0_375 = arith.constant 0 : index
    %518 = vector.load %arg3[%517, %c0_375] : memref<128x64xf32, #tpu.memory_space<vmem>>, vector<1x64xf32>
    %c7_376 = arith.constant 7 : index
    %c1_377 = arith.constant 1 : index
    %c0_378 = arith.constant 0 : index
    %519 = vector.load %arg7[%c7_376, %c1_377, %c0_378] : memref<8x8x64xf32, #tpu.memory_space<vmem>>, vector<1x1x64xf32>
    %520 = vector.shape_cast %519 : vector<1x1x64xf32> to vector<1x64xf32>
    %521 = vector.shape_cast %518 : vector<1x64xf32> to vector<1x1x64xf32>
    tpu.vector_store %arg7[%c7_376, %c1_377, %c0_378], %521 {strides = array<i32>} : memref<8x8x64xf32, #tpu.memory_space<vmem>>, vector<1x1x64xf32>,
    %c7_i32_379 = arith.constant 7 : i32
    %522 = arith.addi %1, %c7_i32_379 : i32
    %523 = arith.index_cast %522 : i32 to index
    %c3_380 = arith.constant 3 : index
    %524 = memref.load %arg1[%523, %c3_380] : memref<32x9xi32, #tpu.memory_space<smem>>
    %525 = arith.index_cast %524 : i32 to index
    %c0_381 = arith.constant 0 : index
    %526 = vector.load %arg3[%525, %c0_381] : memref<128x64xf32, #tpu.memory_space<vmem>>, vector<1x64xf32>
    %c7_382 = arith.constant 7 : index
    %c2_383 = arith.constant 2 : index
    %c0_384 = arith.constant 0 : index
    %527 = vector.load %arg7[%c7_382, %c2_383, %c0_384] : memref<8x8x64xf32, #tpu.memory_space<vmem>>, vector<1x1x64xf32>
    %528 = vector.shape_cast %527 : vector<1x1x64xf32> to vector<1x64xf32>
    %529 = vector.shape_cast %526 : vector<1x64xf32> to vector<1x1x64xf32>
    tpu.vector_store %arg7[%c7_382, %c2_383, %c0_384], %529 {strides = array<i32>} : memref<8x8x64xf32, #tpu.memory_space<vmem>>, vector<1x1x64xf32>,
    %c7_i32_385 = arith.constant 7 : i32
    %530 = arith.addi %1, %c7_i32_385 : i32
    %531 = arith.index_cast %530 : i32 to index
    %c4_386 = arith.constant 4 : index
    %532 = memref.load %arg1[%531, %c4_386] : memref<32x9xi32, #tpu.memory_space<smem>>
    %533 = arith.index_cast %532 : i32 to index
    %c0_387 = arith.constant 0 : index
    %534 = vector.load %arg3[%533, %c0_387] : memref<128x64xf32, #tpu.memory_space<vmem>>, vector<1x64xf32>
    %c7_388 = arith.constant 7 : index
    %c3_389 = arith.constant 3 : index
    %c0_390 = arith.constant 0 : index
    %535 = vector.load %arg7[%c7_388, %c3_389, %c0_390] : memref<8x8x64xf32, #tpu.memory_space<vmem>>, vector<1x1x64xf32>
    %536 = vector.shape_cast %535 : vector<1x1x64xf32> to vector<1x64xf32>
    %537 = vector.shape_cast %534 : vector<1x64xf32> to vector<1x1x64xf32>
    tpu.vector_store %arg7[%c7_388, %c3_389, %c0_390], %537 {strides = array<i32>} : memref<8x8x64xf32, #tpu.memory_space<vmem>>, vector<1x1x64xf32>,
    %c7_i32_391 = arith.constant 7 : i32
    %538 = arith.addi %1, %c7_i32_391 : i32
    %539 = arith.index_cast %538 : i32 to index
    %c5_392 = arith.constant 5 : index
    %540 = memref.load %arg1[%539, %c5_392] : memref<32x9xi32, #tpu.memory_space<smem>>
    %541 = arith.index_cast %540 : i32 to index
    %c0_393 = arith.constant 0 : index
    %542 = vector.load %arg3[%541, %c0_393] : memref<128x64xf32, #tpu.memory_space<vmem>>, vector<1x64xf32>
    %c7_394 = arith.constant 7 : index
    %c4_395 = arith.constant 4 : index
    %c0_396 = arith.constant 0 : index
    %543 = vector.load %arg7[%c7_394, %c4_395, %c0_396] : memref<8x8x64xf32, #tpu.memory_space<vmem>>, vector<1x1x64xf32>
    %544 = vector.shape_cast %543 : vector<1x1x64xf32> to vector<1x64xf32>
    %545 = vector.shape_cast %542 : vector<1x64xf32> to vector<1x1x64xf32>
    tpu.vector_store %arg7[%c7_394, %c4_395, %c0_396], %545 {strides = array<i32>} : memref<8x8x64xf32, #tpu.memory_space<vmem>>, vector<1x1x64xf32>,
    %c7_i32_397 = arith.constant 7 : i32
    %546 = arith.addi %1, %c7_i32_397 : i32
    %547 = arith.index_cast %546 : i32 to index
    %c6_398 = arith.constant 6 : index
    %548 = memref.load %arg1[%547, %c6_398] : memref<32x9xi32, #tpu.memory_space<smem>>
    %549 = arith.index_cast %548 : i32 to index
    %c0_399 = arith.constant 0 : index
    %550 = vector.load %arg3[%549, %c0_399] : memref<128x64xf32, #tpu.memory_space<vmem>>, vector<1x64xf32>
    %c7_400 = arith.constant 7 : index
    %c5_401 = arith.constant 5 : index
    %c0_402 = arith.constant 0 : index
    %551 = vector.load %arg7[%c7_400, %c5_401, %c0_402] : memref<8x8x64xf32, #tpu.memory_space<vmem>>, vector<1x1x64xf32>
    %552 = vector.shape_cast %551 : vector<1x1x64xf32> to vector<1x64xf32>
    %553 = vector.shape_cast %550 : vector<1x64xf32> to vector<1x1x64xf32>
    tpu.vector_store %arg7[%c7_400, %c5_401, %c0_402], %553 {strides = array<i32>} : memref<8x8x64xf32, #tpu.memory_space<vmem>>, vector<1x1x64xf32>,
    %c7_i32_403 = arith.constant 7 : i32
    %554 = arith.addi %1, %c7_i32_403 : i32
    %555 = arith.index_cast %554 : i32 to index
    %c7_404 = arith.constant 7 : index
    %556 = memref.load %arg1[%555, %c7_404] : memref<32x9xi32, #tpu.memory_space<smem>>
    %557 = arith.index_cast %556 : i32 to index
    %c0_405 = arith.constant 0 : index
    %558 = vector.load %arg3[%557, %c0_405] : memref<128x64xf32, #tpu.memory_space<vmem>>, vector<1x64xf32>
    %c7_406 = arith.constant 7 : index
    %c6_407 = arith.constant 6 : index
    %c0_408 = arith.constant 0 : index
    %559 = vector.load %arg7[%c7_406, %c6_407, %c0_408] : memref<8x8x64xf32, #tpu.memory_space<vmem>>, vector<1x1x64xf32>
    %560 = vector.shape_cast %559 : vector<1x1x64xf32> to vector<1x64xf32>
    %561 = vector.shape_cast %558 : vector<1x64xf32> to vector<1x1x64xf32>
    tpu.vector_store %arg7[%c7_406, %c6_407, %c0_408], %561 {strides = array<i32>} : memref<8x8x64xf32, #tpu.memory_space<vmem>>, vector<1x1x64xf32>,
    %c7_i32_409 = arith.constant 7 : i32
    %562 = arith.addi %1, %c7_i32_409 : i32
    %563 = arith.index_cast %562 : i32 to index
    %c8_410 = arith.constant 8 : index
    %564 = memref.load %arg1[%563, %c8_410] : memref<32x9xi32, #tpu.memory_space<smem>>
    %565 = arith.index_cast %564 : i32 to index
    %c0_411 = arith.constant 0 : index
    %566 = vector.load %arg3[%565, %c0_411] : memref<128x64xf32, #tpu.memory_space<vmem>>, vector<1x64xf32>
    %c7_412 = arith.constant 7 : index
    %c7_413 = arith.constant 7 : index
    %c0_414 = arith.constant 0 : index
    %567 = vector.load %arg7[%c7_412, %c7_413, %c0_414] : memref<8x8x64xf32, #tpu.memory_space<vmem>>, vector<1x1x64xf32>
    %568 = vector.shape_cast %567 : vector<1x1x64xf32> to vector<1x64xf32>
    %569 = vector.shape_cast %566 : vector<1x64xf32> to vector<1x1x64xf32>
    tpu.vector_store %arg7[%c7_412, %c7_413, %c0_414], %569 {strides = array<i32>} : memref<8x8x64xf32, #tpu.memory_space<vmem>>, vector<1x1x64xf32>,
    %c0_415 = arith.constant 0 : index
    %c0_416 = arith.constant 0 : index
    %c0_417 = arith.constant 0 : index
    %570 = vector.load %arg7[%c0_415, %c0_416, %c0_417] : memref<8x8x64xf32, #tpu.memory_space<vmem>>, vector<8x8x64xf32>
    %571 = arith.mulf %570, %570 : vector<8x8x64xf32>
    %cst = arith.constant dense<0.000000e+00> : vector<8x8xf32>
    %572 = vector.multi_reduction <add>, %571, %cst [2] : vector<8x8x64xf32> to vector<8x8xf32>
    %c0_i32_418 = arith.constant 0 : i32
    %c0_i32_419 = arith.constant 0 : i32
    %c0_i32_420 = arith.constant 0 : i32
    %573 = tpu.memref_slice %arg2[%c0_i32_419, %c0_i32_420] : memref<64x64xf32, #tpu.memory_space<any>> -> memref<8x64xf32, #tpu.memory_space<any>>
    %574 = tpu.memref_slice %arg8[%c0_i32_418] : memref<1x!tpu.dma_semaphore, #tpu.memory_space<semaphore_mem>> -> memref<1x!tpu.dma_semaphore, #tpu.memory_space<semaphore_mem>>
    %575 = tpu.memref_squeeze %574 : memref<1x!tpu.dma_semaphore, #tpu.memory_space<semaphore_mem>> -> memref<!tpu.dma_semaphore, #tpu.memory_space<semaphore_mem>>
    tpu.wait_dma2 semaphore(%575 : memref<!tpu.dma_semaphore, #tpu.memory_space<semaphore_mem>>) src(%573 : memref<8x64xf32, #tpu.memory_space<any>>) dst(%arg6 : memref<8x64xf32, #tpu.memory_space<vmem>>)
    %c0_421 = arith.constant 0 : index
    %c0_422 = arith.constant 0 : index
    %576 = vector.load %arg6[%c0_421, %c0_422] : memref<8x64xf32, #tpu.memory_space<vmem>>, vector<8x64xf32>
    %577 = vector.shape_cast %576 : vector<8x64xf32> to vector<8x1x64xf32>
    %578 = vector.broadcast %577 : vector<8x1x64xf32> to vector<8x8x64xf32>
    %579 = arith.mulf %578, %570 : vector<8x8x64xf32>
    %cst_423 = arith.constant dense<0.000000e+00> : vector<8x8xf32>
    %580 = vector.multi_reduction <add>, %579, %cst_423 [2] : vector<8x8x64xf32> to vector<8x8xf32>
    %581 = vector.extract_strided_slice %580 {offsets = [0, 0], sizes = [8, 1], strides = [1, 1]} : vector<8x8xf32> to vector<8x1xf32>
    %582 = vector.extract_strided_slice %580 {offsets = [0, 1], sizes = [8, 1], strides = [1, 1]} : vector<8x8xf32> to vector<8x1xf32>
    %583 = arith.subf %581, %582 : vector<8x1xf32>
    %584 = math.absf %583 : vector<8x1xf32>
    %cst_424 = arith.constant 5.000000e-01 : f32
    %585 = vector.broadcast %cst_424 : f32 to vector<8x1xf32>
    %586 = arith.minimumf %584, %585 : vector<8x1xf32>
    %587 = vector.broadcast %581 : vector<8x1xf32> to vector<8x8xf32>
    %588 = arith.subf %580, %587 : vector<8x8xf32>
    %cst_425 = arith.constant 0.000000e+00 : f32
    %589 = vector.broadcast %cst_425 : f32 to vector<8x8xf32>
    %590 = arith.maximumf %588, %589 : vector<8x8xf32>
    %591 = math.absf %588 : vector<8x8xf32>
    %cst_426 = arith.constant 0.000000e+00 : f32
    %592 = vector.broadcast %cst_426 : f32 to vector<8x8xf32>
    %593 = arith.subf %592, %591 : vector<8x8xf32>
    %594 = math.exp %593 : vector<8x8xf32>
    %cst_427 = arith.constant 1.000000e+00 : f32
    %595 = vector.broadcast %cst_427 : f32 to vector<8x8xf32>
    %596 = arith.addf %595, %594 : vector<8x8xf32>
    %597 = math.log %596 : vector<8x8xf32>
    %598 = arith.addf %590, %597 : vector<8x8xf32>
    %599 = vector.broadcast %582 : vector<8x1xf32> to vector<8x8xf32>
    %600 = arith.subf %580, %599 : vector<8x8xf32>
    %cst_428 = arith.constant 0.000000e+00 : f32
    %601 = vector.broadcast %cst_428 : f32 to vector<8x8xf32>
    %602 = arith.maximumf %600, %601 : vector<8x8xf32>
    %603 = math.absf %600 : vector<8x8xf32>
    %cst_429 = arith.constant 0.000000e+00 : f32
    %604 = vector.broadcast %cst_429 : f32 to vector<8x8xf32>
    %605 = arith.subf %604, %603 : vector<8x8xf32>
    %606 = math.exp %605 : vector<8x8xf32>
    %cst_430 = arith.constant 1.000000e+00 : f32
    %607 = vector.broadcast %cst_430 : f32 to vector<8x8xf32>
    %608 = arith.addf %607, %606 : vector<8x8xf32>
    %609 = math.log %608 : vector<8x8xf32>
    %610 = arith.addf %602, %609 : vector<8x8xf32>
    %611 = arith.addf %598, %610 : vector<8x8xf32>
    %612 = tpu.iota {dimensions = array<i32: 1>} : vector<8x8xi32>
    %c2_i32_431 = arith.constant 2 : i32
    %613 = vector.broadcast %c2_i32_431 : i32 to vector<8x8xi32>
    %614 = arith.cmpi sge, %612, %613 : vector<8x8xi32>
    %cst_432 = arith.constant 0.000000e+00 : f32
    %615 = vector.broadcast %cst_432 : f32 to vector<8x8xf32>
    %616 = arith.select %614, %611, %615 : vector<8x8xi1>, vector<8x8xf32>
    %cst_433 = arith.constant dense<0.000000e+00> : vector<8xf32>
    %617 = vector.multi_reduction <add>, %616, %cst_433 [1] : vector<8x8xf32> to vector<8xf32>
    %618 = vector.shape_cast %617 : vector<8xf32> to vector<8x1xf32>
    %cst_434 = arith.constant -1.000000e+30 : f32
    %619 = vector.broadcast %cst_434 : f32 to vector<8x8xf32>
    %620 = arith.select %614, %611, %619 : vector<8x8xi1>, vector<8x8xf32>
    %cst_435 = arith.constant dense<0xFF800000> : vector<8xf32>
    %621 = vector.multi_reduction <maximumf>, %620, %cst_435 [1] : vector<8x8xf32> to vector<8xf32>
    %622 = vector.shape_cast %621 : vector<8xf32> to vector<8x1xf32>
    %cst_436 = arith.constant 2.000000e+00 : f32
    %623 = vector.broadcast %cst_436 : f32 to vector<8x1xf32>
    %624 = arith.mulf %623, %586 : vector<8x1xf32>
    %625 = arith.subf %622, %624 : vector<8x1xf32>
    %cst_437 = arith.constant 0.000000e+00 : f32
    %626 = vector.broadcast %cst_437 : f32 to vector<8x1xf32>
    %627 = arith.maximumf %625, %626 : vector<8x1xf32>
    %628 = math.absf %625 : vector<8x1xf32>
    %cst_438 = arith.constant 0.000000e+00 : f32
    %629 = vector.broadcast %cst_438 : f32 to vector<8x1xf32>
    %630 = arith.subf %629, %628 : vector<8x1xf32>
    %631 = math.exp %630 : vector<8x1xf32>
    %cst_439 = arith.constant 1.000000e+00 : f32
    %632 = vector.broadcast %cst_439 : f32 to vector<8x1xf32>
    %633 = arith.addf %632, %631 : vector<8x1xf32>
    %634 = math.log %633 : vector<8x1xf32>
    %635 = arith.addf %627, %634 : vector<8x1xf32>
    %636 = arith.mulf %576, %576 : vector<8x64xf32>
    %cst_440 = arith.constant dense<0.000000e+00> : vector<8xf32>
    %637 = vector.multi_reduction <add>, %636, %cst_440 [1] : vector<8x64xf32> to vector<8xf32>
    %638 = vector.shape_cast %637 : vector<8xf32> to vector<8x1xf32>
    %cst_441 = arith.constant dense<0.000000e+00> : vector<8xf32>
    %639 = vector.multi_reduction <add>, %572, %cst_441 [1] : vector<8x8xf32> to vector<8xf32>
    %640 = vector.shape_cast %639 : vector<8xf32> to vector<8x1xf32>
    %641 = arith.addf %638, %640 : vector<8x1xf32>
    %cst_442 = arith.constant 0.00999999977 : f32
    %642 = vector.broadcast %cst_442 : f32 to vector<8x1xf32>
    %643 = arith.mulf %642, %641 : vector<8x1xf32>
    %644 = arith.addf %635, %618 : vector<8x1xf32>
    %645 = arith.addf %644, %643 : vector<8x1xf32>
    %cst_443 = arith.constant dense<0.000000e+00> : vector<1xf32>
    %646 = vector.multi_reduction <add>, %645, %cst_443 [0] : vector<8x1xf32> to vector<1xf32>
    %647 = vector.shape_cast %646 : vector<1xf32> to vector<1x1xf32>
    %cst_444 = arith.constant dense<0.000000e+00> : vector<1xf32>
    %648 = vector.multi_reduction <add>, %643, %cst_444 [0] : vector<8x1xf32> to vector<1xf32>
    %649 = vector.shape_cast %648 : vector<1xf32> to vector<1x1xf32>
    %650 = vector.shape_cast %647 : vector<1x1xf32> to vector<1x1x1xf32>
    %651 = vector.shape_cast %650 : vector<1x1x1xf32> to vector<1x1x1xf32>
    %652 = vector.broadcast %651 : vector<1x1x1xf32> to vector<1x1x128xf32>
    %c0_445 = arith.constant 0 : index
    %c0_446 = arith.constant 0 : index
    %c0_447 = arith.constant 0 : index
    %653 = vector.load %arg4[%c0_445, %c0_446, %c0_447] : memref<1x1x128xf32, #tpu.memory_space<vmem>>, vector<1x1x128xf32>
    tpu.vector_store %arg4[%c0_445, %c0_446, %c0_447], %652 {strides = array<i32>} : memref<1x1x128xf32, #tpu.memory_space<vmem>>, vector<1x1x128xf32>,
    %654 = vector.shape_cast %649 : vector<1x1xf32> to vector<1x1x1xf32>
    %655 = vector.shape_cast %654 : vector<1x1x1xf32> to vector<1x1x1xf32>
    %656 = vector.broadcast %655 : vector<1x1x1xf32> to vector<1x1x128xf32>
    %c0_448 = arith.constant 0 : index
    %c0_449 = arith.constant 0 : index
    %c0_450 = arith.constant 0 : index
    %657 = vector.load %arg5[%c0_448, %c0_449, %c0_450] : memref<1x1x128xf32, #tpu.memory_space<vmem>>, vector<1x1x128xf32>
    tpu.vector_store %arg5[%c0_448, %c0_449, %c0_450], %656 {strides = array<i32>} : memref<1x1x128xf32, #tpu.memory_space<vmem>>, vector<1x1x128xf32>,
    return
  }
  func.func @transform_1(%arg0: i32, %arg1: memref<32x9xi32, #tpu.memory_space<smem>>) -> (i32, i32) {
    %c0_i32 = arith.constant 0 : i32
    %c0_i32_0 = arith.constant 0 : i32
    %c0_i32_1 = arith.constant 0 : i32
    return %c0_i32, %c0_i32_0 : i32, i32
  }
  func.func @transform_2(%arg0: i32, %arg1: memref<32x9xi32, #tpu.memory_space<smem>>) -> (i32, i32, i32) {
    %c0_i32 = arith.constant 0 : i32
    %c0_i32_0 = arith.constant 0 : i32
    %c0_i32_1 = arith.constant 0 : i32
    return %arg0, %c0_i32, %c0_i32_0 : i32, i32, i32
  }
  func.func @transform_3(%arg0: i32, %arg1: memref<32x9xi32, #tpu.memory_space<smem>>) -> (i32, i32, i32) {
    %c0_i32 = arith.constant 0 : i32
    %c0_i32_0 = arith.constant 0 : i32
    %c0_i32_1 = arith.constant 0 : i32
    return %arg0, %c0_i32, %c0_i32_0 : i32, i32, i32
  }
}

</mosaic_0001>

<bundles_post_ra>
// kernel: tpu_custom_call.1
= control target key start
LH: loop header
LB: loop body
LE: loop exit
PB: predicated region body
PF: predicated region fallthrough
CT: control target
= control target key end

     0   :  { %s2865_s0 = inlined_call_operand.vmem [shape: s32[32,9], index: 0, kind: input, shape index: {}]   ;;  %s2866_s1 = inlined_call_operand.vmem [shape: f32[64,64], index: 1, kind: input, shape index: {}]   ;;  %s2867_s2 = inlined_call_operand.vmem [shape: f32[128,64], index: 2, kind: input, shape index: {}]   ;;  %s2868_s3 = inlined_call_operand.hbm [shape: f32[4,1,128], index: 3, kind: output, shape index: {0}]   ;;  %s2869_s4 = inlined_call_operand.hbm [shape: f32[4,1,128], index: 4, kind: output, shape index: {1}]  }
   0x1   :  { %2881 = sst [smem:[#allocation31_spill]] %s2866_s1  ;;  %s10_s17 = sshll.u32 %s2865_s0, 4  ;;  %s11_s17 = int_to_ptr.vmem [resolvable:$true] %s10_s17 }
   0x2   :  { %2882 = sst [smem:[#allocation32_spill]] %s2868_s3  ;;  %s1915_s18 = scalar_lea.vmem %s11_s17, 512 }
   0x3   :  { %2883 = sst [smem:[#allocation33_spill]] %s2869_s4  ;;  %p1916_p0 = scmp.ne.s32.totalorder %s11_s17, %s1915_s18 }
   0x4   :  { %p1920_p1 = scmp.lt.s32.totalorder %s11_s17, %s11_s17  ;;  %p1921_p2 = scmp.lt.s32.totalorder %s1915_s18, %s1915_s18 }
   0x6   :  { %p1922_p3 = por %p1921_p2, %p1920_p1 }
   0x8   :  { %p1923_p4 = pnand %p1922_p3, %p1916_p0 }
   0xa   :  { %1926 = shalt.err (!%p1923_p4)  }
   0xb   :  { %s2027_s19 = smov [#allocation6]  }
   0xc   :  { %13 = dma.vmem_to_smem %s11_s17, 512, %s2027_s19, [#allocation5] }
   0xd   :  { %1999 = dma.done.wait [#allocation5], 512 }
   0xe   :  { %2000 = vsyncadd [#allocation5], 4294966784 }
   0xf   :  { %15 = sfence }
  0x10   :  { %16 = vsyncpa [#allocation8], 0 }
  0x11   :  { %18 = vsyncpa [#allocation8 + $0x1], 0 }
  0x12   :  { %19 = vsyncpa [#allocation10], 0 }
  0x13   :  { %21 = vsyncpa [#allocation10 + $0x1], 0  ;;  %s2060_s20 = smov 0   ;;  %s2062_s0 = smov 0  }
  0x14   :  { %s2064_s21 = smov 0   ;;  %s2066_s22 = smov 0  }
  0x15 LB: > { %2884 = sst [smem:[#allocation23_spill]] %s2013_s20  ;;  %s2081_s23 = sadd.s32 4294967295, %s2025_s22   ;;  %s2025_s22 = sphi %s2066_s22, %s2911_s22   ;;  %s2021_s21 = sphi %s2064_s21, %s2914_s21   ;;  %s2017_s0 = sphi %s2062_s0, %s2913_s0   ;;  %s2013_s20 = sphi %s2060_s20, %s2912_s20  }
  0x16   : > { %2885 = sst [smem:[#allocation24_spill]] %s2017_s0  ;;  %s1759_s24 = sadd.s32 4294967294, %s2025_s22  }
  0x17   : > { %2886 = sst [smem:[#allocation25_spill]] %s2021_s21  ;;  %s2085_s25 = sadd.s32 1, %s2025_s22  }
  0x18   : > { %2887 = sst [smem:[#allocation26_spill]] %s2025_s22  ;;  %s55_s26 = sadd.s32 1, %s2021_s21 }
  0x19   : > { %2888 = sst [smem:[#allocation27_spill]] %s2085_s25  ;;  %s52_s27 = ssub.s32 %s2025_s22, %s2085_s25 }
  0x1a   : > { %p65_p5 = scmp.ne.s32.totalorder %s2021_s21, %s2017_s0  ;;  %p53_p6 = scmp.eq.s32.totalorder %s52_s27, 0 }
  0x1b   : > { %p66_p7 = scmp.eq.s32.totalorder %s2081_s23, 3  ;;  %p71_p8 = scmp.ne.s32.totalorder %s2017_s0, %s2013_s20 }
  0x1c   : > { %p72_p9 = scmp.eq.s32.totalorder %s1759_s24, 3  ;;  %p1761_p12 = scmp.ge.s32.totalorder %s2025_s22, 1 }
  0x1d   : > { %s2096_s28 = scalar_select %p53_p6, %s2021_s21, %s55_s26  }
  0x1e   : > { %p2098_p10 = por %p66_p7, %p65_p5  ;;  %p2102_p11 = por %p72_p9, %p71_p8 }
  0x1f   : > { %2889 = sst [smem:[#allocation28_spill]] %s2096_s28  ;;  %p119_p13 = scmp.lt.s32.totalorder %s2025_s22, 5 }
  0x20   : > { %s2890_s29 = scalar_select %p2098_p10, 1, 0 }
  0x21   : > { %s2892_s30 = scalar_select %p2102_p11, 1, 0 }
  0x22   : > { %2891 = sst [smem:[#allocation29_spill]] %s2890_s29  ;;  %p120_p0 = pnand %p1761_p12, %p119_p13 }
  0x23   : > { %2893 = sst [smem:[#allocation30_spill]] %s2892_s30  ;;  %s2109_s5 = sand.u32 (!%p120_p0), 1, %s2017_s0  }
  0x24   : > { %123 = sbr.rel (%p120_p0) target bundleno = 947 (0x3b3), region = 24  ;;  %s2112_s6 = sshll.u32 (!%p120_p0), %s2081_s23, 10 }
  0x25   : > { %s141_s7 = sld [smem:[#allocation6 + %s2112_s6]] (!%p120_p0) }
  0x26   : > { %s2894_s1 = sld [smem:[#allocation31_spill]] (!%p120_p0) }
  0x2c   : > { %s142_s10 = scalar_lea.vmem %s2894_s1, %s141_s7 }
  0x2d   : > { %v160_v0 = vld [vmem:[%s142_s10] sm:$0x1] }
  0x2e   : > { %161 = vst [vmem:[#allocation2] sm:$0x1] %v160_v0 }
  0x2f   : > { %186 = vsyncadd [#allocation4], 16  ;;  %s2121_s13 = sadd.s32 128, %s2112_s6 }
  0x30   : > { %s189_s14 = sld [smem:[#allocation6 + %s2121_s13]] }
  0x36   : > { %s190_s17 = scalar_lea.vmem %s2894_s1, %s189_s14 }
  0x37   : > { %v209_v1 = vld [vmem:[%s190_s17] sm:$0x1] }
  0x38   : > { %210 = vst [vmem:[#allocation2 + $0x1] sm:$0x1] %v209_v1 }
  0x39   : > { %235 = vsyncadd [#allocation4], 16  ;;  %s2128_s18 = sadd.s32 256, %s2112_s6 }
  0x3a   : > { %s238_s19 = sld [smem:[#allocation6 + %s2128_s18]] }
  0x40   : > { %s239_s27 = scalar_lea.vmem %s2894_s1, %s238_s19 }
  0x41   : > { %v258_v2 = vld [vmem:[%s239_s27] sm:$0x1] }
  0x42   : > { %259 = vst [vmem:[#allocation2 + $0x2] sm:$0x1] %v258_v2 }
  0x43   : > { %284 = vsyncadd [#allocation4], 16  ;;  %s2135_s7 = sadd.s32 384, %s2112_s6 }
  0x44   : > { %s287_s8 = sld [smem:[#allocation6 + %s2135_s7]] }
  0x4a   : > { %s288_s14 = scalar_lea.vmem %s2894_s1, %s287_s8 }
  0x4b   : > { %v307_v3 = vld [vmem:[%s288_s14] sm:$0x1] }
  0x4c   : > { %308 = vst [vmem:[#allocation2 + $0x3] sm:$0x1] %v307_v3 }
  0x4d   : > { %333 = vsyncadd [#allocation4], 16  ;;  %s2142_s15 = sadd.s32 512, %s2112_s6 }
  0x4e   : > { %s336_s16 = sld [smem:[#allocation6 + %s2142_s15]] }
  0x54   : > { %s337_s24 = scalar_lea.vmem %s2894_s1, %s336_s16 }
  0x55   : > { %v356_v4 = vld [vmem:[%s337_s24] sm:$0x1] }
  0x56   : > { %357 = vst [vmem:[#allocation2 + $0x4] sm:$0x1] %v356_v4 }
  0x57   : > { %382 = vsyncadd [#allocation4], 16  ;;  %s2149_s26 = sadd.s32 640, %s2112_s6 }
  0x58   : > { %s385_s27 = sld [smem:[#allocation6 + %s2149_s26]] }
  0x5e   : > { %s386_s10 = scalar_lea.vmem %s2894_s1, %s385_s27 }
  0x5f   : > { %v405_v5 = vld [vmem:[%s386_s10] sm:$0x1] }
  0x60   : > { %406 = vst [vmem:[#allocation2 + $0x5] sm:$0x1] %v405_v5 }
  0x61   : > { %431 = vsyncadd [#allocation4], 16  ;;  %s2156_s14 = sadd.s32 768, %s2112_s6 }
  0x62   : > { %s434_s16 = sld [smem:[#allocation6 + %s2156_s14]] }
  0x68   : > { %s435_s24 = scalar_lea.vmem %s2894_s1, %s434_s16 }
  0x69   : > { %v454_v6 = vld [vmem:[%s435_s24] sm:$0x1] }
  0x6a   : > { %455 = vst [vmem:[#allocation2 + $0x6] sm:$0x1] %v454_v6 }
  0x6b   : > { %480 = vsyncadd [#allocation4], 16  ;;  %s2163_s8 = sadd.s32 896, %s2112_s6  ;;  %s612_s12 = sadd.s32 1, %s2128_s18 }
  0x6c   : > { %s483_s27 = sld [smem:[#allocation6 + %s2163_s8]]  ;;  %s618_s28 = sadd.s32 2, %s2128_s18 }
  0x72   : > { %s484_s11 = scalar_lea.vmem %s2894_s1, %s483_s27 }
  0x73   : > { %v503_v7 = vld [vmem:[%s484_s11] sm:$0x1] }
  0x74   : > { %504 = vst [vmem:[#allocation2 + $0x7] sm:$0x1] %v503_v7 }
  0x75   : > { %529 = vsyncadd [#allocation4], 16  ;;  %s613_s16 = sld [smem:[#allocation6 + %s612_s12]]  ;;  %s623_s19 = sadd.s32 3, %s2128_s18  ;;  %vm534_vm0 = vcmask 516096   ;;  %vm874_vm1 = vcmask 523264  }
  0x76   : > { %s619_s17 = sld [smem:[#allocation6 + %s618_s28]]  ;;  %s628_s24 = sadd.s32 4, %s2128_s18 }
  0x77   : > { %s624_s21 = sld [smem:[#allocation6 + %s623_s19]]  ;;  %s633_s25 = sadd.s32 5, %s2128_s18 }
  0x78   : > { %s629_s0 = sld [smem:[#allocation6 + %s628_s24]]  ;;  %s638_s9 = sadd.s32 6, %s2128_s18 }
  0x79   : > { %s634_s27 = sld [smem:[#allocation6 + %s633_s25]]  ;;  %s643_s10 = sadd.s32 7, %s2128_s18 }
  0x7a   : > { %s639_s11 = sld [smem:[#allocation6 + %s638_s9]]  ;;  %s648_s1 = sadd.s32 8, %s2128_s18 }
  0x7b   : > { %s614_s22 = scalar_lea.vmem %s2867_s2, %s613_s16  ;;  %s644_s19 = sld [smem:[#allocation6 + %s643_s10]] }
  0x7c   : > { %s620_s28 = scalar_lea.vmem %s2867_s2, %s619_s17  ;;  %v615_v8 = vld [vmem:[%s614_s22] sm:$0x1]  ;;  %s649_s24 = sld [smem:[#allocation6 + %s648_s1]] }
  0x7d   : > { %v621_v9 = vld [vmem:[%s620_s28] sm:$0x1]  ;;  %617 = vst.msk [vmem:[#allocation3 + $0x10] sm:$0x1] %vm534_vm0, %v615_v8  ;;  %s625_s18 = scalar_lea.vmem %s2867_s2, %s624_s21  ;;  %s530_s3 = sadd.s32 1, %s2112_s6 }
  0x7e   : > { %622 = vst.msk [vmem:[#allocation3 + $0x11] sm:$0x1] %vm534_vm0, %v621_v9  ;;  %s630_s20 = scalar_lea.vmem %s2867_s2, %s629_s0  ;;  %v626_v10 = vld [vmem:[%s625_s18] sm:$0x1]  ;;  %s536_s22 = sadd.s32 2, %s2112_s6 }
  0x7f   : > { %v631_v11 = vld [vmem:[%s630_s20] sm:$0x1]  ;;  %627 = vst.msk [vmem:[#allocation3 + $0x12] sm:$0x1] %vm534_vm0, %v626_v10  ;;  %s635_s16 = scalar_lea.vmem %s2867_s2, %s634_s27  ;;  %s531_s4 = sld [smem:[#allocation6 + %s530_s3]] }
  0x80   : > { %632 = vst.msk [vmem:[#allocation3 + $0x13] sm:$0x1] %vm534_vm0, %v631_v11  ;;  %s640_s10 = scalar_lea.vmem %s2867_s2, %s639_s11  ;;  %v636_v12 = vld [vmem:[%s635_s16] sm:$0x1]  ;;  %s537_s0 = sld [smem:[#allocation6 + %s536_s22]] }
  0x81   : > { %v641_v13 = vld [vmem:[%s640_s10] sm:$0x1]  ;;  %637 = vst.msk [vmem:[#allocation3 + $0x14] sm:$0x1] %vm534_vm0, %v636_v12  ;;  %s541_s29 = sadd.s32 3, %s2112_s6  ;;  %s546_s12 = sadd.s32 4, %s2112_s6 }
  0x82   : > { %642 = vst.msk [vmem:[#allocation3 + $0x15] sm:$0x1] %vm534_vm0, %v641_v13  ;;  %s645_s27 = scalar_lea.vmem %s2867_s2, %s644_s19  ;;  %s650_s11 = scalar_lea.vmem %s2867_s2, %s649_s24 }
  0x83   : > { %v646_v14 = vld [vmem:[%s645_s27] sm:$0x1]  ;;  %s542_s20 = sld [smem:[#allocation6 + %s541_s29]]  ;;  %s551_s22 = sadd.s32 5, %s2112_s6 }
  0x84   : > { %v651_v15 = vld [vmem:[%s650_s11] sm:$0x1]  ;;  %s547_s3 = sld [smem:[#allocation6 + %s546_s12]]  ;;  %647 = vst.msk [vmem:[#allocation3 + $0x16] sm:$0x1] %vm534_vm0, %v646_v14  ;;  %s556_s1 = sadd.s32 6, %s2112_s6 }
  0x85   : > { %652 = vst.msk [vmem:[#allocation3 + $0x17] sm:$0x1] %vm534_vm0, %v651_v15  ;;  %s552_s30 = sld [smem:[#allocation6 + %s551_s22]]  ;;  %s532_s21 = scalar_lea.vmem %s2867_s2, %s531_s4 }
  0x86   : > { %s557_s16 = sld [smem:[#allocation6 + %s556_s1]]  ;;  %s538_s28 = scalar_lea.vmem %s2867_s2, %s537_s0  ;;  %v533_v16 = vld [vmem:[%s532_s21] sm:$0x1] }
  0x87   : > { %v539_v17 = vld [vmem:[%s538_s28] sm:$0x1]  ;;  %s561_s29 = sadd.s32 7, %s2112_s6  ;;  %s566_s12 = sadd.s32 8, %s2112_s6  ;;  %535 = vst.msk [vmem:[#allocation3] sm:$0x1] %vm534_vm0, %v533_v16 }
  0x88   : > { %540 = vst.msk [vmem:[#allocation3 + $0x1] sm:$0x1] %vm534_vm0, %v539_v17  ;;  %s562_s25 = sld [smem:[#allocation6 + %s561_s29]]  ;;  %s653_s0 = sadd.s32 1, %s2135_s7 }
  0x89   : > { %s567_s27 = sld [smem:[#allocation6 + %s566_s12]]  ;;  %s543_s11 = scalar_lea.vmem %s2867_s2, %s542_s20 }
  0x8a   : > { %s548_s1 = scalar_lea.vmem %s2867_s2, %s547_s3  ;;  %v544_v18 = vld [vmem:[%s543_s11] sm:$0x1]  ;;  %s659_s6 = sadd.s32 2, %s2135_s7 }
  0x8b   : > { %v549_v19 = vld [vmem:[%s548_s1] sm:$0x1]  ;;  %545 = vst.msk [vmem:[#allocation3 + $0x2] sm:$0x1] %vm534_vm0, %v544_v18  ;;  %s553_s20 = scalar_lea.vmem %s2867_s2, %s552_s30  ;;  %s654_s10 = sld [smem:[#allocation6 + %s653_s0]] }
  0x8c   : > { %v2233_v20 = vld [vmem:[#allocation3 + $0x10] sm:$0xff]  ;;  %550 = vst.msk [vmem:[#allocation3 + $0x3] sm:$0x1] %vm534_vm0, %v549_v19  ;;  %s558_s3 = scalar_lea.vmem %s2867_s2, %s557_s16  ;;  %v554_v22 = vld [vmem:[%s553_s20] sm:$0x1]  ;;  %s660_s28 = sld [smem:[#allocation6 + %s659_s6]] }
  0x8d   : > { %v868_v21 = vmul.f32 %v2233_v20, %v2233_v20  ;;  %v559_v23 = vld [vmem:[%s558_s3] sm:$0x1]  ;;  %555 = vst.msk [vmem:[#allocation3 + $0x4] sm:$0x1] %vm534_vm0, %v554_v22  ;;  %s664_s29 = sadd.s32 3, %s2135_s7  ;;  %s669_s12 = sadd.s32 4, %s2135_s7 }
  0x8e   : > { %560 = vst.msk [vmem:[#allocation3 + $0x5] sm:$0x1] %vm534_vm0, %v559_v23  ;;  %s563_s16 = scalar_lea.vmem %s2867_s2, %s562_s25  ;;  %s665_s4 = sld [smem:[#allocation6 + %s664_s29]] }
  0x8f   : > { %v881_v24 = vsel %vm874_vm1, %v868_v21, 0.0  ;;  %s568_s22 = scalar_lea.vmem %s2867_s2, %s567_s27  ;;  %v564_v25 = vld [vmem:[%s563_s16] sm:$0x1]  ;;  %s670_s1 = sld [smem:[#allocation6 + %s669_s12]] }
  0x90   : > { %882 = vadd.xlane.f32.xlu1 %v881_v24  ;;  %v569_v26 = vld [vmem:[%s568_s22] sm:$0x1]  ;;  %565 = vst.msk [vmem:[#allocation3 + $0x6] sm:$0x1] %vm534_vm0, %v564_v25  ;;  %s674_s0 = sadd.s32 5, %s2135_s7  ;;  %s679_s6 = sadd.s32 6, %s2135_s7 }
  0x91   : > { %570 = vst.msk [vmem:[#allocation3 + $0x7] sm:$0x1] %vm534_vm0, %v569_v26  ;;  %s675_s19 = sld [smem:[#allocation6 + %s674_s0]]  ;;  %s655_s27 = scalar_lea.vmem %s2867_s2, %s654_s10 }
  0x92   : > { %s680_s25 = sld [smem:[#allocation6 + %s679_s6]]  ;;  %s661_s3 = scalar_lea.vmem %s2867_s2, %s660_s28  ;;  %v656_v27 = vld [vmem:[%s655_s27] sm:$0x1] }
  0x93   : > { %v662_v28 = vld [vmem:[%s661_s3] sm:$0x1]  ;;  %s684_s29 = sadd.s32 7, %s2135_s7  ;;  %s689_s12 = sadd.s32 8, %s2135_s7  ;;  %658 = vst.msk [vmem:[#allocation3 + $0x18] sm:$0x1] %vm534_vm0, %v656_v27 }
  0x94   : > { %663 = vst.msk [vmem:[#allocation3 + $0x19] sm:$0x1] %vm534_vm0, %v662_v28  ;;  %s685_s30 = sld [smem:[#allocation6 + %s684_s29]]  ;;  %s666_s11 = scalar_lea.vmem %s2867_s2, %s665_s4 }
  0x95   : > { %s690_s9 = sld [smem:[#allocation6 + %s689_s12]]  ;;  %s671_s0 = scalar_lea.vmem %s2867_s2, %s670_s1  ;;  %v667_v29 = vld [vmem:[%s666_s11] sm:$0x1] }
  0x96   : > { %v672_v30 = vld [vmem:[%s671_s0] sm:$0x1]  ;;  %s571_s28 = sadd.s32 1, %s2121_s13  ;;  %s577_s7 = sadd.s32 2, %s2121_s13  ;;  %668 = vst.msk [vmem:[#allocation3 + $0x1a] sm:$0x1] %vm534_vm0, %v667_v29 }
  0x97   : > { %673 = vst.msk [vmem:[#allocation3 + $0x1b] sm:$0x1] %vm534_vm0, %v672_v30  ;;  %s676_s4 = scalar_lea.vmem %s2867_s2, %s675_s19  ;;  %s572_s21 = sld [smem:[#allocation6 + %s571_s28]] }
  0x98   : > { %v2278_v31 = vld [vmem:[#allocation3] sm:$0xff]  ;;  %s681_s1 = scalar_lea.vmem %s2867_s2, %s680_s25  ;;  %v677_v33 = vld [vmem:[%s676_s4] sm:$0x1]  ;;  %s578_s24 = sld [smem:[#allocation6 + %s577_s7]] }
  0x99   : > { %v866_v32 = vmul.f32 %v2278_v31, %v2278_v31  ;;  %v682_v34 = vld [vmem:[%s681_s1] sm:$0x1]  ;;  %678 = vst.msk [vmem:[#allocation3 + $0x1c] sm:$0x1] %vm534_vm0, %v677_v33  ;;  %s582_s3 = sadd.s32 3, %s2121_s13  ;;  %s587_s29 = sadd.s32 4, %s2121_s13 }
  0x9a   : > { %683 = vst.msk [vmem:[#allocation3 + $0x1d] sm:$0x1] %vm534_vm0, %v682_v34  ;;  %s686_s25 = scalar_lea.vmem %s2867_s2, %s685_s30  ;;  %s583_s22 = sld [smem:[#allocation6 + %s582_s3]] }
  0x9b   : > { %v875_v35 = vsel %vm874_vm1, %v866_v32, 0.0  ;;  %s691_s11 = scalar_lea.vmem %s2867_s2, %s690_s9  ;;  %v687_v36 = vld [vmem:[%s686_s25] sm:$0x1]  ;;  %s588_s10 = sld [smem:[#allocation6 + %s587_s29]] }
  0x9c   : > { %876 = vadd.xlane.f32.xlu0 %v875_v35  ;;  %v692_v37 = vld [vmem:[%s691_s11] sm:$0x1]  ;;  %688 = vst.msk [vmem:[#allocation3 + $0x1e] sm:$0x1] %vm534_vm0, %v687_v36  ;;  %s592_s0 = sadd.s32 5, %s2121_s13  ;;  %s597_s28 = sadd.s32 6, %s2121_s13 }
  0x9d   : > { %693 = vst.msk [vmem:[#allocation3 + $0x1f] sm:$0x1] %vm534_vm0, %v692_v37  ;;  %s593_s7 = sld [smem:[#allocation6 + %s592_s0]]  ;;  %s573_s9 = scalar_lea.vmem %s2867_s2, %s572_s21 }
  0x9e   : > { %s598_s30 = sld [smem:[#allocation6 + %s597_s28]]  ;;  %s579_s27 = scalar_lea.vmem %s2867_s2, %s578_s24  ;;  %v574_v38 = vld [vmem:[%s573_s9] sm:$0x1] }
  0x9f   : > { %v580_v39 = vld [vmem:[%s579_s27] sm:$0x1]  ;;  %s602_s1 = sadd.s32 7, %s2121_s13  ;;  %s607_s3 = sadd.s32 8, %s2121_s13  ;;  %576 = vst.msk [vmem:[#allocation3 + $0x8] sm:$0x1] %vm534_vm0, %v574_v38 }
  0xa0   : > { %581 = vst.msk [vmem:[#allocation3 + $0x9] sm:$0x1] %vm534_vm0, %v580_v39  ;;  %s603_s29 = sld [smem:[#allocation6 + %s602_s1]]  ;;  %s584_s16 = scalar_lea.vmem %s2867_s2, %s583_s22 }
  0xa1   : > { %s608_s19 = sld [smem:[#allocation6 + %s607_s3]]  ;;  %s589_s11 = scalar_lea.vmem %s2867_s2, %s588_s10  ;;  %v585_v40 = vld [vmem:[%s584_s16] sm:$0x1] }
  0xa2   : > { %v590_v41 = vld [vmem:[%s589_s11] sm:$0x1]  ;;  %s735_s24 = sadd.s32 1, %s2149_s26  ;;  %s741_s13 = sadd.s32 2, %s2149_s26  ;;  %586 = vst.msk [vmem:[#allocation3 + $0xa] sm:$0x1] %vm534_vm0, %v585_v40 }
  0xa3   : > { %591 = vst.msk [vmem:[#allocation3 + $0xb] sm:$0x1] %vm534_vm0, %v590_v41  ;;  %s594_s22 = scalar_lea.vmem %s2867_s2, %s593_s7  ;;  %s736_s9 = sld [smem:[#allocation6 + %s735_s24]] }
  0xa4   : > { %v2323_v42 = vld [vmem:[#allocation3 + $0x18] sm:$0xff]  ;;  %s599_s10 = scalar_lea.vmem %s2867_s2, %s598_s30  ;;  %s742_s4 = sld [smem:[#allocation6 + %s741_s13]] }
  0xa5   : > { %v869_v43 = vmul.f32 %v2323_v42, %v2323_v42  ;;  %v595_v44 = vld [vmem:[%s594_s22] sm:$0x1]  ;;  %s746_s20 = sadd.s32 3, %s2149_s26  ;;  %s751_s27 = sadd.s32 4, %s2149_s26 }
  0xa6   : > { %v600_v45 = vld [vmem:[%s599_s10] sm:$0x1]  ;;  %596 = vst.msk [vmem:[#allocation3 + $0xc] sm:$0x1] %vm534_vm0, %v595_v44  ;;  %s604_s30 = scalar_lea.vmem %s2867_s2, %s603_s29  ;;  %s747_s16 = sld [smem:[#allocation6 + %s746_s20]] }
  0xa7   : > { %601 = vst.msk [vmem:[#allocation3 + $0xd] sm:$0x1] %vm534_vm0, %v600_v45  ;;  %v884_v46 = vsel %vm874_vm1, %v869_v43, 0.0  ;;  %s609_s25 = scalar_lea.vmem %s2867_s2, %s608_s19  ;;  %v605_v47 = vld [vmem:[%s604_s30] sm:$0x1]  ;;  %s752_s18 = sld [smem:[#allocation6 + %s751_s27]] }
  0xa8   : > { %885 = vadd.xlane.f32.xlu1 %v884_v46  ;;  %v610_v48 = vld [vmem:[%s609_s25] sm:$0x1]  ;;  %606 = vst.msk [vmem:[#allocation3 + $0xe] sm:$0x1] %vm534_vm0, %v605_v47  ;;  %s756_s21 = sadd.s32 5, %s2149_s26  ;;  %s761_s11 = sadd.s32 6, %s2149_s26 }
  0xa9   : > { %611 = vst.msk [vmem:[#allocation3 + $0xf] sm:$0x1] %vm534_vm0, %v610_v48  ;;  %s757_s24 = sld [smem:[#allocation6 + %s756_s21]]  ;;  %s737_s19 = scalar_lea.vmem %s2867_s2, %s736_s9 }
  0xaa   : > { %s762_s29 = sld [smem:[#allocation6 + %s761_s11]]  ;;  %s743_s6 = scalar_lea.vmem %s2867_s2, %s742_s4  ;;  %v738_v49 = vld [vmem:[%s737_s19] sm:$0x1] }
  0xab   : > { %v744_v50 = vld [vmem:[%s743_s6] sm:$0x1]  ;;  %s766_s17 = sadd.s32 7, %s2149_s26  ;;  %s771_s10 = sadd.s32 8, %s2149_s26  ;;  %740 = vst.msk [vmem:[#allocation3 + $0x28] sm:$0x1] %vm534_vm0, %v738_v49 }
  0xac   : > { %745 = vst.msk [vmem:[#allocation3 + $0x29] sm:$0x1] %vm534_vm0, %v744_v50  ;;  %s767_s20 = sld [smem:[#allocation6 + %s766_s17]]  ;;  %s748_s30 = scalar_lea.vmem %s2867_s2, %s747_s16 }
  0xad   : > { %s772_s27 = sld [smem:[#allocation6 + %s771_s10]]  ;;  %s753_s12 = scalar_lea.vmem %s2867_s2, %s752_s18  ;;  %v749_v51 = vld [vmem:[%s748_s30] sm:$0x1] }
  0xae   : > { %v754_v52 = vld [vmem:[%s753_s12] sm:$0x1]  ;;  %s694_s4 = sadd.s32 1, %s2142_s15  ;;  %s700_s26 = sadd.s32 2, %s2142_s15  ;;  %750 = vst.msk [vmem:[#allocation3 + $0x2a] sm:$0x1] %vm534_vm0, %v749_v51 }
  0xaf   : > { %755 = vst.msk [vmem:[#allocation3 + $0x2b] sm:$0x1] %vm534_vm0, %v754_v52  ;;  %s758_s16 = scalar_lea.vmem %s2867_s2, %s757_s24  ;;  %s695_s0 = sld [smem:[#allocation6 + %s694_s4]] }
  0xb0   : > { %v2368_v53 = vld [vmem:[#allocation3 + $0x8] sm:$0xff]  ;;  %s763_s18 = scalar_lea.vmem %s2867_s2, %s762_s29  ;;  %v759_v55 = vld [vmem:[%s758_s16] sm:$0x1]  ;;  %s701_s19 = sld [smem:[#allocation6 + %s700_s26]] }
  0xb1   : > { %v867_v54 = vmul.f32 %v2368_v53, %v2368_v53  ;;  %v764_v56 = vld [vmem:[%s763_s18] sm:$0x1]  ;;  %760 = vst.msk [vmem:[#allocation3 + $0x2c] sm:$0x1] %vm534_vm0, %v759_v55  ;;  %s705_s28 = sadd.s32 3, %s2142_s15  ;;  %s710_s22 = sadd.s32 4, %s2142_s15 }
  0xb2   : > { %765 = vst.msk [vmem:[#allocation3 + $0x2d] sm:$0x1] %vm534_vm0, %v764_v56  ;;  %s768_s29 = scalar_lea.vmem %s2867_s2, %s767_s20  ;;  %s706_s1 = sld [smem:[#allocation6 + %s705_s28]] }
  0xb3   : > { %v878_v57 = vsel %vm874_vm1, %v867_v54, 0.0  ;;  %s773_s7 = scalar_lea.vmem %s2867_s2, %s772_s27  ;;  %v769_v58 = vld [vmem:[%s768_s29] sm:$0x1]  ;;  %s711_s30 = sld [smem:[#allocation6 + %s710_s22]] }
  0xb4   : > { %879 = vadd.xlane.f32.xlu0 %v878_v57  ;;  %v774_v59 = vld [vmem:[%s773_s7] sm:$0x1]  ;;  %770 = vst.msk [vmem:[#allocation3 + $0x2e] sm:$0x1] %vm534_vm0, %v769_v58  ;;  %s715_s3 = sadd.s32 5, %s2142_s15  ;;  %s720_s9 = sadd.s32 6, %s2142_s15 }
  0xb5   : > { %775 = vst.msk [vmem:[#allocation3 + $0x2f] sm:$0x1] %vm534_vm0, %v774_v59  ;;  %s716_s12 = sld [smem:[#allocation6 + %s715_s3]]  ;;  %s696_s27 = scalar_lea.vmem %s2867_s2, %s695_s0 }
  0xb6   : > { %s721_s20 = sld [smem:[#allocation6 + %s720_s9]]  ;;  %s702_s16 = scalar_lea.vmem %s2867_s2, %s701_s19  ;;  %v697_v60 = vld [vmem:[%s696_s27] sm:$0x1] }
  0xb7   : > { %v703_v61 = vld [vmem:[%s702_s16] sm:$0x1]  ;;  %s725_s11 = sadd.s32 7, %s2142_s15  ;;  %s730_s13 = sadd.s32 8, %s2142_s15  ;;  %699 = vst.msk [vmem:[#allocation3 + $0x20] sm:$0x1] %vm534_vm0, %v697_v60 }
  0xb8   : > { %704 = vst.msk [vmem:[#allocation3 + $0x21] sm:$0x1] %vm534_vm0, %v703_v61  ;;  %s726_s18 = sld [smem:[#allocation6 + %s725_s11]]  ;;  %s707_s6 = scalar_lea.vmem %s2867_s2, %s706_s1 }
  0xb9   : > { %s731_s28 = sld [smem:[#allocation6 + %s730_s13]]  ;;  %s712_s17 = scalar_lea.vmem %s2867_s2, %s711_s30  ;;  %v708_v62 = vld [vmem:[%s707_s6] sm:$0x1] }
  0xba   : > { %v713_v63 = vld [vmem:[%s712_s17] sm:$0x1]  ;;  %s817_s19 = sadd.s32 1, %s2163_s8  ;;  %s823_s15 = sadd.s32 2, %s2163_s8  ;;  %709 = vst.msk [vmem:[#allocation3 + $0x22] sm:$0x1] %vm534_vm0, %v708_v62 }
  0xbb   : > { %714 = vst.msk [vmem:[#allocation3 + $0x23] sm:$0x1] %vm534_vm0, %v713_v63  ;;  %s717_s1 = scalar_lea.vmem %s2867_s2, %s716_s12  ;;  %s818_s4 = sld [smem:[#allocation6 + %s817_s19]] }
  0xbc   : > { %v2413_v0 = vld [vmem:[#allocation3 + $0x28] sm:$0xff]  ;;  %s722_s30 = scalar_lea.vmem %s2867_s2, %s721_s20  ;;  %v718_v2 = vld [vmem:[%s717_s1] sm:$0x1]  ;;  %s824_s26 = sld [smem:[#allocation6 + %s823_s15]] }
  0xbd   : > { %v871_v1 = vmul.f32 %v2413_v0, %v2413_v0  ;;  %v723_v3 = vld [vmem:[%s722_s30] sm:$0x1]  ;;  %719 = vst.msk [vmem:[#allocation3 + $0x24] sm:$0x1] %vm534_vm0, %v718_v2  ;;  %s828_s27 = sadd.s32 3, %s2163_s8  ;;  %s833_s25 = sadd.s32 4, %s2163_s8 }
  0xbe   : > { %724 = vst.msk [vmem:[#allocation3 + $0x25] sm:$0x1] %vm534_vm0, %v723_v3  ;;  %s727_s20 = scalar_lea.vmem %s2867_s2, %s726_s18  ;;  %s829_s22 = sld [smem:[#allocation6 + %s828_s27]] }
  0xbf   : > { %v890_v4 = vsel %vm874_vm1, %v871_v1, 0.0  ;;  %s732_s13 = scalar_lea.vmem %s2867_s2, %s731_s28  ;;  %v728_v5 = vld [vmem:[%s727_s20] sm:$0x1]  ;;  %s834_s24 = sld [smem:[#allocation6 + %s833_s25]] }
  0xc0   : > { %891 = vadd.xlane.f32.xlu1 %v890_v4  ;;  %v733_v6 = vld [vmem:[%s732_s13] sm:$0x1]  ;;  %729 = vst.msk [vmem:[#allocation3 + $0x26] sm:$0x1] %vm534_vm0, %v728_v5  ;;  %s838_s6 = sadd.s32 5, %s2163_s8  ;;  %s843_s29 = sadd.s32 6, %s2163_s8 }
  0xc1   : > { %734 = vst.msk [vmem:[#allocation3 + $0x27] sm:$0x1] %vm534_vm0, %v733_v6  ;;  %s839_s0 = sld [smem:[#allocation6 + %s838_s6]]  ;;  %s819_s28 = scalar_lea.vmem %s2867_s2, %s818_s4 }
  0xc2   : > { %s844_s18 = sld [smem:[#allocation6 + %s843_s29]]  ;;  %s825_s7 = scalar_lea.vmem %s2867_s2, %s824_s26  ;;  %v820_v7 = vld [vmem:[%s819_s28] sm:$0x1] }
  0xc3   : > { %v826_v8 = vld [vmem:[%s825_s7] sm:$0x1]  ;;  %s848_s1 = sadd.s32 7, %s2163_s8  ;;  %s853_s3 = sadd.s32 8, %s2163_s8  ;;  %822 = vst.msk [vmem:[#allocation3 + $0x38] sm:$0x1] %vm534_vm0, %v820_v7 }
  0xc4   : > { %827 = vst.msk [vmem:[#allocation3 + $0x39] sm:$0x1] %vm534_vm0, %v826_v8  ;;  %s849_s9 = sld [smem:[#allocation6 + %s848_s1]]  ;;  %s830_s12 = scalar_lea.vmem %s2867_s2, %s829_s22 }
  0xc5   : > { %s854_s30 = sld [smem:[#allocation6 + %s853_s3]]  ;;  %s835_s20 = scalar_lea.vmem %s2867_s2, %s834_s24  ;;  %v831_v9 = vld [vmem:[%s830_s12] sm:$0x1] }
  0xc6   : > { %v836_v10 = vld [vmem:[%s835_s20] sm:$0x1]  ;;  %s776_s26 = sadd.s32 1, %s2156_s14  ;;  %s782_s8 = sadd.s32 2, %s2156_s14  ;;  %832 = vst.msk [vmem:[#allocation3 + $0x3a] sm:$0x1] %vm534_vm0, %v831_v9 }
  0xc7   : > { %837 = vst.msk [vmem:[#allocation3 + $0x3b] sm:$0x1] %vm534_vm0, %v836_v10  ;;  %s840_s13 = scalar_lea.vmem %s2867_s2, %s839_s0  ;;  %s777_s29 = sld [smem:[#allocation6 + %s776_s26]] }
  0xc8   : > { %v2458_v11 = vld [vmem:[#allocation3 + $0x20] sm:$0xff]  ;;  %s845_s24 = scalar_lea.vmem %s2867_s2, %s844_s18  ;;  %v841_v13 = vld [vmem:[%s840_s13] sm:$0x1]  ;;  %s783_s17 = sld [smem:[#allocation6 + %s782_s8]] }
  0xc9   : > { %v870_v12 = vmul.f32 %v2458_v11, %v2458_v11  ;;  %v846_v14 = vld [vmem:[%s845_s24] sm:$0x1]  ;;  %842 = vst.msk [vmem:[#allocation3 + $0x3c] sm:$0x1] %vm534_vm0, %v841_v13  ;;  %s787_s19 = sadd.s32 3, %s2156_s14  ;;  %s792_s28 = sadd.s32 4, %s2156_s14 }
  0xca   : > { %847 = vst.msk [vmem:[#allocation3 + $0x3d] sm:$0x1] %vm534_vm0, %v846_v14  ;;  %s850_s18 = scalar_lea.vmem %s2867_s2, %s849_s9  ;;  %s788_s3 = sld [smem:[#allocation6 + %s787_s19]] }
  0xcb   : > { %v887_v15 = vsel %vm874_vm1, %v870_v12, 0.0  ;;  %s855_s1 = scalar_lea.vmem %s2867_s2, %s854_s30  ;;  %v851_v16 = vld [vmem:[%s850_s18] sm:$0x1]  ;;  %s793_s27 = sld [smem:[#allocation6 + %s792_s28]] }
  0xcc   : > { %888 = vadd.xlane.f32.xlu0 %v887_v15  ;;  %v856_v17 = vld [vmem:[%s855_s1] sm:$0x1]  ;;  %852 = vst.msk [vmem:[#allocation3 + $0x3e] sm:$0x1] %vm534_vm0, %v851_v16  ;;  %s797_s25 = sadd.s32 5, %s2156_s14  ;;  %s802_s12 = sadd.s32 6, %s2156_s14 }
  0xcd   : > { %857 = vst.msk [vmem:[#allocation3 + $0x3f] sm:$0x1] %vm534_vm0, %v856_v17  ;;  %s798_s21 = sld [smem:[#allocation6 + %s797_s25]]  ;;  %s778_s26 = scalar_lea.vmem %s2867_s2, %s777_s29 }
  0xce   : > { %s803_s4 = sld [smem:[#allocation6 + %s802_s12]]  ;;  %s784_s16 = scalar_lea.vmem %s2867_s2, %s783_s17  ;;  %v779_v18 = vld [vmem:[%s778_s26] sm:$0x1] }
  0xcf   : > { %v785_v19 = vld [vmem:[%s784_s16] sm:$0x1]  ;;  %s807_s11 = sadd.s32 7, %s2156_s14  ;;  %s812_s13 = sadd.s32 8, %s2156_s14  ;;  %781 = vst.msk [vmem:[#allocation3 + $0x30] sm:$0x1] %vm534_vm0, %v779_v18 }
  0xd0   : > { %786 = vst.msk [vmem:[#allocation3 + $0x31] sm:$0x1] %vm534_vm0, %v785_v19  ;;  %s808_s22 = sld [smem:[#allocation6 + %s807_s11]]  ;;  %s789_s28 = scalar_lea.vmem %s2867_s2, %s788_s3 }
  0xd1   : > { %s813_s6 = sld [smem:[#allocation6 + %s812_s13]]  ;;  %s794_s15 = scalar_lea.vmem %s2867_s2, %s793_s27  ;;  %v790_v21 = vld [vmem:[%s789_s28] sm:$0x1] }
  0xd2   : > { %v795_v22 = vld [vmem:[%s794_s15] sm:$0x1]  ;;  %791 = vst.msk [vmem:[#allocation3 + $0x32] sm:$0x1] %vm534_vm0, %v790_v21 }
  0xd3   : > { %796 = vst.msk [vmem:[#allocation3 + $0x33] sm:$0x1] %vm534_vm0, %v795_v22  ;;  %s799_s18 = scalar_lea.vmem %s2867_s2, %s798_s21 }
  0xd4   : > { %v2501_v23 = vld [vmem:[#allocation3 + $0x38] sm:$0xff]  ;;  %s804_s1 = scalar_lea.vmem %s2867_s2, %s803_s4 }
  0xd5   : > { %v873_v24 = vmul.f32 %v2501_v23, %v2501_v23  ;;  %v800_v25 = vld [vmem:[%s799_s18] sm:$0x1] }
  0xd6   : > { %v805_v26 = vld [vmem:[%s804_s1] sm:$0x1]  ;;  %801 = vst.msk [vmem:[#allocation3 + $0x34] sm:$0x1] %vm534_vm0, %v800_v25  ;;  %s809_s25 = scalar_lea.vmem %s2867_s2, %s808_s22 }
  0xd7   : > { %806 = vst.msk [vmem:[#allocation3 + $0x35] sm:$0x1] %vm534_vm0, %v805_v26  ;;  %v896_v27 = vsel %vm874_vm1, %v873_v24, 0.0  ;;  %s814_s9 = scalar_lea.vmem %s2867_s2, %s813_s6  ;;  %v810_v28 = vld [vmem:[%s809_s25] sm:$0x1] }
  0xd8   : > { %897 = vadd.xlane.f32.xlu1 %v896_v27  ;;  %v815_v29 = vld [vmem:[%s814_s9] sm:$0x1]  ;;  %811 = vst.msk [vmem:[#allocation3 + $0x36] sm:$0x1] %vm534_vm0, %v810_v28 }
  0xd9   : > { %816 = vst.msk [vmem:[#allocation3 + $0x37] sm:$0x1] %vm534_vm0, %v815_v29 }
  0xe0   : > { %v864_v30 = vld [vmem:[#allocation3 + $0x30] sm:$0xff] }
  0xe1   : > { %v872_v32 = vmul.f32 %v864_v30, %v864_v30 }
  0xe3   : > { %v893_v33 = vsel %vm874_vm1, %v872_v32, 0.0 }
  0xe4   : > { %894 = vadd.xlane.f32.xlu0 %v893_v33 }
 0x11d   : > { %v2525_v34 = vpop.xlane.xlu1 %882 }
 0x129   : > { %v2527_v35 = vpop.xlane.xlu0 %876 }
 0x135   : > { %v2529_v36 = vpop.xlane.xlu1 %885 }
 0x141   : > { %v2531_v37 = vpop.xlane.xlu0 %879 }
 0x14d   : > { %v2533_v38 = vpop.xlane.xlu1 %891 }
 0x159   : > { %v2535_v39 = vpop.xlane.xlu0 %888 }
 0x165   : > { %v2537_v40 = vpop.xlane.xlu1 %897 }
 0x171   : > { %v2539_v41 = vpop.xlane.xlu0 %894 }
 0x172   : > { %2001 = dma.done.wait [#allocation4], 128 }
 0x173   : > { %2002 = vsyncadd [#allocation4], 4294967168  ;;  %v908_v43 = vlaneseq  ;;  %v2028_v44 = vmov 1966171168   ;;  %v902_v49 = vld [vmem:[#allocation2] sm:$0xff]  ;;  %vm1348_vm2 = vcmask 1041409  }
 0x174   : > { %v906_v45 = vunpack.c.l.s4 %v2028_v44  ;;  %v904_v52 = vcombine.high %v902_v49, %v902_v49  ;;  %vm1350_vm3 = vcmask 1042434   ;;  %vm1352_vm4 = vcmask 1043459   ;;  %s2901_s4 = scalar_lea.vmem [#allocation9], %s2109_s5  ;;  %s1771_s26 = sshll.u32 %s2081_s23, 4 }
 0x175   : > { %v2542_v46 = vshrl.u32 %v908_v43, 7  ;;  %vm1354_vm5 = vcmask 1044484   ;;  %vm1356_vm6 = vcmask 1045509   ;;  %vm1358_vm7 = vcmask 1046534   ;;  %s2903_s16 = sld [smem:[#allocation33_spill]]  ;;  %s2904_s13 = smov %s2901_s4 }
 0x176   : > { %v907_v47 = vunpack.c.0.s8 %v906_v45  ;;  %vm1360_vm8 = vcmask 1047559   ;;  %vm1364_vm10 = vcmask 64512   ;;  %vm1472_vm11 = vcmask 7168   ;;  %s1523_s22 = sshll.u32 %s2904_s13, 4  ;;  %s1498_s6 = scalar_lea.sflag [#allocation10], %s2109_s5  ;;  %s1524_s22 = int_to_ptr.vmem [resolvable:$true] %s1523_s22 }
 0x177   : > { %v2546_v51 = vsub.s32 0, %v2542_v46  ;;  %v2573_v25 = vsub.s32 1, %v2542_v46  ;;  %s1927_s24 = scalar_lea.vmem %s1524_s22, 16  ;;  %s2030_s19 = smov [#allocation9]  }
 0x178   : > { %v910_v48 = vsub.s32 %v907_v47, %v2542_v46  ;;  %p1928_p1 = scmp.ne.s32.totalorder %s1524_s22, %s1927_s24  ;;  %s1931_s28 = sshll.u32 %s2030_s19, 4  ;;  %s1932_s28 = int_to_ptr.vmem [resolvable:$false] %s1931_s28 }
 0x179   : > { %s1933_s0 = scalar_lea.vmem %s1932_s28, 32  ;;  %p1934_p4 = scmp.lt.s32.totalorder %s1524_s22, %s1932_s28 }
 0x17a   : > { %v911_v50 = vrot.slane %v902_v49, %v910_v48  ;;  %v918_v56 = vrot.slane %v904_v52, %v910_v48  ;;  %p1929_p2 = pnand %p1928_p1, %p2098_p10  ;;  %p1935_p5 = scmp.lt.s32.totalorder %s1933_s0, %s1927_s24 }
 0x17b   : > { %s2791_s11 = scalar_lea.hbm %s2903_s16, %s1771_s26 }
 0x17c   : > { %v927_v54 = vrot.slane %v911_v50, %v910_v48  ;;  %v919_v55 = vcombine.high %v911_v50, %v911_v50  ;;  %v934_v60 = vrot.slane %v918_v56, %v910_v48  ;;  %v920_v61 = vcombine.high %v918_v56, %v918_v56  ;;  %p1930_p3 = pneg %p1929_p2  ;;  %p1936_p6 = por %p1935_p5, %p1934_p4 }
 0x17e   : > { %v956_v57 = vrot.slane %v927_v54, %v2546_v51  ;;  %v949_v58 = vcombine.high %v927_v54, %v927_v54  ;;  %v941_v59 = vrot.slane %v919_v55, %v910_v48  ;;  %v972_v3 = vrot.slane %v934_v60, %v2546_v51  ;;  %p1937_p7 = pnand %p1936_p6, %p1930_p3 }
 0x17f   : > { %v948_v4 = vrot.slane %v920_v61, %v910_v48  ;;  %v950_v5 = vcombine.high %v934_v60, %v934_v60 }
 0x180   : > { %v993_v62 = vmul.f32 %v956_v57, %v2278_v31  ;;  %v964_v63 = vrot.slane %v949_v58, %v2546_v51  ;;  %v960_v1 = vrot.slane %v941_v59, %v2546_v51  ;;  %v951_v2 = vcombine.high %v941_v59, %v941_v59 }
 0x181   : > { %v997_v31 = vmul.f32 %v972_v3, %v2458_v11  ;;  %v976_v10 = vrot.slane %v948_v4, %v2546_v51  ;;  %v952_v12 = vcombine.high %v948_v4, %v948_v4  ;;  %v980_v16 = vrot.slane %v950_v5, %v2546_v51 }
 0x182   : > { %v1001_v6 = vsel %vm874_vm1, %v993_v62, 0.0  ;;  %v995_v7 = vmul.f32 %v964_v63, %v2233_v20  ;;  %v994_v8 = vmul.f32 %v960_v1, %v2368_v53  ;;  %v968_v9 = vrot.slane %v951_v2, %v2546_v51 }
 0x183   : > { %1002 = vadd.xlane.f32.xlu0 %v1001_v6  ;;  %v998_v53 = vmul.f32 %v976_v10, %v2413_v0  ;;  %v984_v17 = vrot.slane %v952_v12, %v2546_v51  ;;  %v1013_v11 = vsel %vm874_vm1, %v997_v31, 0.0  ;;  %v999_v18 = vmul.f32 %v980_v16, %v864_v30 }
 0x184   : > { %v1007_v13 = vsel %vm874_vm1, %v995_v7, 0.0  ;;  %v1004_v14 = vsel %vm874_vm1, %v994_v8, 0.0  ;;  %v996_v15 = vmul.f32 %v968_v9, %v2323_v42  ;;  %v1413_v0 = vmul.f32 %v902_v49, %v902_v49 }
 0x185   : > { %1008 = vadd.xlane.f32.xlu1 %v1007_v13  ;;  %v1016_v19 = vsel %vm874_vm1, %v998_v53, 0.0  ;;  %v1000_v21 = vmul.f32 %v984_v17, %v2501_v23  ;;  %v1019_v42 = vsel %vm874_vm1, %v999_v18, 0.0  ;;  %v2592_v59 = vand.u32 127, %v908_v43 }
 0x186   : > { %v1010_v20 = vsel %vm874_vm1, %v996_v15, 0.0  ;;  %v1414_v24 = vsel %vm874_vm1, %v1413_v0, 0.0 }
 0x187   : > { %1005 = vadd.xlane.f32.xlu0 %v1004_v14  ;;  %v1022_v22 = vsel %vm874_vm1, %v1000_v21, 0.0  ;;  %v2600_v43 = vsub.s32 %v2592_v59, %v2542_v46  ;;  %vm1307_vm9 = vcmp.ge.s32.totalorder %v2592_v59, 2 }
 0x189   : > { %1011 = vadd.xlane.f32.xlu1 %v1010_v20 }
 0x18b   : > { %1014 = vadd.xlane.f32.xlu0 %v1013_v11 }
 0x18d   : > { %1017 = vadd.xlane.f32.xlu1 %v1016_v19 }
 0x18f   : > { %1020 = vadd.xlane.f32.xlu0 %v1019_v42 }
 0x191   : > { %1023 = vadd.xlane.f32.xlu1 %v1022_v22 }
 0x195   : > { %1415 = vadd.xlane.f32.xlu1 %v1414_v24 }
 0x210   : > { %v1003_v26 = vpop.xlane.xlu0 %1002 }
 0x211   : > { %v1076_v27 = vrot.slane %v1003_v26, %v2546_v51  ;;  %v1188_v23 = vrot.slane %v1003_v26, %v2573_v25  ;;  %v1033_v47 = vrot.slane %v1003_v26, 1 }
 0x212   : > { %v1009_v28 = vpop.xlane.xlu1 %1008 }
 0x213   : > { %v2577_v29 = vsub.f32 %v1003_v26, %v1076_v27  ;;  %v2579_v30 = vsub.f32 %v1003_v26, %v1188_v23  ;;  %v1035_v32 = vrot.slane %v1009_v28, 1  ;;  %v1084_v33 = vrot.slane %v1009_v28, %v2546_v51 }
 0x214   : > { %v1196_v44 = vrot.slane %v1009_v28, %v2573_v25  ;;  %v1006_v45 = vpop.xlane.xlu0 %1005  ;;  %v1049_v60 = vsub.f32 %v1003_v26, %v1033_v47 }
 0x215   : > { %v1121_v48 = vand.u32 2147483647, %v2577_v29  ;;  %v1233_v49 = vand.u32 2147483647, %v2579_v30  ;;  %v2585_v50 = vsub.f32 %v1009_v28, %v1084_v33  ;;  %v1080_v55 = vrot.slane %v1006_v45, %v2546_v51 }
 0x216   : > { %v2587_v52 = vsub.f32 %v1009_v28, %v1196_v44  ;;  %v1051_v57 = vsub.f32 %v1009_v28, %v1035_v32  ;;  %v1034_v2 = vrot.slane %v1006_v45, 1  ;;  %v1192_v5 = vrot.slane %v1006_v45, %v2573_v25  ;;  %v1012_v12 = vpop.xlane.xlu1 %1011 }
 0x217   : > { %v1129_v54 = vsub.f32 0.0, %v1121_v48  ;;  %v1241_v56 = vsub.f32 0.0, %v1233_v49  ;;  %v1123_v58 = vand.u32 2147483647, %v2585_v50  ;;  %v2595_v4 = vsub.f32 %v1006_v45, %v1080_v55 }
 0x218   : > { %v1235_v62 = vand.u32 2147483647, %v2587_v52  ;;  %v1059_v6 = vand.u32 2147483647, %v1051_v57  ;;  %v1057_v8 = vand.u32 2147483647, %v1049_v60  ;;  %v2603_v10 = vsub.f32 %v1006_v45, %v1192_v5  ;;  %v2605_v14 = vpop.xlane.xlu0 %1014 }
 0x219   : > { %v1137_v61 = vmul.f32 1.442695, %v1129_v54  ;;  %v1249_v63 = vmul.f32 1.442695, %v1241_v56  ;;  %v1131_v1 = vsub.f32 0.0, %v1123_v58  ;;  %v1050_v13 = vsub.f32 %v1006_v45, %v1034_v2 }
 0x21a   : > { %v1243_v3 = vsub.f32 0.0, %v1235_v62  ;;  %v1122_v31 = vand.u32 2147483647, %v2595_v4  ;;  %v1234_v16 = vand.u32 2147483647, %v2603_v10  ;;  %v1067_v46 = vmin.f32 %v1059_v6, 0.5 }
 0x21b   : > { %1847 = vpow2.f32 %v1137_v61  ;;  %v1141_v7 = vmul.f32 1.442695, %v1131_v1  ;;  %v1088_v53 = vrot.slane %v1012_v12, %v2546_v51  ;;  %v1200_v17 = vrot.slane %v1012_v12, %v2573_v25 }
 0x21c   : > { %1849 = vpow2.f32 %v1249_v63  ;;  %v1253_v9 = vmul.f32 1.442695, %v1243_v3  ;;  %v1130_v15 = vsub.f32 0.0, %v1122_v31  ;;  %v1065_v18 = vmin.f32 %v1057_v8, 0.5  ;;  %v2638_v8 = vpop.xlane.xlu1 %1017 }
 0x21d   : > { %1851 = vpow2.f32 %v1141_v7  ;;  %v1242_v21 = vsub.f32 0.0, %v1234_v16  ;;  %v1092_v42 = vrot.slane %v2605_v14, %v2546_v51  ;;  %v1113_v22 = vmax.f32 %v2577_v29, 0.0 }
 0x21e   : > { %1853 = vpow2.f32 %v1253_v9  ;;  %v1139_v19 = vmul.f32 1.442695, %v1130_v15  ;;  %v1058_v0 = vand.u32 2147483647, %v1050_v13  ;;  %v2617_v24 = vsub.f32 %v1012_v12, %v1088_v53 }
 0x21f   : > { %v2619_v26 = vsub.f32 %v1012_v12, %v1200_v17  ;;  %v1225_v27 = vmax.f32 %v2579_v30, 0.0  ;;  %v1251_v23 = vmul.f32 1.442695, %v1242_v21  ;;  %v2623_v28 = vsub.f32 %v2605_v14, %v1092_v42  ;;  %v2646_v17 = vpop.xlane.xlu0 %1020 }
 0x220   : > { %1855 = vpow2.f32 %v1139_v19  ;;  %v1115_v32 = vmax.f32 %v2585_v50, 0.0  ;;  %v2626_v33 = vmul.f32 2.0, %v1067_v46  ;;  %v1036_v44 = vrot.slane %v1012_v12, 1 }
 0x221   : > { %v1124_v45 = vand.u32 2147483647, %v2617_v24  ;;  %v2629_v48 = vmul.f32 2.0, %v1065_v18  ;;  %1857 = vpow2.f32 %v1251_v23  ;;  %v1236_v54 = vand.u32 2147483647, %v2619_v26 }
 0x222   : > { %v1066_v57 = vmin.f32 %v1058_v0, 0.5  ;;  %v1125_v60 = vand.u32 2147483647, %v2623_v28  ;;  %v1114_v62 = vmax.f32 %v2595_v4, 0.0  ;;  %v1204_v1 = vrot.slane %v2605_v14, %v2573_v25 }
 0x223   : > { %v1132_v58 = vsub.f32 0.0, %v1124_v45  ;;  %v1244_v63 = vsub.f32 0.0, %v1236_v54  ;;  %v1390_v3 = vrot.slane %v2626_v33, 6  ;;  %v1052_v5 = vsub.f32 %v1012_v12, %v1036_v44 }
 0x224   : > { %v1133_v7 = vsub.f32 0.0, %v1125_v60  ;;  %v2641_v15 = vsub.f32 %v2605_v14, %v1204_v1  ;;  %v1226_v16 = vmax.f32 %v2603_v10, 0.0  ;;  %v2644_v46 = vmul.f32 2.0, %v1066_v57 }
 0x225   : > { %v1848_v47 = vpop.eup %1847  ;;  %v1143_v6 = vmul.f32 1.442695, %v1132_v58  ;;  %v1255_v13 = vmul.f32 1.442695, %v1244_v63  ;;  %v1096_v19 = vrot.slane %v2638_v8, %v2546_v51  ;;  %v1060_v21 = vand.u32 2147483647, %v1052_v5  ;;  %v2668_v63 = vpop.xlane.xlu1 %1023 }
 0x226   : > { %v1850_v55 = vpop.eup %1849  ;;  %v1153_v56 = vadd.f32 1.0, %v1848_v47  ;;  %v1145_v53 = vmul.f32 1.442695, %v1133_v7  ;;  %v1237_v18 = vand.u32 2147483647, %v2641_v15  ;;  %v1037_v42 = vrot.slane %v2605_v14, 1 }
 0x227   : > { %v1265_v61 = vadd.f32 1.0, %v1850_v55  ;;  %v1852_v2 = vpop.eup %1851  ;;  %v1208_v0 = vrot.slane %v2638_v8, %v2573_v25  ;;  %v2655_v45 = vsub.f32 %v2638_v8, %v1096_v19  ;;  %v1100_v47 = vrot.slane %v2646_v17, %v2546_v51 }
 0x228   : > { %v1854_v9 = vpop.eup %1853  ;;  %1859 = vlog2.f32 %v1153_v56  ;;  %v1155_v31 = vadd.f32 1.0, %v1852_v2  ;;  %v1245_v44 = vsub.f32 0.0, %v1237_v18  ;;  %v1212_v56 = vrot.slane %v2646_v17, %v2573_v25 }
 0x229   : > { %1861 = vpow2.f32 %v1143_v6  ;;  %v1267_v12 = vadd.f32 1.0, %v1854_v9  ;;  %v2660_v55 = vsub.f32 %v2638_v8, %v1208_v0  ;;  %v1126_v60 = vand.u32 2147483647, %v2655_v45 }
 0x22a   : > { %1863 = vlog2.f32 %v1265_v61  ;;  %v1856_v23 = vpop.eup %1855  ;;  %v1257_v58 = vmul.f32 1.442695, %v1245_v44  ;;  %v2666_v61 = vsub.f32 %v2646_v17, %v1100_v47  ;;  %v1053_v2 = vsub.f32 %v2605_v14, %v1037_v42 }
 0x22b   : > { %1865 = vlog2.f32 %v1155_v31  ;;  %v1154_v54 = vadd.f32 1.0, %v1856_v23  ;;  %v1858_v57 = vpop.eup %1857  ;;  %v1238_v5 = vand.u32 2147483647, %v2660_v55  ;;  %v1068_v6 = vmin.f32 %v1060_v21, 0.5 }
 0x22c   : > { %1867 = vpow2.f32 %v1255_v13  ;;  %v1266_v1 = vadd.f32 1.0, %v1858_v57  ;;  %v1134_v7 = vsub.f32 0.0, %v1126_v60  ;;  %v1127_v9 = vand.u32 2147483647, %v2666_v61 }
 0x22d   : > { %1869 = vpow2.f32 %v1145_v53  ;;  %v1246_v31 = vsub.f32 0.0, %v1238_v5  ;;  %v2674_v13 = vsub.f32 %v2646_v17, %v1212_v56  ;;  %v1104_v53 = vrot.slane %v2668_v63, %v2546_v51 }
 0x22e   : > { %1871 = vlog2.f32 %v1267_v12  ;;  %v1388_v18 = vrot.slane %v2644_v46, 7  ;;  %v1147_v19 = vmul.f32 1.442695, %v1134_v7  ;;  %v1135_v14 = vsub.f32 0.0, %v1127_v9 }
 0x22f   : > { %1873 = vlog2.f32 %v1154_v54  ;;  %v1216_v21 = vrot.slane %v2668_v63, %v2573_v25  ;;  %v1061_v23 = vand.u32 2147483647, %v1053_v2  ;;  %v1259_v44 = vmul.f32 1.442695, %v1246_v31 }
 0x230   : > { %1875 = vpow2.f32 %v1257_v58  ;;  %v2683_v47 = vsub.f32 %v2668_v63, %v1104_v53  ;;  %v1149_v57 = vmul.f32 1.442695, %v1135_v14  ;;  %v2686_v60 = vmul.f32 2.0, %v1068_v6 }
 0x231   : > { %1877 = vlog2.f32 %v1266_v1  ;;  %v1239_v25 = vand.u32 2147483647, %v2674_v13  ;;  %v1038_v5 = vrot.slane %v2638_v8, 1  ;;  %v2693_v9 = vsub.f32 %v2668_v63, %v1216_v21 }
 0x232   : > { %v1860_v12 = vpop.eup %1859  ;;  %1879 = vpow2.f32 %v1147_v19  ;;  %v1128_v7 = vand.u32 2147483647, %v2683_v47  ;;  %v1069_v6 = vmin.f32 %v1061_v23, 0.5  ;;  %v1039_v51 = vrot.slane %v2646_v17, 1 }
 0x233   : > { %v1862_v42 = vpop.eup %1861  ;;  %1881 = vpow2.f32 %v1259_v44  ;;  %v1162_v53 = vmul.f32 0.6931472, %v1860_v12  ;;  %v1247_v11 = vsub.f32 0.0, %v1239_v25  ;;  %v1240_v21 = vand.u32 2147483647, %v2693_v9 }
 0x234   : > { %v1864_v54 = vpop.eup %1863  ;;  %v1156_v56 = vadd.f32 1.0, %v1862_v42  ;;  %v1136_v20 = vsub.f32 0.0, %v1128_v7  ;;  %v1054_v23 = vsub.f32 %v2638_v8, %v1038_v5  ;;  %v1040_v8 = vrot.slane %v2668_v63, 1 }
 0x235   : > { %v1866_v58 = vpop.eup %1865  ;;  %v1274_v42 = vmul.f32 0.6931472, %v1864_v54  ;;  %v1177_v25 = vadd.f32 %v1162_v53, %v1113_v22  ;;  %v1389_v4 = vsel %vm1348_vm2, %v1388_v18, %v2629_v48  ;;  %v2895_v18 = vmax.f32 %v2587_v52, 0.0 }
 0x236   : > { %v1868_v2 = vpop.eup %1867  ;;  %1883 = vlog2.f32 %v1156_v56  ;;  %v1392_v56 = vrot.slane %v2686_v60, 5  ;;  %v1151_v7 = vmul.f32 1.442695, %v1136_v20  ;;  %v1062_v30 = vand.u32 2147483647, %v1054_v23 }
 0x237   : > { %v1870_v31 = vpop.eup %1869  ;;  %v1268_v19 = vadd.f32 1.0, %v1868_v2  ;;  %1885 = vpow2.f32 %v1149_v57  ;;  %v1261_v57 = vmul.f32 1.442695, %v1247_v11  ;;  %v1289_v60 = vadd.f32 %v1274_v42, %v1225_v27 }
 0x238   : > { %v1872_v14 = vpop.eup %1871  ;;  %v1157_v44 = vadd.f32 1.0, %v1870_v31  ;;  %v1248_v31 = vsub.f32 0.0, %v1240_v21  ;;  %v1055_v11 = vsub.f32 %v2646_v17, %v1039_v51  ;;  %v1070_v51 = vmin.f32 %v1062_v30, 0.5 }
 0x239   : > { %v1874_v1 = vpop.eup %1873  ;;  %1887 = vlog2.f32 %v1268_v19  ;;  %v1166_v19 = vmul.f32 0.6931472, %v1866_v58  ;;  %v1278_v29 = vmul.f32 0.6931472, %v1872_v14  ;;  %v1376_v21 = vmul.f32 2.0, %v1069_v6 }
 0x23a   : > { %v1876_v0 = vpop.eup %1875  ;;  %v1164_v12 = vmul.f32 0.6931472, %v1874_v1  ;;  %1889 = vlog2.f32 %v1157_v44  ;;  %v1263_v1 = vmul.f32 1.442695, %v1248_v31  ;;  %v1063_v58 = vand.u32 2147483647, %v1055_v11 }
 0x23b   : > { %v1878_v54 = vpop.eup %1877  ;;  %v1269_v2 = vadd.f32 1.0, %v1876_v0  ;;  %1891 = vpow2.f32 %v1261_v57  ;;  %v1056_v0 = vsub.f32 %v2668_v63, %v1040_v8  ;;  %v1377_v23 = vmul.f32 2.0, %v1070_v51 }
 0x23c   : > { %v1276_v49 = vmul.f32 0.6931472, %v1878_v54  ;;  %v1880_v5 = vpop.eup %1879  ;;  %v1178_v20 = vadd.f32 %v1164_v12, %v1114_v62  ;;  %v1071_v44 = vmin.f32 %v1063_v58, 0.5  ;;  %v1179_v10 = vadd.f32 %v1166_v19, %v1115_v32 }
 0x23d   : > { %1893 = vlog2.f32 %v1269_v2  ;;  %v1882_v22 = vpop.eup %1881  ;;  %v1158_v27 = vadd.f32 1.0, %v1880_v5  ;;  %v1064_v14 = vand.u32 2147483647, %v1056_v0  ;;  %v1391_v46 = vsel %vm1350_vm3, %v1390_v3, %v1389_v4 }
 0x23e   : > { %1895 = vpow2.f32 %v1151_v7  ;;  %v1290_v42 = vadd.f32 %v1276_v49, %v1226_v16  ;;  %v1270_v17 = vadd.f32 1.0, %v1882_v22  ;;  %v1378_v16 = vmul.f32 2.0, %v1071_v44 }
 0x23f   : > { %1897 = vpow2.f32 %v1263_v1  ;;  %v1072_v49 = vmin.f32 %v1064_v14, 0.5  ;;  %v1291_v54 = vadd.f32 %v1278_v29, %v2895_v18  ;;  %v1393_v6 = vsel %vm1352_vm4, %v1392_v56, %v1391_v46 }
 0x240   : > { %v1884_v53 = vpop.eup %1883  ;;  %1899 = vlog2.f32 %v1158_v27  ;;  %v1297_v7 = vadd.f32 %v1289_v60, %v1177_v25  ;;  %v1298_v31 = vadd.f32 %v1290_v42, %v1178_v20  ;;  %v1394_v8 = vrot.slane %v1376_v21, 4 }
 0x241   : > { %v1886_v62 = vpop.eup %1885  ;;  %v1168_v12 = vmul.f32 0.6931472, %v1884_v53  ;;  %1901 = vlog2.f32 %v1270_v17  ;;  %v1379_v1 = vmul.f32 2.0, %v1072_v49  ;;  %v2896_v32 = vmax.f32 %v2617_v24, 0.0 }
 0x242   : > { %v1159_v63 = vadd.f32 1.0, %v1886_v62  ;;  %v1396_v33 = vrot.slane %v1377_v23, 3  ;;  %v1398_v5 = vrot.slane %v1378_v16, 2  ;;  %v2897_v30 = vmax.f32 %v2619_v26, 0.0 }
 0x243   : > { %v1888_v57 = vpop.eup %1887  ;;  %v1180_v19 = vadd.f32 %v1168_v12, %v2896_v32  ;;  %v1395_v22 = vsel %vm1354_vm5, %v1394_v8, %v1393_v6  ;;  %v1400_v27 = vrot.slane %v1379_v1, 1  ;;  %v1299_v25 = vadd.f32 %v1291_v54, %v1179_v10 }
 0x244   : > { %v1890_v48 = vpop.eup %1889  ;;  %v1280_v2 = vmul.f32 0.6931472, %v1888_v57  ;;  %1903 = vlog2.f32 %v1159_v63  ;;  %v1229_v60 = vmax.f32 %v2641_v15, 0.0  ;;  %v1397_v0 = vsel %vm1356_vm6, %v1396_v33, %v1395_v22 }
 0x245   : > { %v1892_v50 = vpop.eup %1891  ;;  %v1170_v11 = vmul.f32 0.6931472, %v1890_v48  ;;  %v1323_v53 = vrot.slane %v1298_v31, %v2600_v43  ;;  %v1399_v42 = vsel %vm1358_vm7, %v1398_v5, %v1397_v0  ;;  %v2898_v26 = vmax.f32 %v2623_v28, 0.0 }
 0x246   : > { %v1292_v52 = vadd.f32 %v1280_v2, %v2897_v30  ;;  %v1271_v29 = vadd.f32 1.0, %v1892_v50  ;;  %v2734_v62 = vsel %vm1360_vm8, %v1400_v27, %v1399_v42  ;;  %v1319_v44 = vrot.slane %v1297_v7, %v2600_v43 }
 0x247   : > { %v1894_v3 = vpop.eup %1893  ;;  %v1181_v17 = vadd.f32 %v1170_v11, %v2898_v26  ;;  %v1118_v12 = vmax.f32 %v2655_v45, 0.0  ;;  %v1230_v23 = vmax.f32 %v2660_v55, 0.0  ;;  %v1436_v10 = vrot.slane %v2525_v34, %v2600_v43 }
 0x248   : > { %v1896_v56 = vpop.eup %1895  ;;  %v1282_v20 = vmul.f32 0.6931472, %v1894_v3  ;;  %1905 = vlog2.f32 %v1271_v29  ;;  %v1300_v15 = vadd.f32 %v1292_v52, %v1180_v19  ;;  %v1349_v28 = vsel %vm1348_vm2, %v1323_v53, %v1319_v44 }
 0x249   : > { %v1898_v24 = vpop.eup %1897  ;;  %v1160_v58 = vadd.f32 1.0, %v1896_v56  ;;  %v1327_v48 = vrot.slane %v1299_v25, %v2600_v43  ;;  %v2899_v18 = vrot.slane %v2527_v35, %v2600_v43  ;;  %v2900_v45 = vrot.slane %v2531_v37, %v2600_v43 }
 0x24a   : > { %v1293_v51 = vadd.f32 %v1282_v20, %v1229_v60  ;;  %v1272_v4 = vadd.f32 1.0, %v1898_v24  ;;  %v1900_v14 = vpop.eup %1899  ;;  %v1331_v2 = vrot.slane %v1300_v15, %v2600_v43  ;;  %v1440_v34 = vrot.slane %v2529_v36, %v2600_v43 }
 0x24b   : > { %1907 = vlog2.f32 %v1160_v58  ;;  %v1902_v21 = vpop.eup %1901  ;;  %v1172_v63 = vmul.f32 0.6931472, %v1900_v14  ;;  %v1457_v54 = vsel %vm1348_vm2, %v2900_v45, %v2899_v18  ;;  %v1351_v7 = vsel %vm1350_vm3, %v1327_v48, %v1349_v28 }
 0x24c   : > { %1909 = vlog2.f32 %v1272_v4  ;;  %v1284_v57 = vmul.f32 0.6931472, %v1902_v21  ;;  %v1301_v46 = vadd.f32 %v1293_v51, %v1181_v17  ;;  %v1458_v1 = vsel %vm1350_vm3, %v1436_v10, %v1457_v54 }
 0x24d   : > { %v1182_v16 = vadd.f32 %v1172_v63, %v1118_v12  ;;  %v1119_v8 = vmax.f32 %v2666_v61, 0.0  ;;  %v1353_v37 = vsel %vm1352_vm4, %v1331_v2, %v1351_v7  ;;  %v1444_v32 = vrot.slane %v2535_v39, %v2600_v43  ;;  %v1416_v12 = vpop.xlane.xlu1 %1415 }
 0x24e   : > { %v1904_v49 = vpop.eup %1903  ;;  %v1294_v55 = vadd.f32 %v1284_v57, %v1230_v23  ;;  %v1335_v35 = vrot.slane %v1301_v46, %v2600_v43  ;;  %v1231_v19 = vmax.f32 %v2674_v13, 0.0  ;;  %v1459_v5 = vsel %vm1352_vm4, %v1440_v34, %v1458_v1 }
 0x24f   : > { %v1174_v6 = vmul.f32 0.6931472, %v1904_v49  ;;  %v1448_v61 = vrot.slane %v2533_v38, %v2600_v43  ;;  %v1120_v52 = vmax.f32 %v2683_v47, 0.0  ;;  %v1232_v39 = vmax.f32 %v2693_v9, 0.0 }
 0x250   : > { %v1302_v31 = vadd.f32 %v1294_v55, %v1182_v16  ;;  %v1355_v27 = vsel %vm1354_vm5, %v1335_v35, %v1353_v37  ;;  %v1460_v56 = vsel %vm1354_vm5, %v1444_v32, %v1459_v5  ;;  %v1452_v38 = vrot.slane %v2539_v41, %v2600_v43 }
 0x251   : > { %v1183_v11 = vadd.f32 %v1174_v6, %v1119_v8  ;;  %v1461_v47 = vsel %vm1356_vm6, %v1448_v61, %v1460_v56  ;;  %v1456_v9 = vrot.slane %v2537_v40, %v2600_v43  ;;  %v2029_v40 = vmov 0  }
 0x252   : > { %v1906_v50 = vpop.eup %1905  ;;  %v1339_v3 = vrot.slane %v1302_v31, %v2600_v43  ;;  %v1462_v26 = vsel %vm1358_vm7, %v1452_v38, %v1461_v47  ;;  %1845 = vset.pattern.permute.xlu0 %v2029_v40 }
 0x253   : > { %v1286_v33 = vmul.f32 0.6931472, %v1906_v50  ;;  %v1463_v4 = vsel %vm1360_vm8, %v1456_v9, %v1462_v26 }
 0x254   : > { %v1357_v0 = vsel %vm1356_vm6, %v1339_v3, %v1355_v27  ;;  %v1465_v44 = vsel %vm1364_vm10, %v1463_v4, 0.0 }
 0x255   : > { %v1908_v36 = vpop.eup %1907  ;;  %v1295_v22 = vadd.f32 %v1286_v33, %v1231_v19 }
 0x256   : > { %v1910_v30 = vpop.eup %1909  ;;  %v1176_v29 = vmul.f32 0.6931472, %v1908_v36 }
 0x257   : > { %v1288_v13 = vmul.f32 0.6931472, %v1910_v30  ;;  %v1303_v60 = vadd.f32 %v1295_v22, %v1183_v11 }
 0x258   : > { %v1184_v25 = vadd.f32 %v1176_v29, %v1120_v52 }
 0x259   : > { %v1296_v20 = vadd.f32 %v1288_v13, %v1232_v39  ;;  %v1343_v24 = vrot.slane %v1303_v60, %v2600_v43 }
 0x25b   : > { %v1304_v58 = vadd.f32 %v1296_v20, %v1184_v25  ;;  %v1359_v53 = vsel %vm1358_vm7, %v1343_v24, %v1357_v0 }
 0x25d   : > { %v1347_v42 = vrot.slane %v1304_v58, %v2600_v43 }
 0x25f   : > { %v1361_v17 = vsel %vm1360_vm8, %v1347_v42, %v1359_v53 }
 0x260   : > { %v1368_v41 = vsel %vm1307_vm9, %v1361_v17, -1e+30  ;;  %v1363_v51 = vsel %vm1307_vm9, %v1361_v17, 0.0 }
 0x261   : > { %v1369_v14 = vsel %vm1364_vm10, %v1368_v41, -inf  ;;  %v1365_v15 = vsel %vm1364_vm10, %v1363_v51, 0.0 }
 0x262   : > { %1370 = vmax.xlane.f32.xlu0 %v1369_v14  ;;  %1366 = vadd.xlane.f32.xlu1 %v1365_v15 }
 0x266   : > { %1466 = vadd.xlane.f32.xlu0 %v1465_v44 }
 0x2ef   : > { %v1371_v59 = vpop.xlane.xlu0 %1370  ;;  %v1367_v34 = vpop.xlane.xlu1 %1366 }
 0x2f0   : > { %v1403_v43 = vsub.f32 %v1371_v59, %v2734_v62 }
 0x2f2   : > { %v1405_v21 = vand.u32 2147483647, %v1403_v43  ;;  %v1404_v2 = vmax.f32 %v1403_v43, 0.0 }
 0x2f3   : > { %v1467_v63 = vpop.xlane.xlu0 %1466 }
 0x2f4   : > { %v1406_v23 = vsub.f32 0.0, %v1405_v21  ;;  %v1468_v57 = vadd.f32 %v1467_v63, %v1416_v12 }
 0x2f6   : > { %v1407_v28 = vmul.f32 1.442695, %v1406_v23  ;;  %v1469_v10 = vmul.f32 0.01, %v1468_v57 }
 0x2f8   : > { %1911 = vpow2.f32 %v1407_v28  ;;  %v1480_v49 = vrot.slane %v1469_v10, 4 }
 0x2fa   : > { %v1481_v16 = vadd.f32 %v1480_v49, %v1469_v10 }
 0x2fc   : > { %v1482_v46 = vrot.slane %v1481_v16, 2 }
 0x2fe   : > { %v1483_v48 = vadd.f32 %v1482_v46, %v1481_v16 }
 0x300   : > { %v1484_v18 = vrot.slane %v1483_v48, 1 }
 0x302   : > { %v1912_v45 = vpop.eup %1911  ;;  %v1485_v54 = vadd.f32 %v1484_v18, %v1483_v48 }
 0x303   : > { %v1409_v55 = vadd.f32 1.0, %v1912_v45 }
 0x304   : > { %1492 = vst [vmem:[%s2901_s4] sm:$0x1] %v1485_v54 }
 0x305   : > { %1913 = vlog2.f32 %v1409_v55 }
 0x30f   : > { %v1914_v62 = vpop.eup %1913 }
 0x310   : > { %v1411_v6 = vmul.f32 0.6931472, %v1914_v62 }
 0x312   : > { %v1412_v7 = vadd.f32 %v1411_v6, %v1404_v2 }
 0x314   : > { %v1470_v31 = vadd.f32 %v1412_v7, %v1367_v34 }
 0x316   : > { %v1471_v1 = vadd.f32 %v1470_v31, %v1469_v10 }
 0x318   : > { %v1473_v8 = vsel %vm1472_vm11, %v1471_v1, 0.0 }
 0x319   : > { %v1474_v35 = vrot.slane %v1473_v8, 4 }
 0x31b   : > { %v1475_v50 = vadd.f32 %v1474_v35, %v1473_v8 }
 0x31d   : > { %v1476_v37 = vrot.slane %v1475_v50, 2 }
 0x31f   : > { %v1477_v32 = vadd.f32 %v1476_v37, %v1475_v50 }
 0x321   : > { %v1478_v19 = vrot.slane %v1477_v32, 1 }
 0x323   : > { %v1479_v11 = vadd.f32 %v1478_v19, %v1477_v32 }
 0x325   : > { %1488 = vperm.xlu0 %1845, %v1479_v11  }
 0x326   : > { %1940 = shalt.err (!%p1937_p7)
}
 0x327   : > { %s1941_s29 = scalar_lea.hbm %s2791_s11, 16  ;;  %s1945_s17 = scalar_lea.hbm %s2903_s16, 64 }
 0x328   : > { %p1942_p8 = scmp.ne.s32.totalorder %s2791_s11, %s1941_s29  ;;  %p1946_p13 = scmp.lt.u32.totalorder %s2791_s11, %s2903_s16 }
 0x329   : > { %p1947_p0 = scmp.lt.u32.totalorder %s1945_s17, %s1941_s29  ;;  %p1949_p2 = scmp.lt.u32.totalorder %s1941_s29, %s2791_s11 }
 0x32a   : > { %p1943_p9 = pnand %p1942_p8, %p2098_p10 }
 0x32b   : > { %p1948_p1 = por %p1947_p0, %p1946_p13 }
 0x32c   : > { %p1944_p12 = pneg %p1943_p9 }
 0x32d   : > { %p1950_p3 = por %p1949_p2, %p1948_p1 }
 0x32f   : > { %p1951_p4 = pnand %p1950_p3, %p1944_p12 }
 0x331   : > { %1954 = shalt.err (!%p1951_p4)
}
 0x332   : > { %1799 = dma.vmem_to_hbm [thread:$0]  (%p2098_p10), %s1524_s22, 16, %s2791_s11, %s1498_s6  }
 0x333   : > { %s2905_s7 = scalar_lea.vmem [#allocation7], %s2109_s5  ;;  %s2906_s25 = sld [smem:[#allocation32_spill]] }
 0x334   : > { %s1510_s1 = sshll.u32 %s2905_s7, 4  ;;  %s2907_s21 = smov %s2905_s7  ;;  %s2822_s1 = int_to_ptr.vmem [resolvable:$true] %s1510_s1 }
 0x335   : > { %s1494_s9 = scalar_lea.sflag [#allocation8], %s2109_s5  ;;  %s1955_s4 = scalar_lea.vmem %s2822_s1, 16 }
 0x336   : > { %p1956_p5 = scmp.ne.s32.totalorder %s2822_s1, %s1955_s4  ;;  %s2031_s23 = smov [#allocation7]  }
 0x337   : > { %s1959_s30 = sshll.u32 %s2031_s23, 4  ;;  %s1960_s30 = int_to_ptr.vmem [resolvable:$false] %s1959_s30 }
 0x338   : > { %p1957_p6 = pnand %p1956_p5, %p2098_p10  ;;  %s1961_s8 = scalar_lea.vmem %s1960_s30, 32 }
 0x339   : > { %s2820_s12 = scalar_lea.hbm %s2906_s25, %s1771_s26  ;;  %p1962_p8 = scmp.lt.s32.totalorder %s2822_s1, %s1960_s30 }
 0x33a   : > { %p1958_p7 = pneg %p1957_p6  ;;  %p1963_p9 = scmp.lt.s32.totalorder %s1961_s8, %s1955_s4 }
 0x33c   : > { %p1964_p12 = por %p1963_p9, %p1962_p8 }
 0x33e   : > { %p1965_p13 = pnand %p1964_p12, %p1958_p7 }
 0x3a4   : > { %v1489_v33 = vpop.permute.xlu0 %1488 }
 0x3a5   : > { %1491 = vst [vmem:[%s2907_s21] sm:$0x1] %v1489_v33 }
 0x3a6   : > { %1968 = shalt.err (!%p1965_p13)
}
 0x3a7   : > { %s1969_s5 = scalar_lea.hbm %s2820_s12, 16  ;;  %s1973_s13 = scalar_lea.hbm %s2906_s25, 64 }
 0x3a8   : > { %p1970_p0 = scmp.ne.s32.totalorder %s2820_s12, %s1969_s5  ;;  %p1974_p3 = scmp.lt.u32.totalorder %s2820_s12, %s2906_s25 }
 0x3a9   : > { %p1975_p4 = scmp.lt.u32.totalorder %s1973_s13, %s1969_s5  ;;  %p1977_p6 = scmp.lt.u32.totalorder %s1969_s5, %s2820_s12 }
 0x3aa   : > { %p1971_p1 = pnand %p1970_p0, %p2098_p10 }
 0x3ab   : > { %p1976_p5 = por %p1975_p4, %p1974_p3 }
 0x3ac   : > { %p1972_p2 = pneg %p1971_p1 }
 0x3ad   : > { %p1978_p7 = por %p1977_p6, %p1976_p5 }
 0x3af   : > { %p1979_p8 = pnand %p1978_p7, %p1972_p2 }
 0x3b1   : > { %1982 = shalt.err (!%p1979_p8)
}
 0x3b2   : > { %1798 = dma.vmem_to_hbm [thread:$0]  (%p2098_p10), %s2822_s1, 16, %s2820_s12, %s1494_s9  }
 0x3b3 PF: > { %s2908_s24 = sld [smem:[#allocation26_spill]]  ;;  %s2909_s19 = sld [smem:[#allocation23_spill]] }
 0x3b9   : > { %p1809_p9 = scmp.ge.s32.totalorder %s2908_s24, 2  ;;  %s1535_s0 = sand.u32 1, %s2909_s19  }
 0x3ba   : > { %s1536_s29 = scalar_lea.sflag [#allocation8], %s1535_s0 }
 0x3bb   : > { %p1803_p12 = pnand %p1809_p9, %p2102_p11 }
 0x3bd   : > { %2004 = dma.done.wait (!%p1803_p12), %s1536_s29, 16  }
 0x3be   : > { %2006 = vsyncadd (!%p1803_p12), %s1536_s29, 4294967280  ;;  %s1544_s15 = scalar_lea.sflag [#allocation10], %s1535_s0 }
 0x3bf   : > { %2008 = dma.done.wait (!%p1803_p12), %s1544_s15, 16  }
 0x3c0   : > { %2010 = vsyncadd (!%p1803_p12), %s1544_s15, 4294967280  ;;  %s2911_s22 = sld [smem:[#allocation27_spill]]  ;;  %s2912_s20 = sld [smem:[#allocation24_spill]] }
 0x3c1   : > { %s2913_s0 = sld [smem:[#allocation25_spill]]  ;;  %s2914_s21 = sld [smem:[#allocation28_spill]] }
 0x3c6   : > { %p24_p10 = scmp.ge.s32.totalorder %s2911_s22, 6  }
 0x3c8   :  { %26 = sbr.rel (!%p24_p10) target bundleno = 21 (0x15), region = 479 }
 0x3cf   :  { %1548 = vsyncpa [#allocation8], 1 }
 0x3d0   :  { %1550 = vsyncpa [#allocation8 + $0x1], 1 }
 0x3d1   :  { %1551 = vsyncpa [#allocation10], 1 }
 0x3d2   :  { %1553 = vsyncpa [#allocation10 + $0x1], 1 }
 0x3d3   :  { %1554 = vsyncmov [#allocation4] }
 0x3d6   :  { %s1555_s14 = vpop.sfrf %1554 }
 0x3d7   :  { %p1775_p11 = scmp.ne.s32.totalorder %s1555_s14, 0 }
 0x3d9   :  { %1559 = shalt.err (%p1775_p11)  }

</bundles_post_ra>
